<compile_context>
chip_gen: v6e
topology: v6e:2x2x1
jax: 0.10.0
libtpu: 0.0.40
codegen_flags: <defaults>
</compile_context>

<pallas_src>
import numpy as np
import jax
import jax.numpy as jnp
from jax.experimental import pallas as pl
from jax.experimental.pallas import tpu as pltpu


def _make_shift_matrices(H, W):
    """S[t] is (H*W, H*W) with S[t][j, i] = 1 iff output position i reads input
    position j for tap t = kh*3 + kw of a 3x3 'same' conv (zero outside)."""
    HW = H * W
    i = np.arange(HW)
    ih, iw = i // W, i % W
    mats = np.zeros((9, HW, HW), np.float32)
    t = 0
    for dh in (-1, 0, 1):
        for dw in (-1, 0, 1):
            jh, jw = ih + dh, iw + dw
            valid = (jh >= 0) & (jh < H) & (jw >= 0) & (jw < W)
            j = jh * W + jw
            mats[t, j[valid], i[valid]] = 1.0
            t += 1
    return jnp.asarray(mats)


def pack_params(params):
    """params: list of (w_hwio (3,3,cin,cout), b (cout,)).
    Returns kernel-ready per-layer (wT (9, cout, cin), b (cout, 1))."""
    packed = []
    for w_hwio, b in params:
        kh, kw, cin, cout = w_hwio.shape
        wT = jnp.transpose(w_hwio, (0, 1, 3, 2)).reshape(kh * kw, cout, cin)
        packed.append((wT, b.reshape(cout, 1)))
    return packed


def stacked_conv_forward(x_nchw, packed, shift_mats):
    """StackedConv forward: NCHW in, NCHW out (matches the PyTorch module)."""
    N, C0, H, W = x_nchw.shape
    HW = H * W
    (w1, b1), (w2, b2), (w3, b3) = packed
    c_out = w3.shape[1]

    def kernel(x_ref, s_ref, w1_ref, b1_ref, w2_ref, b2_ref, w3_ref, b3_ref,
               o_ref):
        def conv3x3_relu(a, w_ref, b_ref):
            # a: (cin, HW) f32, channels-major with a lane-dense spatial axis.
            # w_ref: (9, cout, cin)   b_ref: (cout, 1)
            cout = w_ref.shape[1]
            acc = jnp.zeros((cout, a.shape[1]), jnp.float32)
            for t in range(9):
                if t == 4:
                    shifted = a              # center tap: identity shift
                else:
                    # spatial shift + 'same' zero padding via 0/1 matrix (MXU)
                    shifted = jnp.dot(a, s_ref[t],
                                      preferred_element_type=jnp.float32)
                acc = acc + jnp.dot(w_ref[t], shifted,
                                    preferred_element_type=jnp.float32)
            return jnp.maximum(acc + b_ref[...], 0.0)   # bias + ReLU fused

        a = x_ref[0].astype(jnp.float32)                 # (C0, HW)
        a = conv3x3_relu(a, w1_ref, b1_ref)              # (6, HW)
        a = conv3x3_relu(a, w2_ref, b2_ref)              # (6, HW)
        a = conv3x3_relu(a, w3_ref, b3_ref)              # (6, HW)
        o_ref[...] = a.reshape(o_ref.shape).astype(o_ref.dtype)

    out_flat = pl.pallas_call(
        kernel,
        out_shape=jax.ShapeDtypeStruct((N, c_out, HW), x_nchw.dtype),
        grid=(N,),
        in_specs=[
            pl.BlockSpec((1, C0, HW), lambda n: (n, 0, 0)),
            pl.BlockSpec(shift_mats.shape, lambda n: (0, 0, 0)),
            pl.BlockSpec(w1.shape, lambda n: (0, 0, 0)),
            pl.BlockSpec(b1.shape, lambda n: (0, 0)),
            pl.BlockSpec(w2.shape, lambda n: (0, 0, 0)),
            pl.BlockSpec(b2.shape, lambda n: (0, 0)),
            pl.BlockSpec(w3.shape, lambda n: (0, 0, 0)),
            pl.BlockSpec(b3.shape, lambda n: (0, 0)),
        ],
        out_specs=pl.BlockSpec((1, c_out, HW), lambda n: (n, 0, 0)),
        compiler_params=pltpu.CompilerParams(
            dimension_semantics=("parallel",)),
    )(x_nchw.reshape(N, C0, HW), shift_mats, w1, b1, w2, b2, w3, b3)

    # Free metadata reshape back to NCHW -- no transpose, no extra XLA kernels.
    return out_flat.reshape(N, c_out, H, W)


def init_params(key, in_size):
    """Deterministic parameters. PyTorch Conv2d weight is (Cout, Cin, kH, kW);
    we store HWIO = (kH, kW, Cin, Cout)."""
    params = []
    cin = in_size
    for _ in range(3):
        cout = 6
        key, kw_, kb_ = jax.random.split(key, 3)
        fan_in = cin * 3 * 3
        bound = 1.0 / jnp.sqrt(fan_in)
        w_oihw = jax.random.uniform(kw_, (cout, cin, 3, 3),
                                    jnp.float32, -bound, bound)
        b = jax.random.uniform(kb_, (cout,), jnp.float32, -bound, bound)
        w_hwio = jnp.transpose(w_oihw, (2, 3, 1, 0))   # OIHW -> HWIO
        params.append((w_hwio, b))
        cin = cout
    return params


def reference_forward(x_nchw, params):
    """Pure-JAX reference (lax conv) for correctness check."""
    x = x_nchw
    for (w_hwio, b) in params:
        w_oihw = jnp.transpose(w_hwio, (3, 2, 0, 1))
        y = jax.lax.conv_general_dilated(
            x, w_oihw, window_strides=(1, 1), padding="SAME",
            dimension_numbers=("NCHW", "OIHW", "NCHW"))
        x = jnp.maximum(y + b[None, :, None, None], 0.0)
    return x


if __name__ == "__main__":
    key = jax.random.PRNGKey(0)
    key, kx = jax.random.split(key)

    # Small shapes consistent with the module: batch=2, in_channels=4, 16x16.
    in_size = 4
    x = jax.random.normal(kx, (2, in_size, 16, 16), jnp.float32)

    params = init_params(key, in_size)
    packed = pack_params(params)
    shift_mats = _make_shift_matrices(16, 16)

    fwd = jax.jit(stacked_conv_forward)
    out = jax.block_until_ready(fwd(x, packed, shift_mats))

    ref = reference_forward(x, params)
    assert out.shape == (2, 6, 16, 16)
    assert jnp.allclose(out, ref, atol=1e-4, rtol=1e-4), \
        float(jnp.max(jnp.abs(out - ref)))

    print("KERNEL_OK")
</pallas_src>

<mosaic_0001>
module attributes {stable_mosaic.version = 11 : i64} {
  func.func @kernel(%arg0: i32, %arg1: memref<1x4x256xf32, #tpu.memory_space<vmem>>, %arg2: memref<9x256x256xf32, #tpu.memory_space<vmem>>, %arg3: memref<9x6x4xf32, #tpu.memory_space<vmem>>, %arg4: memref<6x1xf32, #tpu.memory_space<vmem>>, %arg5: memref<9x6x6xf32, #tpu.memory_space<vmem>>, %arg6: memref<6x1xf32, #tpu.memory_space<vmem>>, %arg7: memref<9x6x6xf32, #tpu.memory_space<vmem>>, %arg8: memref<6x1xf32, #tpu.memory_space<vmem>>, %arg9: memref<1x6x256xf32, #tpu.memory_space<vmem>>) attributes {dimension_semantics = [#tpu.dimension_semantics<parallel>], iteration_bounds = array<i64: 2>, scalar_prefetch = 0 : i64, scratch_operands = 0 : i64, tpu.core_type = #tpu.core_type<tc>, window_params = [{transform_indices = @transform_0, window_bounds = array<i64: 1, 4, 256>}, {pipeline_mode = #tpu.pipeline_mode<synchronous>, transform_indices = @transform_1, window_bounds = array<i64: 9, 256, 256>}, {pipeline_mode = #tpu.pipeline_mode<synchronous>, transform_indices = @transform_2, window_bounds = array<i64: 9, 6, 4>}, {pipeline_mode = #tpu.pipeline_mode<synchronous>, transform_indices = @transform_3, window_bounds = array<i64: 6, 1>}, {pipeline_mode = #tpu.pipeline_mode<synchronous>, transform_indices = @transform_4, window_bounds = array<i64: 9, 6, 6>}, {pipeline_mode = #tpu.pipeline_mode<synchronous>, transform_indices = @transform_5, window_bounds = array<i64: 6, 1>}, {pipeline_mode = #tpu.pipeline_mode<synchronous>, transform_indices = @transform_6, window_bounds = array<i64: 9, 6, 6>}, {pipeline_mode = #tpu.pipeline_mode<synchronous>, transform_indices = @transform_7, window_bounds = array<i64: 6, 1>}, {transform_indices = @transform_8, window_bounds = array<i64: 1, 6, 256>}]} {
    %c0 = arith.constant 0 : index
    %c0_0 = arith.constant 0 : index
    %c0_1 = arith.constant 0 : index
    %0 = vector.load %arg1[%c0, %c0_0, %c0_1] : memref<1x4x256xf32, #tpu.memory_space<vmem>>, vector<1x4x256xf32>
    %1 = vector.shape_cast %0 : vector<1x4x256xf32> to vector<4x256xf32>
    %cst = arith.constant 0.000000e+00 : f32
    %2 = vector.broadcast %cst : f32 to vector<6x256xf32>
    %c0_2 = arith.constant 0 : index
    %c0_3 = arith.constant 0 : index
    %c0_4 = arith.constant 0 : index
    %3 = vector.load %arg2[%c0_2, %c0_3, %c0_4] : memref<9x256x256xf32, #tpu.memory_space<vmem>>, vector<1x256x256xf32>
    %4 = vector.shape_cast %3 : vector<1x256x256xf32> to vector<256x256xf32>
    %cst_5 = arith.constant dense<0.000000e+00> : vector<4x256xf32>
    %5 = tpu.matmul %1, %4, %cst_5 {dimension_numbers = #tpu.dot_dimension_numbers<[1], [0], [0], [1], [0, 0, 1, 1], [], []>} : vector<4x256xf32>, vector<256x256xf32>, vector<4x256xf32> -> vector<4x256xf32>
    %c0_6 = arith.constant 0 : index
    %c0_7 = arith.constant 0 : index
    %c0_8 = arith.constant 0 : index
    %6 = vector.load %arg3[%c0_6, %c0_7, %c0_8] : memref<9x6x4xf32, #tpu.memory_space<vmem>>, vector<1x6x4xf32>
    %7 = vector.shape_cast %6 : vector<1x6x4xf32> to vector<6x4xf32>
    %cst_9 = arith.constant dense<0.000000e+00> : vector<6x256xf32>
    %8 = tpu.matmul %7, %5, %cst_9 {dimension_numbers = #tpu.dot_dimension_numbers<[1], [0], [0], [1], [0, 0, 1, 1], [], []>} : vector<6x4xf32>, vector<4x256xf32>, vector<6x256xf32> -> vector<6x256xf32>
    %9 = arith.addf %2, %8 : vector<6x256xf32>
    %c1 = arith.constant 1 : index
    %c0_10 = arith.constant 0 : index
    %c0_11 = arith.constant 0 : index
    %10 = vector.load %arg2[%c1, %c0_10, %c0_11] : memref<9x256x256xf32, #tpu.memory_space<vmem>>, vector<1x256x256xf32>
    %11 = vector.shape_cast %10 : vector<1x256x256xf32> to vector<256x256xf32>
    %cst_12 = arith.constant dense<0.000000e+00> : vector<4x256xf32>
    %12 = tpu.matmul %1, %11, %cst_12 {dimension_numbers = #tpu.dot_dimension_numbers<[1], [0], [0], [1], [0, 0, 1, 1], [], []>} : vector<4x256xf32>, vector<256x256xf32>, vector<4x256xf32> -> vector<4x256xf32>
    %c1_13 = arith.constant 1 : index
    %c0_14 = arith.constant 0 : index
    %c0_15 = arith.constant 0 : index
    %13 = vector.load %arg3[%c1_13, %c0_14, %c0_15] : memref<9x6x4xf32, #tpu.memory_space<vmem>>, vector<1x6x4xf32>
    %14 = vector.shape_cast %13 : vector<1x6x4xf32> to vector<6x4xf32>
    %cst_16 = arith.constant dense<0.000000e+00> : vector<6x256xf32>
    %15 = tpu.matmul %14, %12, %cst_16 {dimension_numbers = #tpu.dot_dimension_numbers<[1], [0], [0], [1], [0, 0, 1, 1], [], []>} : vector<6x4xf32>, vector<4x256xf32>, vector<6x256xf32> -> vector<6x256xf32>
    %16 = arith.addf %9, %15 : vector<6x256xf32>
    %c2 = arith.constant 2 : index
    %c0_17 = arith.constant 0 : index
    %c0_18 = arith.constant 0 : index
    %17 = vector.load %arg2[%c2, %c0_17, %c0_18] : memref<9x256x256xf32, #tpu.memory_space<vmem>>, vector<1x256x256xf32>
    %18 = vector.shape_cast %17 : vector<1x256x256xf32> to vector<256x256xf32>
    %cst_19 = arith.constant dense<0.000000e+00> : vector<4x256xf32>
    %19 = tpu.matmul %1, %18, %cst_19 {dimension_numbers = #tpu.dot_dimension_numbers<[1], [0], [0], [1], [0, 0, 1, 1], [], []>} : vector<4x256xf32>, vector<256x256xf32>, vector<4x256xf32> -> vector<4x256xf32>
    %c2_20 = arith.constant 2 : index
    %c0_21 = arith.constant 0 : index
    %c0_22 = arith.constant 0 : index
    %20 = vector.load %arg3[%c2_20, %c0_21, %c0_22] : memref<9x6x4xf32, #tpu.memory_space<vmem>>, vector<1x6x4xf32>
    %21 = vector.shape_cast %20 : vector<1x6x4xf32> to vector<6x4xf32>
    %cst_23 = arith.constant dense<0.000000e+00> : vector<6x256xf32>
    %22 = tpu.matmul %21, %19, %cst_23 {dimension_numbers = #tpu.dot_dimension_numbers<[1], [0], [0], [1], [0, 0, 1, 1], [], []>} : vector<6x4xf32>, vector<4x256xf32>, vector<6x256xf32> -> vector<6x256xf32>
    %23 = arith.addf %16, %22 : vector<6x256xf32>
    %c3 = arith.constant 3 : index
    %c0_24 = arith.constant 0 : index
    %c0_25 = arith.constant 0 : index
    %24 = vector.load %arg2[%c3, %c0_24, %c0_25] : memref<9x256x256xf32, #tpu.memory_space<vmem>>, vector<1x256x256xf32>
    %25 = vector.shape_cast %24 : vector<1x256x256xf32> to vector<256x256xf32>
    %cst_26 = arith.constant dense<0.000000e+00> : vector<4x256xf32>
    %26 = tpu.matmul %1, %25, %cst_26 {dimension_numbers = #tpu.dot_dimension_numbers<[1], [0], [0], [1], [0, 0, 1, 1], [], []>} : vector<4x256xf32>, vector<256x256xf32>, vector<4x256xf32> -> vector<4x256xf32>
    %c3_27 = arith.constant 3 : index
    %c0_28 = arith.constant 0 : index
    %c0_29 = arith.constant 0 : index
    %27 = vector.load %arg3[%c3_27, %c0_28, %c0_29] : memref<9x6x4xf32, #tpu.memory_space<vmem>>, vector<1x6x4xf32>
    %28 = vector.shape_cast %27 : vector<1x6x4xf32> to vector<6x4xf32>
    %cst_30 = arith.constant dense<0.000000e+00> : vector<6x256xf32>
    %29 = tpu.matmul %28, %26, %cst_30 {dimension_numbers = #tpu.dot_dimension_numbers<[1], [0], [0], [1], [0, 0, 1, 1], [], []>} : vector<6x4xf32>, vector<4x256xf32>, vector<6x256xf32> -> vector<6x256xf32>
    %30 = arith.addf %23, %29 : vector<6x256xf32>
    %c4 = arith.constant 4 : index
    %c0_31 = arith.constant 0 : index
    %c0_32 = arith.constant 0 : index
    %31 = vector.load %arg3[%c4, %c0_31, %c0_32] : memref<9x6x4xf32, #tpu.memory_space<vmem>>, vector<1x6x4xf32>
    %32 = vector.shape_cast %31 : vector<1x6x4xf32> to vector<6x4xf32>
    %cst_33 = arith.constant dense<0.000000e+00> : vector<6x256xf32>
    %33 = tpu.matmul %32, %1, %cst_33 {dimension_numbers = #tpu.dot_dimension_numbers<[1], [0], [0], [1], [0, 0, 1, 1], [], []>} : vector<6x4xf32>, vector<4x256xf32>, vector<6x256xf32> -> vector<6x256xf32>
    %34 = arith.addf %30, %33 : vector<6x256xf32>
    %c5 = arith.constant 5 : index
    %c0_34 = arith.constant 0 : index
    %c0_35 = arith.constant 0 : index
    %35 = vector.load %arg2[%c5, %c0_34, %c0_35] : memref<9x256x256xf32, #tpu.memory_space<vmem>>, vector<1x256x256xf32>
    %36 = vector.shape_cast %35 : vector<1x256x256xf32> to vector<256x256xf32>
    %cst_36 = arith.constant dense<0.000000e+00> : vector<4x256xf32>
    %37 = tpu.matmul %1, %36, %cst_36 {dimension_numbers = #tpu.dot_dimension_numbers<[1], [0], [0], [1], [0, 0, 1, 1], [], []>} : vector<4x256xf32>, vector<256x256xf32>, vector<4x256xf32> -> vector<4x256xf32>
    %c5_37 = arith.constant 5 : index
    %c0_38 = arith.constant 0 : index
    %c0_39 = arith.constant 0 : index
    %38 = vector.load %arg3[%c5_37, %c0_38, %c0_39] : memref<9x6x4xf32, #tpu.memory_space<vmem>>, vector<1x6x4xf32>
    %39 = vector.shape_cast %38 : vector<1x6x4xf32> to vector<6x4xf32>
    %cst_40 = arith.constant dense<0.000000e+00> : vector<6x256xf32>
    %40 = tpu.matmul %39, %37, %cst_40 {dimension_numbers = #tpu.dot_dimension_numbers<[1], [0], [0], [1], [0, 0, 1, 1], [], []>} : vector<6x4xf32>, vector<4x256xf32>, vector<6x256xf32> -> vector<6x256xf32>
    %41 = arith.addf %34, %40 : vector<6x256xf32>
    %c6 = arith.constant 6 : index
    %c0_41 = arith.constant 0 : index
    %c0_42 = arith.constant 0 : index
    %42 = vector.load %arg2[%c6, %c0_41, %c0_42] : memref<9x256x256xf32, #tpu.memory_space<vmem>>, vector<1x256x256xf32>
    %43 = vector.shape_cast %42 : vector<1x256x256xf32> to vector<256x256xf32>
    %cst_43 = arith.constant dense<0.000000e+00> : vector<4x256xf32>
    %44 = tpu.matmul %1, %43, %cst_43 {dimension_numbers = #tpu.dot_dimension_numbers<[1], [0], [0], [1], [0, 0, 1, 1], [], []>} : vector<4x256xf32>, vector<256x256xf32>, vector<4x256xf32> -> vector<4x256xf32>
    %c6_44 = arith.constant 6 : index
    %c0_45 = arith.constant 0 : index
    %c0_46 = arith.constant 0 : index
    %45 = vector.load %arg3[%c6_44, %c0_45, %c0_46] : memref<9x6x4xf32, #tpu.memory_space<vmem>>, vector<1x6x4xf32>
    %46 = vector.shape_cast %45 : vector<1x6x4xf32> to vector<6x4xf32>
    %cst_47 = arith.constant dense<0.000000e+00> : vector<6x256xf32>
    %47 = tpu.matmul %46, %44, %cst_47 {dimension_numbers = #tpu.dot_dimension_numbers<[1], [0], [0], [1], [0, 0, 1, 1], [], []>} : vector<6x4xf32>, vector<4x256xf32>, vector<6x256xf32> -> vector<6x256xf32>
    %48 = arith.addf %41, %47 : vector<6x256xf32>
    %c7 = arith.constant 7 : index
    %c0_48 = arith.constant 0 : index
    %c0_49 = arith.constant 0 : index
    %49 = vector.load %arg2[%c7, %c0_48, %c0_49] : memref<9x256x256xf32, #tpu.memory_space<vmem>>, vector<1x256x256xf32>
    %50 = vector.shape_cast %49 : vector<1x256x256xf32> to vector<256x256xf32>
    %cst_50 = arith.constant dense<0.000000e+00> : vector<4x256xf32>
    %51 = tpu.matmul %1, %50, %cst_50 {dimension_numbers = #tpu.dot_dimension_numbers<[1], [0], [0], [1], [0, 0, 1, 1], [], []>} : vector<4x256xf32>, vector<256x256xf32>, vector<4x256xf32> -> vector<4x256xf32>
    %c7_51 = arith.constant 7 : index
    %c0_52 = arith.constant 0 : index
    %c0_53 = arith.constant 0 : index
    %52 = vector.load %arg3[%c7_51, %c0_52, %c0_53] : memref<9x6x4xf32, #tpu.memory_space<vmem>>, vector<1x6x4xf32>
    %53 = vector.shape_cast %52 : vector<1x6x4xf32> to vector<6x4xf32>
    %cst_54 = arith.constant dense<0.000000e+00> : vector<6x256xf32>
    %54 = tpu.matmul %53, %51, %cst_54 {dimension_numbers = #tpu.dot_dimension_numbers<[1], [0], [0], [1], [0, 0, 1, 1], [], []>} : vector<6x4xf32>, vector<4x256xf32>, vector<6x256xf32> -> vector<6x256xf32>
    %55 = arith.addf %48, %54 : vector<6x256xf32>
    %c8 = arith.constant 8 : index
    %c0_55 = arith.constant 0 : index
    %c0_56 = arith.constant 0 : index
    %56 = vector.load %arg2[%c8, %c0_55, %c0_56] : memref<9x256x256xf32, #tpu.memory_space<vmem>>, vector<1x256x256xf32>
    %57 = vector.shape_cast %56 : vector<1x256x256xf32> to vector<256x256xf32>
    %cst_57 = arith.constant dense<0.000000e+00> : vector<4x256xf32>
    %58 = tpu.matmul %1, %57, %cst_57 {dimension_numbers = #tpu.dot_dimension_numbers<[1], [0], [0], [1], [0, 0, 1, 1], [], []>} : vector<4x256xf32>, vector<256x256xf32>, vector<4x256xf32> -> vector<4x256xf32>
    %c8_58 = arith.constant 8 : index
    %c0_59 = arith.constant 0 : index
    %c0_60 = arith.constant 0 : index
    %59 = vector.load %arg3[%c8_58, %c0_59, %c0_60] : memref<9x6x4xf32, #tpu.memory_space<vmem>>, vector<1x6x4xf32>
    %60 = vector.shape_cast %59 : vector<1x6x4xf32> to vector<6x4xf32>
    %cst_61 = arith.constant dense<0.000000e+00> : vector<6x256xf32>
    %61 = tpu.matmul %60, %58, %cst_61 {dimension_numbers = #tpu.dot_dimension_numbers<[1], [0], [0], [1], [0, 0, 1, 1], [], []>} : vector<6x4xf32>, vector<4x256xf32>, vector<6x256xf32> -> vector<6x256xf32>
    %62 = arith.addf %55, %61 : vector<6x256xf32>
    %c0_62 = arith.constant 0 : index
    %c0_63 = arith.constant 0 : index
    %63 = vector.load %arg4[%c0_62, %c0_63] : memref<6x1xf32, #tpu.memory_space<vmem>>, vector<6x1xf32>
    %64 = vector.broadcast %63 : vector<6x1xf32> to vector<6x256xf32>
    %65 = arith.addf %62, %64 : vector<6x256xf32>
    %cst_64 = arith.constant 0.000000e+00 : f32
    %66 = vector.broadcast %cst_64 : f32 to vector<6x256xf32>
    %67 = arith.maximumf %65, %66 : vector<6x256xf32>
    %cst_65 = arith.constant 0.000000e+00 : f32
    %68 = vector.broadcast %cst_65 : f32 to vector<6x256xf32>
    %c0_66 = arith.constant 0 : index
    %c0_67 = arith.constant 0 : index
    %c0_68 = arith.constant 0 : index
    %69 = vector.load %arg2[%c0_66, %c0_67, %c0_68] : memref<9x256x256xf32, #tpu.memory_space<vmem>>, vector<1x256x256xf32>
    %70 = vector.shape_cast %69 : vector<1x256x256xf32> to vector<256x256xf32>
    %cst_69 = arith.constant dense<0.000000e+00> : vector<6x256xf32>
    %71 = tpu.matmul %67, %70, %cst_69 {dimension_numbers = #tpu.dot_dimension_numbers<[1], [0], [0], [1], [0, 0, 1, 1], [], []>} : vector<6x256xf32>, vector<256x256xf32>, vector<6x256xf32> -> vector<6x256xf32>
    %c0_70 = arith.constant 0 : index
    %c0_71 = arith.constant 0 : index
    %c0_72 = arith.constant 0 : index
    %72 = vector.load %arg5[%c0_70, %c0_71, %c0_72] : memref<9x6x6xf32, #tpu.memory_space<vmem>>, vector<1x6x6xf32>
    %73 = vector.shape_cast %72 : vector<1x6x6xf32> to vector<6x6xf32>
    %cst_73 = arith.constant dense<0.000000e+00> : vector<6x256xf32>
    %74 = tpu.matmul %73, %71, %cst_73 {dimension_numbers = #tpu.dot_dimension_numbers<[1], [0], [0], [1], [0, 0, 1, 1], [], []>} : vector<6x6xf32>, vector<6x256xf32>, vector<6x256xf32> -> vector<6x256xf32>
    %75 = arith.addf %68, %74 : vector<6x256xf32>
    %c1_74 = arith.constant 1 : index
    %c0_75 = arith.constant 0 : index
    %c0_76 = arith.constant 0 : index
    %76 = vector.load %arg2[%c1_74, %c0_75, %c0_76] : memref<9x256x256xf32, #tpu.memory_space<vmem>>, vector<1x256x256xf32>
    %77 = vector.shape_cast %76 : vector<1x256x256xf32> to vector<256x256xf32>
    %cst_77 = arith.constant dense<0.000000e+00> : vector<6x256xf32>
    %78 = tpu.matmul %67, %77, %cst_77 {dimension_numbers = #tpu.dot_dimension_numbers<[1], [0], [0], [1], [0, 0, 1, 1], [], []>} : vector<6x256xf32>, vector<256x256xf32>, vector<6x256xf32> -> vector<6x256xf32>
    %c1_78 = arith.constant 1 : index
    %c0_79 = arith.constant 0 : index
    %c0_80 = arith.constant 0 : index
    %79 = vector.load %arg5[%c1_78, %c0_79, %c0_80] : memref<9x6x6xf32, #tpu.memory_space<vmem>>, vector<1x6x6xf32>
    %80 = vector.shape_cast %79 : vector<1x6x6xf32> to vector<6x6xf32>
    %cst_81 = arith.constant dense<0.000000e+00> : vector<6x256xf32>
    %81 = tpu.matmul %80, %78, %cst_81 {dimension_numbers = #tpu.dot_dimension_numbers<[1], [0], [0], [1], [0, 0, 1, 1], [], []>} : vector<6x6xf32>, vector<6x256xf32>, vector<6x256xf32> -> vector<6x256xf32>
    %82 = arith.addf %75, %81 : vector<6x256xf32>
    %c2_82 = arith.constant 2 : index
    %c0_83 = arith.constant 0 : index
    %c0_84 = arith.constant 0 : index
    %83 = vector.load %arg2[%c2_82, %c0_83, %c0_84] : memref<9x256x256xf32, #tpu.memory_space<vmem>>, vector<1x256x256xf32>
    %84 = vector.shape_cast %83 : vector<1x256x256xf32> to vector<256x256xf32>
    %cst_85 = arith.constant dense<0.000000e+00> : vector<6x256xf32>
    %85 = tpu.matmul %67, %84, %cst_85 {dimension_numbers = #tpu.dot_dimension_numbers<[1], [0], [0], [1], [0, 0, 1, 1], [], []>} : vector<6x256xf32>, vector<256x256xf32>, vector<6x256xf32> -> vector<6x256xf32>
    %c2_86 = arith.constant 2 : index
    %c0_87 = arith.constant 0 : index
    %c0_88 = arith.constant 0 : index
    %86 = vector.load %arg5[%c2_86, %c0_87, %c0_88] : memref<9x6x6xf32, #tpu.memory_space<vmem>>, vector<1x6x6xf32>
    %87 = vector.shape_cast %86 : vector<1x6x6xf32> to vector<6x6xf32>
    %cst_89 = arith.constant dense<0.000000e+00> : vector<6x256xf32>
    %88 = tpu.matmul %87, %85, %cst_89 {dimension_numbers = #tpu.dot_dimension_numbers<[1], [0], [0], [1], [0, 0, 1, 1], [], []>} : vector<6x6xf32>, vector<6x256xf32>, vector<6x256xf32> -> vector<6x256xf32>
    %89 = arith.addf %82, %88 : vector<6x256xf32>
    %c3_90 = arith.constant 3 : index
    %c0_91 = arith.constant 0 : index
    %c0_92 = arith.constant 0 : index
    %90 = vector.load %arg2[%c3_90, %c0_91, %c0_92] : memref<9x256x256xf32, #tpu.memory_space<vmem>>, vector<1x256x256xf32>
    %91 = vector.shape_cast %90 : vector<1x256x256xf32> to vector<256x256xf32>
    %cst_93 = arith.constant dense<0.000000e+00> : vector<6x256xf32>
    %92 = tpu.matmul %67, %91, %cst_93 {dimension_numbers = #tpu.dot_dimension_numbers<[1], [0], [0], [1], [0, 0, 1, 1], [], []>} : vector<6x256xf32>, vector<256x256xf32>, vector<6x256xf32> -> vector<6x256xf32>
    %c3_94 = arith.constant 3 : index
    %c0_95 = arith.constant 0 : index
    %c0_96 = arith.constant 0 : index
    %93 = vector.load %arg5[%c3_94, %c0_95, %c0_96] : memref<9x6x6xf32, #tpu.memory_space<vmem>>, vector<1x6x6xf32>
    %94 = vector.shape_cast %93 : vector<1x6x6xf32> to vector<6x6xf32>
    %cst_97 = arith.constant dense<0.000000e+00> : vector<6x256xf32>
    %95 = tpu.matmul %94, %92, %cst_97 {dimension_numbers = #tpu.dot_dimension_numbers<[1], [0], [0], [1], [0, 0, 1, 1], [], []>} : vector<6x6xf32>, vector<6x256xf32>, vector<6x256xf32> -> vector<6x256xf32>
    %96 = arith.addf %89, %95 : vector<6x256xf32>
    %c4_98 = arith.constant 4 : index
    %c0_99 = arith.constant 0 : index
    %c0_100 = arith.constant 0 : index
    %97 = vector.load %arg5[%c4_98, %c0_99, %c0_100] : memref<9x6x6xf32, #tpu.memory_space<vmem>>, vector<1x6x6xf32>
    %98 = vector.shape_cast %97 : vector<1x6x6xf32> to vector<6x6xf32>
    %cst_101 = arith.constant dense<0.000000e+00> : vector<6x256xf32>
    %99 = tpu.matmul %98, %67, %cst_101 {dimension_numbers = #tpu.dot_dimension_numbers<[1], [0], [0], [1], [0, 0, 1, 1], [], []>} : vector<6x6xf32>, vector<6x256xf32>, vector<6x256xf32> -> vector<6x256xf32>
    %100 = arith.addf %96, %99 : vector<6x256xf32>
    %c5_102 = arith.constant 5 : index
    %c0_103 = arith.constant 0 : index
    %c0_104 = arith.constant 0 : index
    %101 = vector.load %arg2[%c5_102, %c0_103, %c0_104] : memref<9x256x256xf32, #tpu.memory_space<vmem>>, vector<1x256x256xf32>
    %102 = vector.shape_cast %101 : vector<1x256x256xf32> to vector<256x256xf32>
    %cst_105 = arith.constant dense<0.000000e+00> : vector<6x256xf32>
    %103 = tpu.matmul %67, %102, %cst_105 {dimension_numbers = #tpu.dot_dimension_numbers<[1], [0], [0], [1], [0, 0, 1, 1], [], []>} : vector<6x256xf32>, vector<256x256xf32>, vector<6x256xf32> -> vector<6x256xf32>
    %c5_106 = arith.constant 5 : index
    %c0_107 = arith.constant 0 : index
    %c0_108 = arith.constant 0 : index
    %104 = vector.load %arg5[%c5_106, %c0_107, %c0_108] : memref<9x6x6xf32, #tpu.memory_space<vmem>>, vector<1x6x6xf32>
    %105 = vector.shape_cast %104 : vector<1x6x6xf32> to vector<6x6xf32>
    %cst_109 = arith.constant dense<0.000000e+00> : vector<6x256xf32>
    %106 = tpu.matmul %105, %103, %cst_109 {dimension_numbers = #tpu.dot_dimension_numbers<[1], [0], [0], [1], [0, 0, 1, 1], [], []>} : vector<6x6xf32>, vector<6x256xf32>, vector<6x256xf32> -> vector<6x256xf32>
    %107 = arith.addf %100, %106 : vector<6x256xf32>
    %c6_110 = arith.constant 6 : index
    %c0_111 = arith.constant 0 : index
    %c0_112 = arith.constant 0 : index
    %108 = vector.load %arg2[%c6_110, %c0_111, %c0_112] : memref<9x256x256xf32, #tpu.memory_space<vmem>>, vector<1x256x256xf32>
    %109 = vector.shape_cast %108 : vector<1x256x256xf32> to vector<256x256xf32>
    %cst_113 = arith.constant dense<0.000000e+00> : vector<6x256xf32>
    %110 = tpu.matmul %67, %109, %cst_113 {dimension_numbers = #tpu.dot_dimension_numbers<[1], [0], [0], [1], [0, 0, 1, 1], [], []>} : vector<6x256xf32>, vector<256x256xf32>, vector<6x256xf32> -> vector<6x256xf32>
    %c6_114 = arith.constant 6 : index
    %c0_115 = arith.constant 0 : index
    %c0_116 = arith.constant 0 : index
    %111 = vector.load %arg5[%c6_114, %c0_115, %c0_116] : memref<9x6x6xf32, #tpu.memory_space<vmem>>, vector<1x6x6xf32>
    %112 = vector.shape_cast %111 : vector<1x6x6xf32> to vector<6x6xf32>
    %cst_117 = arith.constant dense<0.000000e+00> : vector<6x256xf32>
    %113 = tpu.matmul %112, %110, %cst_117 {dimension_numbers = #tpu.dot_dimension_numbers<[1], [0], [0], [1], [0, 0, 1, 1], [], []>} : vector<6x6xf32>, vector<6x256xf32>, vector<6x256xf32> -> vector<6x256xf32>
    %114 = arith.addf %107, %113 : vector<6x256xf32>
    %c7_118 = arith.constant 7 : index
    %c0_119 = arith.constant 0 : index
    %c0_120 = arith.constant 0 : index
    %115 = vector.load %arg2[%c7_118, %c0_119, %c0_120] : memref<9x256x256xf32, #tpu.memory_space<vmem>>, vector<1x256x256xf32>
    %116 = vector.shape_cast %115 : vector<1x256x256xf32> to vector<256x256xf32>
    %cst_121 = arith.constant dense<0.000000e+00> : vector<6x256xf32>
    %117 = tpu.matmul %67, %116, %cst_121 {dimension_numbers = #tpu.dot_dimension_numbers<[1], [0], [0], [1], [0, 0, 1, 1], [], []>} : vector<6x256xf32>, vector<256x256xf32>, vector<6x256xf32> -> vector<6x256xf32>
    %c7_122 = arith.constant 7 : index
    %c0_123 = arith.constant 0 : index
    %c0_124 = arith.constant 0 : index
    %118 = vector.load %arg5[%c7_122, %c0_123, %c0_124] : memref<9x6x6xf32, #tpu.memory_space<vmem>>, vector<1x6x6xf32>
    %119 = vector.shape_cast %118 : vector<1x6x6xf32> to vector<6x6xf32>
    %cst_125 = arith.constant dense<0.000000e+00> : vector<6x256xf32>
    %120 = tpu.matmul %119, %117, %cst_125 {dimension_numbers = #tpu.dot_dimension_numbers<[1], [0], [0], [1], [0, 0, 1, 1], [], []>} : vector<6x6xf32>, vector<6x256xf32>, vector<6x256xf32> -> vector<6x256xf32>
    %121 = arith.addf %114, %120 : vector<6x256xf32>
    %c8_126 = arith.constant 8 : index
    %c0_127 = arith.constant 0 : index
    %c0_128 = arith.constant 0 : index
    %122 = vector.load %arg2[%c8_126, %c0_127, %c0_128] : memref<9x256x256xf32, #tpu.memory_space<vmem>>, vector<1x256x256xf32>
    %123 = vector.shape_cast %122 : vector<1x256x256xf32> to vector<256x256xf32>
    %cst_129 = arith.constant dense<0.000000e+00> : vector<6x256xf32>
    %124 = tpu.matmul %67, %123, %cst_129 {dimension_numbers = #tpu.dot_dimension_numbers<[1], [0], [0], [1], [0, 0, 1, 1], [], []>} : vector<6x256xf32>, vector<256x256xf32>, vector<6x256xf32> -> vector<6x256xf32>
    %c8_130 = arith.constant 8 : index
    %c0_131 = arith.constant 0 : index
    %c0_132 = arith.constant 0 : index
    %125 = vector.load %arg5[%c8_130, %c0_131, %c0_132] : memref<9x6x6xf32, #tpu.memory_space<vmem>>, vector<1x6x6xf32>
    %126 = vector.shape_cast %125 : vector<1x6x6xf32> to vector<6x6xf32>
    %cst_133 = arith.constant dense<0.000000e+00> : vector<6x256xf32>
    %127 = tpu.matmul %126, %124, %cst_133 {dimension_numbers = #tpu.dot_dimension_numbers<[1], [0], [0], [1], [0, 0, 1, 1], [], []>} : vector<6x6xf32>, vector<6x256xf32>, vector<6x256xf32> -> vector<6x256xf32>
    %128 = arith.addf %121, %127 : vector<6x256xf32>
    %c0_134 = arith.constant 0 : index
    %c0_135 = arith.constant 0 : index
    %129 = vector.load %arg6[%c0_134, %c0_135] : memref<6x1xf32, #tpu.memory_space<vmem>>, vector<6x1xf32>
    %130 = vector.broadcast %129 : vector<6x1xf32> to vector<6x256xf32>
    %131 = arith.addf %128, %130 : vector<6x256xf32>
    %cst_136 = arith.constant 0.000000e+00 : f32
    %132 = vector.broadcast %cst_136 : f32 to vector<6x256xf32>
    %133 = arith.maximumf %131, %132 : vector<6x256xf32>
    %cst_137 = arith.constant 0.000000e+00 : f32
    %134 = vector.broadcast %cst_137 : f32 to vector<6x256xf32>
    %c0_138 = arith.constant 0 : index
    %c0_139 = arith.constant 0 : index
    %c0_140 = arith.constant 0 : index
    %135 = vector.load %arg2[%c0_138, %c0_139, %c0_140] : memref<9x256x256xf32, #tpu.memory_space<vmem>>, vector<1x256x256xf32>
    %136 = vector.shape_cast %135 : vector<1x256x256xf32> to vector<256x256xf32>
    %cst_141 = arith.constant dense<0.000000e+00> : vector<6x256xf32>
    %137 = tpu.matmul %133, %136, %cst_141 {dimension_numbers = #tpu.dot_dimension_numbers<[1], [0], [0], [1], [0, 0, 1, 1], [], []>} : vector<6x256xf32>, vector<256x256xf32>, vector<6x256xf32> -> vector<6x256xf32>
    %c0_142 = arith.constant 0 : index
    %c0_143 = arith.constant 0 : index
    %c0_144 = arith.constant 0 : index
    %138 = vector.load %arg7[%c0_142, %c0_143, %c0_144] : memref<9x6x6xf32, #tpu.memory_space<vmem>>, vector<1x6x6xf32>
    %139 = vector.shape_cast %138 : vector<1x6x6xf32> to vector<6x6xf32>
    %cst_145 = arith.constant dense<0.000000e+00> : vector<6x256xf32>
    %140 = tpu.matmul %139, %137, %cst_145 {dimension_numbers = #tpu.dot_dimension_numbers<[1], [0], [0], [1], [0, 0, 1, 1], [], []>} : vector<6x6xf32>, vector<6x256xf32>, vector<6x256xf32> -> vector<6x256xf32>
    %141 = arith.addf %134, %140 : vector<6x256xf32>
    %c1_146 = arith.constant 1 : index
    %c0_147 = arith.constant 0 : index
    %c0_148 = arith.constant 0 : index
    %142 = vector.load %arg2[%c1_146, %c0_147, %c0_148] : memref<9x256x256xf32, #tpu.memory_space<vmem>>, vector<1x256x256xf32>
    %143 = vector.shape_cast %142 : vector<1x256x256xf32> to vector<256x256xf32>
    %cst_149 = arith.constant dense<0.000000e+00> : vector<6x256xf32>
    %144 = tpu.matmul %133, %143, %cst_149 {dimension_numbers = #tpu.dot_dimension_numbers<[1], [0], [0], [1], [0, 0, 1, 1], [], []>} : vector<6x256xf32>, vector<256x256xf32>, vector<6x256xf32> -> vector<6x256xf32>
    %c1_150 = arith.constant 1 : index
    %c0_151 = arith.constant 0 : index
    %c0_152 = arith.constant 0 : index
    %145 = vector.load %arg7[%c1_150, %c0_151, %c0_152] : memref<9x6x6xf32, #tpu.memory_space<vmem>>, vector<1x6x6xf32>
    %146 = vector.shape_cast %145 : vector<1x6x6xf32> to vector<6x6xf32>
    %cst_153 = arith.constant dense<0.000000e+00> : vector<6x256xf32>
    %147 = tpu.matmul %146, %144, %cst_153 {dimension_numbers = #tpu.dot_dimension_numbers<[1], [0], [0], [1], [0, 0, 1, 1], [], []>} : vector<6x6xf32>, vector<6x256xf32>, vector<6x256xf32> -> vector<6x256xf32>
    %148 = arith.addf %141, %147 : vector<6x256xf32>
    %c2_154 = arith.constant 2 : index
    %c0_155 = arith.constant 0 : index
    %c0_156 = arith.constant 0 : index
    %149 = vector.load %arg2[%c2_154, %c0_155, %c0_156] : memref<9x256x256xf32, #tpu.memory_space<vmem>>, vector<1x256x256xf32>
    %150 = vector.shape_cast %149 : vector<1x256x256xf32> to vector<256x256xf32>
    %cst_157 = arith.constant dense<0.000000e+00> : vector<6x256xf32>
    %151 = tpu.matmul %133, %150, %cst_157 {dimension_numbers = #tpu.dot_dimension_numbers<[1], [0], [0], [1], [0, 0, 1, 1], [], []>} : vector<6x256xf32>, vector<256x256xf32>, vector<6x256xf32> -> vector<6x256xf32>
    %c2_158 = arith.constant 2 : index
    %c0_159 = arith.constant 0 : index
    %c0_160 = arith.constant 0 : index
    %152 = vector.load %arg7[%c2_158, %c0_159, %c0_160] : memref<9x6x6xf32, #tpu.memory_space<vmem>>, vector<1x6x6xf32>
    %153 = vector.shape_cast %152 : vector<1x6x6xf32> to vector<6x6xf32>
    %cst_161 = arith.constant dense<0.000000e+00> : vector<6x256xf32>
    %154 = tpu.matmul %153, %151, %cst_161 {dimension_numbers = #tpu.dot_dimension_numbers<[1], [0], [0], [1], [0, 0, 1, 1], [], []>} : vector<6x6xf32>, vector<6x256xf32>, vector<6x256xf32> -> vector<6x256xf32>
    %155 = arith.addf %148, %154 : vector<6x256xf32>
    %c3_162 = arith.constant 3 : index
    %c0_163 = arith.constant 0 : index
    %c0_164 = arith.constant 0 : index
    %156 = vector.load %arg2[%c3_162, %c0_163, %c0_164] : memref<9x256x256xf32, #tpu.memory_space<vmem>>, vector<1x256x256xf32>
    %157 = vector.shape_cast %156 : vector<1x256x256xf32> to vector<256x256xf32>
    %cst_165 = arith.constant dense<0.000000e+00> : vector<6x256xf32>
    %158 = tpu.matmul %133, %157, %cst_165 {dimension_numbers = #tpu.dot_dimension_numbers<[1], [0], [0], [1], [0, 0, 1, 1], [], []>} : vector<6x256xf32>, vector<256x256xf32>, vector<6x256xf32> -> vector<6x256xf32>
    %c3_166 = arith.constant 3 : index
    %c0_167 = arith.constant 0 : index
    %c0_168 = arith.constant 0 : index
    %159 = vector.load %arg7[%c3_166, %c0_167, %c0_168] : memref<9x6x6xf32, #tpu.memory_space<vmem>>, vector<1x6x6xf32>
    %160 = vector.shape_cast %159 : vector<1x6x6xf32> to vector<6x6xf32>
    %cst_169 = arith.constant dense<0.000000e+00> : vector<6x256xf32>
    %161 = tpu.matmul %160, %158, %cst_169 {dimension_numbers = #tpu.dot_dimension_numbers<[1], [0], [0], [1], [0, 0, 1, 1], [], []>} : vector<6x6xf32>, vector<6x256xf32>, vector<6x256xf32> -> vector<6x256xf32>
    %162 = arith.addf %155, %161 : vector<6x256xf32>
    %c4_170 = arith.constant 4 : index
    %c0_171 = arith.constant 0 : index
    %c0_172 = arith.constant 0 : index
    %163 = vector.load %arg7[%c4_170, %c0_171, %c0_172] : memref<9x6x6xf32, #tpu.memory_space<vmem>>, vector<1x6x6xf32>
    %164 = vector.shape_cast %163 : vector<1x6x6xf32> to vector<6x6xf32>
    %cst_173 = arith.constant dense<0.000000e+00> : vector<6x256xf32>
    %165 = tpu.matmul %164, %133, %cst_173 {dimension_numbers = #tpu.dot_dimension_numbers<[1], [0], [0], [1], [0, 0, 1, 1], [], []>} : vector<6x6xf32>, vector<6x256xf32>, vector<6x256xf32> -> vector<6x256xf32>
    %166 = arith.addf %162, %165 : vector<6x256xf32>
    %c5_174 = arith.constant 5 : index
    %c0_175 = arith.constant 0 : index
    %c0_176 = arith.constant 0 : index
    %167 = vector.load %arg2[%c5_174, %c0_175, %c0_176] : memref<9x256x256xf32, #tpu.memory_space<vmem>>, vector<1x256x256xf32>
    %168 = vector.shape_cast %167 : vector<1x256x256xf32> to vector<256x256xf32>
    %cst_177 = arith.constant dense<0.000000e+00> : vector<6x256xf32>
    %169 = tpu.matmul %133, %168, %cst_177 {dimension_numbers = #tpu.dot_dimension_numbers<[1], [0], [0], [1], [0, 0, 1, 1], [], []>} : vector<6x256xf32>, vector<256x256xf32>, vector<6x256xf32> -> vector<6x256xf32>
    %c5_178 = arith.constant 5 : index
    %c0_179 = arith.constant 0 : index
    %c0_180 = arith.constant 0 : index
    %170 = vector.load %arg7[%c5_178, %c0_179, %c0_180] : memref<9x6x6xf32, #tpu.memory_space<vmem>>, vector<1x6x6xf32>
    %171 = vector.shape_cast %170 : vector<1x6x6xf32> to vector<6x6xf32>
    %cst_181 = arith.constant dense<0.000000e+00> : vector<6x256xf32>
    %172 = tpu.matmul %171, %169, %cst_181 {dimension_numbers = #tpu.dot_dimension_numbers<[1], [0], [0], [1], [0, 0, 1, 1], [], []>} : vector<6x6xf32>, vector<6x256xf32>, vector<6x256xf32> -> vector<6x256xf32>
    %173 = arith.addf %166, %172 : vector<6x256xf32>
    %c6_182 = arith.constant 6 : index
    %c0_183 = arith.constant 0 : index
    %c0_184 = arith.constant 0 : index
    %174 = vector.load %arg2[%c6_182, %c0_183, %c0_184] : memref<9x256x256xf32, #tpu.memory_space<vmem>>, vector<1x256x256xf32>
    %175 = vector.shape_cast %174 : vector<1x256x256xf32> to vector<256x256xf32>
    %cst_185 = arith.constant dense<0.000000e+00> : vector<6x256xf32>
    %176 = tpu.matmul %133, %175, %cst_185 {dimension_numbers = #tpu.dot_dimension_numbers<[1], [0], [0], [1], [0, 0, 1, 1], [], []>} : vector<6x256xf32>, vector<256x256xf32>, vector<6x256xf32> -> vector<6x256xf32>
    %c6_186 = arith.constant 6 : index
    %c0_187 = arith.constant 0 : index
    %c0_188 = arith.constant 0 : index
    %177 = vector.load %arg7[%c6_186, %c0_187, %c0_188] : memref<9x6x6xf32, #tpu.memory_space<vmem>>, vector<1x6x6xf32>
    %178 = vector.shape_cast %177 : vector<1x6x6xf32> to vector<6x6xf32>
    %cst_189 = arith.constant dense<0.000000e+00> : vector<6x256xf32>
    %179 = tpu.matmul %178, %176, %cst_189 {dimension_numbers = #tpu.dot_dimension_numbers<[1], [0], [0], [1], [0, 0, 1, 1], [], []>} : vector<6x6xf32>, vector<6x256xf32>, vector<6x256xf32> -> vector<6x256xf32>
    %180 = arith.addf %173, %179 : vector<6x256xf32>
    %c7_190 = arith.constant 7 : index
    %c0_191 = arith.constant 0 : index
    %c0_192 = arith.constant 0 : index
    %181 = vector.load %arg2[%c7_190, %c0_191, %c0_192] : memref<9x256x256xf32, #tpu.memory_space<vmem>>, vector<1x256x256xf32>
    %182 = vector.shape_cast %181 : vector<1x256x256xf32> to vector<256x256xf32>
    %cst_193 = arith.constant dense<0.000000e+00> : vector<6x256xf32>
    %183 = tpu.matmul %133, %182, %cst_193 {dimension_numbers = #tpu.dot_dimension_numbers<[1], [0], [0], [1], [0, 0, 1, 1], [], []>} : vector<6x256xf32>, vector<256x256xf32>, vector<6x256xf32> -> vector<6x256xf32>
    %c7_194 = arith.constant 7 : index
    %c0_195 = arith.constant 0 : index
    %c0_196 = arith.constant 0 : index
    %184 = vector.load %arg7[%c7_194, %c0_195, %c0_196] : memref<9x6x6xf32, #tpu.memory_space<vmem>>, vector<1x6x6xf32>
    %185 = vector.shape_cast %184 : vector<1x6x6xf32> to vector<6x6xf32>
    %cst_197 = arith.constant dense<0.000000e+00> : vector<6x256xf32>
    %186 = tpu.matmul %185, %183, %cst_197 {dimension_numbers = #tpu.dot_dimension_numbers<[1], [0], [0], [1], [0, 0, 1, 1], [], []>} : vector<6x6xf32>, vector<6x256xf32>, vector<6x256xf32> -> vector<6x256xf32>
    %187 = arith.addf %180, %186 : vector<6x256xf32>
    %c8_198 = arith.constant 8 : index
    %c0_199 = arith.constant 0 : index
    %c0_200 = arith.constant 0 : index
    %188 = vector.load %arg2[%c8_198, %c0_199, %c0_200] : memref<9x256x256xf32, #tpu.memory_space<vmem>>, vector<1x256x256xf32>
    %189 = vector.shape_cast %188 : vector<1x256x256xf32> to vector<256x256xf32>
    %cst_201 = arith.constant dense<0.000000e+00> : vector<6x256xf32>
    %190 = tpu.matmul %133, %189, %cst_201 {dimension_numbers = #tpu.dot_dimension_numbers<[1], [0], [0], [1], [0, 0, 1, 1], [], []>} : vector<6x256xf32>, vector<256x256xf32>, vector<6x256xf32> -> vector<6x256xf32>
    %c8_202 = arith.constant 8 : index
    %c0_203 = arith.constant 0 : index
    %c0_204 = arith.constant 0 : index
    %191 = vector.load %arg7[%c8_202, %c0_203, %c0_204] : memref<9x6x6xf32, #tpu.memory_space<vmem>>, vector<1x6x6xf32>
    %192 = vector.shape_cast %191 : vector<1x6x6xf32> to vector<6x6xf32>
    %cst_205 = arith.constant dense<0.000000e+00> : vector<6x256xf32>
    %193 = tpu.matmul %192, %190, %cst_205 {dimension_numbers = #tpu.dot_dimension_numbers<[1], [0], [0], [1], [0, 0, 1, 1], [], []>} : vector<6x6xf32>, vector<6x256xf32>, vector<6x256xf32> -> vector<6x256xf32>
    %194 = arith.addf %187, %193 : vector<6x256xf32>
    %c0_206 = arith.constant 0 : index
    %c0_207 = arith.constant 0 : index
    %195 = vector.load %arg8[%c0_206, %c0_207] : memref<6x1xf32, #tpu.memory_space<vmem>>, vector<6x1xf32>
    %196 = vector.broadcast %195 : vector<6x1xf32> to vector<6x256xf32>
    %197 = arith.addf %194, %196 : vector<6x256xf32>
    %cst_208 = arith.constant 0.000000e+00 : f32
    %198 = vector.broadcast %cst_208 : f32 to vector<6x256xf32>
    %199 = arith.maximumf %197, %198 : vector<6x256xf32>
    %200 = vector.shape_cast %199 : vector<6x256xf32> to vector<1x6x256xf32>
    %c0_209 = arith.constant 0 : index
    %c0_210 = arith.constant 0 : index
    %c0_211 = arith.constant 0 : index
    %201 = vector.load %arg9[%c0_209, %c0_210, %c0_211] : memref<1x6x256xf32, #tpu.memory_space<vmem>>, vector<1x6x256xf32>
    tpu.vector_store %arg9[%c0_209, %c0_210, %c0_211], %200 {strides = array<i32>} : memref<1x6x256xf32, #tpu.memory_space<vmem>>, vector<1x6x256xf32>,
    return
  }
  func.func @transform_0(%arg0: i32) -> (i32, i32, i32) {
    %c0_i32 = arith.constant 0 : i32
    %c0_i32_0 = arith.constant 0 : i32
    %c0_i32_1 = arith.constant 0 : i32
    return %arg0, %c0_i32, %c0_i32_0 : i32, i32, i32
  }
  func.func @transform_1(%arg0: i32) -> (i32, i32, i32) {
    %c0_i32 = arith.constant 0 : i32
    %c0_i32_0 = arith.constant 0 : i32
    %c0_i32_1 = arith.constant 0 : i32
    %c0_i32_2 = arith.constant 0 : i32
    return %c0_i32, %c0_i32_0, %c0_i32_1 : i32, i32, i32
  }
  func.func @transform_2(%arg0: i32) -> (i32, i32, i32) {
    %c0_i32 = arith.constant 0 : i32
    %c0_i32_0 = arith.constant 0 : i32
    %c0_i32_1 = arith.constant 0 : i32
    %c0_i32_2 = arith.constant 0 : i32
    return %c0_i32, %c0_i32_0, %c0_i32_1 : i32, i32, i32
  }
  func.func @transform_3(%arg0: i32) -> (i32, i32) {
    %c0_i32 = arith.constant 0 : i32
    %c0_i32_0 = arith.constant 0 : i32
    %c0_i32_1 = arith.constant 0 : i32
    return %c0_i32, %c0_i32_0 : i32, i32
  }
  func.func @transform_4(%arg0: i32) -> (i32, i32, i32) {
    %c0_i32 = arith.constant 0 : i32
    %c0_i32_0 = arith.constant 0 : i32
    %c0_i32_1 = arith.constant 0 : i32
    %c0_i32_2 = arith.constant 0 : i32
    return %c0_i32, %c0_i32_0, %c0_i32_1 : i32, i32, i32
  }
  func.func @transform_5(%arg0: i32) -> (i32, i32) {
    %c0_i32 = arith.constant 0 : i32
    %c0_i32_0 = arith.constant 0 : i32
    %c0_i32_1 = arith.constant 0 : i32
    return %c0_i32, %c0_i32_0 : i32, i32
  }
  func.func @transform_6(%arg0: i32) -> (i32, i32, i32) {
    %c0_i32 = arith.constant 0 : i32
    %c0_i32_0 = arith.constant 0 : i32
    %c0_i32_1 = arith.constant 0 : i32
    %c0_i32_2 = arith.constant 0 : i32
    return %c0_i32, %c0_i32_0, %c0_i32_1 : i32, i32, i32
  }
  func.func @transform_7(%arg0: i32) -> (i32, i32) {
    %c0_i32 = arith.constant 0 : i32
    %c0_i32_0 = arith.constant 0 : i32
    %c0_i32_1 = arith.constant 0 : i32
    return %c0_i32, %c0_i32_0 : i32, i32
  }
  func.func @transform_8(%arg0: i32) -> (i32, i32, i32) {
    %c0_i32 = arith.constant 0 : i32
    %c0_i32_0 = arith.constant 0 : i32
    %c0_i32_1 = arith.constant 0 : i32
    return %arg0, %c0_i32, %c0_i32_0 : i32, i32, i32
  }
}

</mosaic_0001>

<bundles_post_ra>
// kernel: stacked_conv_forward.1
= control target key start
LH: loop header
LB: loop body
LE: loop exit
PB: predicated region body
PF: predicated region fallthrough
CT: control target
= control target key end

     0   :  { %13 = vsyncpa [#allocation3], 0  ;;  %s6161_s27 = smov 0   ;;  %s6562_s0 = inlined_call_operand.vmem [shape: f32[2,4,256], index: 0, kind: input, shape index: {}]   ;;  %s6563_s1 = inlined_call_operand.hbm [shape: f32[9,256,256], index: 1, kind: input, shape index: {}]   ;;  %s6564_s2 = inlined_call_operand.vmem [shape: f32[9,6,4], index: 2, kind: input, shape index: {}]   ;;  %s6565_s3 = inlined_call_operand.vmem [shape: f32[6,1], index: 3, kind: input, shape index: {}]   ;;  %s6566_s4 = inlined_call_operand.vmem [shape: f32[9,6,6], index: 4, kind: input, shape index: {}]   ;;  %s6567_s5 = inlined_call_operand.vmem [shape: f32[6,1], index: 5, kind: input, shape index: {}]   ;;  %s6568_s6 = inlined_call_operand.vmem [shape: f32[9,6,6], index: 6, kind: input, shape index: {}]   ;;  %s6569_s7 = inlined_call_operand.vmem [shape: f32[6,1], index: 7, kind: input, shape index: {}]   ;;  %s6570_s8 = inlined_call_operand.vmem [shape: f32[2,6,256], index: 8, kind: output, shape index: {}]  }
   0x1 LB: > { %s6167_s28 = sadd.s32 4294967295, %s6109_s27   ;;  %p4904_p0 = scmp.ge.s32.totalorder %s6109_s27, 1  ;;  %s6109_s27 = sphi %s6161_s27, %s19_s27  }
   0x2   : > { %p223_p1 = scmp.lt.s32.totalorder %s6109_s27, 3  ;;  %s6111_s29 = smov [#allocation2]  }
   0x3   : > { %s235_s30 = sshll.u32 %s6111_s29, 4  ;;  %p5030_p3 = scmp.eq.s32.totalorder %s6167_s28, 0  ;;  %s236_s30 = int_to_ptr.vmem [resolvable:$true] %s235_s30 }
   0x4   : > { %p6171_p2 = pnand %p4904_p0, %p223_p1  ;;  %s6084_s10 = scalar_lea.vmem %s236_s30, 73728 }
   0x5   : > { %p6085_p7 = scmp.ne.s32.totalorder %s236_s30, %s6084_s10  ;;  %p6092_p10 = scmp.lt.s32.totalorder %s236_s30, %s236_s30 }
   0x6   : > { %p5026_p4 = pneg %p6171_p2  ;;  %p6093_p11 = scmp.lt.s32.totalorder %s6084_s10, %s6084_s10 }
   0x8   : > { %p5027_p5 = pnand %p5030_p3, %p5026_p4  ;;  %p6094_p12 = por %p6093_p11, %p6092_p10 }
   0xa   : > { %p6075_p6 = pneg %p5027_p5 }
   0xc   : > { %p6087_p8 = pnand %p6085_p7, %p6075_p6 }
   0xe   : > { %p6088_p9 = pneg %p6087_p8 }
  0x10   : > { %p6095_p13 = pnand %p6094_p12, %p6088_p9 }
  0x12   : > { %6098 = shalt.err (!%p6095_p13)
}
  0x13   : > { %s6112_s11 = smov 256   ;;  %s6113_s12 = smov 16  }
  0x14   : > { %5029 = dma.hbm_to_vmem [thread:$0]  (!%p5027_p5), %s6563_s1, 73728, %s236_s30, [#allocation3], %s6112_s11, %s6112_s11, %s6113_s12  }
  0x15   : > { %277 = sbr.rel (%p6171_p2) target bundleno = 5400 (0x1518), region = 52 }
  0x1a   : > { %6104 = dma.done.wait (%p5030_p3), [#allocation3], 73728  }
  0x1b   : > { %6106 = vsyncadd (%p5030_p3), [#allocation3], 4294893568  ;;  %v353_v0 = vld [vmem:[#allocation2 + $0xf8] sm:$0xff]  ;;  %v352_v2 = vld [vmem:[#allocation2 + $0xf0] sm:$0xff]  ;;  %p311_p0 = scmp.lt.s32.totalorder %s6167_s28, 1  ;;  %vm603_vm0 = vcmask 1043456  }
  0x1c   : > { %v493_v1 = vld [vmem:[#allocation2 + $0x2f8] sm:$0xff]  ;;  %389 = vmatprep.subr.mxu0 %v353_v0  ;;  %v492_v3 = vld [vmem:[#allocation2 + $0x2f0] sm:$0xff]  ;;  %v351_v4 = vld [vmem:[#allocation2 + $0xe8] sm:$0xff]  ;;  %vm599_vm1 = vcmask 31744   ;;  %vm2322_vm2 = vcmask 1045504   ;;  %vm2318_vm3 = vcmask 48128  }
  0x1d   : > { %526 = vmatprep.subr.mxu1 %v493_v1  ;;  %v491_v5 = vld [vmem:[#allocation2 + $0x2e8] sm:$0xff]  ;;  %390 = vmatpush1.msra.mxu0 %v352_v2  ;;  %v350_v6 = vld [vmem:[#allocation2 + $0xe0] sm:$0xff]  ;;  %v349_v8 = vld [vmem:[#allocation2 + $0xd8] sm:$0xff]  ;;  %s6573_s28 = smov (!%p311_p0, %s6167_s28), 1 }
  0x1e   : > { %527 = vmatpush1.msra.mxu1 %v492_v3  ;;  %v490_v7 = vld [vmem:[#allocation2 + $0x2e0] sm:$0xff]  ;;  %391 = vmatprep.subr.mxu0 %v351_v4  ;;  %v489_v9 = vld [vmem:[#allocation2 + $0x2d8] sm:$0xff]  ;;  %v348_v10 = vld [vmem:[#allocation2 + $0xd0] sm:$0xff]  ;;  %s5020_s15 = sshll.u32 %s6573_s28, 3  ;;  %s5021_s19 = sshll.u32 %s6573_s28, 4 }
  0x1f   : > { %528 = vmatprep.subr.mxu1 %v491_v5  ;;  %v488_v11 = vld [vmem:[#allocation2 + $0x2d0] sm:$0xff]  ;;  %392 = vmatpush1.msra.mxu0 %v350_v6  ;;  %v347_v12 = vld [vmem:[#allocation2 + $0xc8] sm:$0xff]  ;;  %v346_v14 = vld [vmem:[#allocation2 + $0xc0] sm:$0xff]  ;;  %s6199_s18 = scalar_lea.vmem %s6562_s0, %s5020_s15  ;;  %s320_s22 = scalar_lea.vmem %s6570_s8, %s5021_s19 }
  0x20   : > { %529 = vmatpush1.msra.mxu1 %v490_v7  ;;  %v487_v13 = vld [vmem:[#allocation2 + $0x2c8] sm:$0xff]  ;;  %393 = vmatprep.subr.mxu0 %v349_v8  ;;  %v486_v15 = vld [vmem:[#allocation2 + $0x2c0] sm:$0xff]  ;;  %v345_v16 = vld [vmem:[#allocation2 + $0xb8] sm:$0xff] }
  0x21   : > { %530 = vmatprep.subr.mxu1 %v489_v9  ;;  %394 = vmatpush1.msra.mxu0 %v348_v10  ;;  %v485_v17 = vld [vmem:[#allocation2 + $0x2b8] sm:$0xff]  ;;  %v344_v18 = vld [vmem:[#allocation2 + $0xb0] sm:$0xff]  ;;  %v343_v20 = vld [vmem:[#allocation2 + $0xa8] sm:$0xff] }
  0x22   : > { %531 = vmatpush1.msra.mxu1 %v488_v11  ;;  %395 = vmatprep.subr.mxu0 %v347_v12  ;;  %v484_v19 = vld [vmem:[#allocation2 + $0x2b0] sm:$0xff]  ;;  %v483_v21 = vld [vmem:[#allocation2 + $0x2a8] sm:$0xff]  ;;  %v342_v22 = vld [vmem:[#allocation2 + $0xa0] sm:$0xff] }
  0x23   : > { %532 = vmatprep.subr.mxu1 %v487_v13  ;;  %396 = vmatpush1.msra.mxu0 %v346_v14  ;;  %v482_v23 = vld [vmem:[#allocation2 + $0x2a0] sm:$0xff]  ;;  %v341_v24 = vld [vmem:[#allocation2 + $0x98] sm:$0xff]  ;;  %v340_v26 = vld [vmem:[#allocation2 + $0x90] sm:$0xff] }
  0x24   : > { %533 = vmatpush1.msra.mxu1 %v486_v15  ;;  %397 = vmatprep.subr.mxu0 %v345_v16  ;;  %v481_v25 = vld [vmem:[#allocation2 + $0x298] sm:$0xff]  ;;  %v480_v27 = vld [vmem:[#allocation2 + $0x290] sm:$0xff]  ;;  %v339_v28 = vld [vmem:[#allocation2 + $0x88] sm:$0xff] }
  0x25   : > { %534 = vmatprep.subr.mxu1 %v485_v17  ;;  %398 = vmatpush1.msra.mxu0 %v344_v18  ;;  %v479_v29 = vld [vmem:[#allocation2 + $0x288] sm:$0xff]  ;;  %v338_v30 = vld [vmem:[#allocation2 + $0x80] sm:$0xff]  ;;  %v337_v32 = vld [vmem:[#allocation2 + $0x78] sm:$0xff] }
  0x26   : > { %535 = vmatpush1.msra.mxu1 %v484_v19  ;;  %399 = vmatprep.subr.mxu0 %v343_v20  ;;  %v478_v31 = vld [vmem:[#allocation2 + $0x280] sm:$0xff]  ;;  %v477_v33 = vld [vmem:[#allocation2 + $0x278] sm:$0xff]  ;;  %v336_v34 = vld [vmem:[#allocation2 + $0x70] sm:$0xff] }
  0x27   : > { %536 = vmatprep.subr.mxu1 %v483_v21  ;;  %400 = vmatpush1.msra.mxu0 %v342_v22  ;;  %v476_v35 = vld [vmem:[#allocation2 + $0x270] sm:$0xff]  ;;  %v335_v36 = vld [vmem:[#allocation2 + $0x68] sm:$0xff]  ;;  %v334_v38 = vld [vmem:[#allocation2 + $0x60] sm:$0xff] }
  0x28   : > { %537 = vmatpush1.msra.mxu1 %v482_v23  ;;  %401 = vmatprep.subr.mxu0 %v341_v24  ;;  %v475_v37 = vld [vmem:[#allocation2 + $0x268] sm:$0xff]  ;;  %v474_v39 = vld [vmem:[#allocation2 + $0x260] sm:$0xff]  ;;  %v333_v40 = vld [vmem:[#allocation2 + $0x58] sm:$0xff] }
  0x29   : > { %538 = vmatprep.subr.mxu1 %v481_v25  ;;  %402 = vmatpush1.msra.mxu0 %v340_v26  ;;  %v473_v41 = vld [vmem:[#allocation2 + $0x258] sm:$0xff]  ;;  %v332_v42 = vld [vmem:[#allocation2 + $0x50] sm:$0xff]  ;;  %v331_v44 = vld [vmem:[#allocation2 + $0x48] sm:$0xff] }
  0x2a   : > { %539 = vmatpush1.msra.mxu1 %v480_v27  ;;  %403 = vmatprep.subr.mxu0 %v339_v28  ;;  %v472_v43 = vld [vmem:[#allocation2 + $0x250] sm:$0xff]  ;;  %v471_v45 = vld [vmem:[#allocation2 + $0x248] sm:$0xff]  ;;  %v330_v46 = vld [vmem:[#allocation2 + $0x40] sm:$0xff] }
  0x2b   : > { %540 = vmatprep.subr.mxu1 %v479_v29  ;;  %404 = vmatpush1.msra.mxu0 %v338_v30  ;;  %v470_v47 = vld [vmem:[#allocation2 + $0x240] sm:$0xff]  ;;  %v329_v48 = vld [vmem:[#allocation2 + $0x38] sm:$0xff]  ;;  %v328_v50 = vld [vmem:[#allocation2 + $0x30] sm:$0xff] }
  0x2c   : > { %541 = vmatpush1.msra.mxu1 %v478_v31  ;;  %405 = vmatprep.subr.mxu0 %v337_v32  ;;  %v469_v49 = vld [vmem:[#allocation2 + $0x238] sm:$0xff]  ;;  %v468_v51 = vld [vmem:[#allocation2 + $0x230] sm:$0xff]  ;;  %v327_v52 = vld [vmem:[#allocation2 + $0x28] sm:$0xff] }
  0x2d   : > { %542 = vmatprep.subr.mxu1 %v477_v33  ;;  %406 = vmatpush1.msra.mxu0 %v336_v34  ;;  %v467_v53 = vld [vmem:[#allocation2 + $0x228] sm:$0xff]  ;;  %v326_v54 = vld [vmem:[#allocation2 + $0x20] sm:$0xff]  ;;  %v325_v56 = vld [vmem:[#allocation2 + $0x18] sm:$0xff] }
  0x2e   : > { %543 = vmatpush1.msra.mxu1 %v476_v35  ;;  %407 = vmatprep.subr.mxu0 %v335_v36  ;;  %v466_v55 = vld [vmem:[#allocation2 + $0x220] sm:$0xff]  ;;  %v465_v57 = vld [vmem:[#allocation2 + $0x218] sm:$0xff]  ;;  %v324_v58 = vld [vmem:[#allocation2 + $0x10] sm:$0xff] }
  0x2f   : > { %544 = vmatprep.subr.mxu1 %v475_v37  ;;  %408 = vmatpush1.msra.mxu0 %v334_v38  ;;  %v464_v59 = vld [vmem:[#allocation2 + $0x210] sm:$0xff]  ;;  %v323_v60 = vld [vmem:[#allocation2 + $0x8] sm:$0xff]  ;;  %v322_v62 = vld [vmem:[#allocation2] sm:$0xff] }
  0x30   : > { %545 = vmatpush1.msra.mxu1 %v474_v39  ;;  %409 = vmatprep.subr.mxu0 %v333_v40  ;;  %v463_v61 = vld [vmem:[#allocation2 + $0x208] sm:$0xff]  ;;  %v462_v63 = vld [vmem:[#allocation2 + $0x200] sm:$0xff]  ;;  %v385_v0 = vld [vmem:[#allocation2 + $0x1f8] sm:$0xff] }
  0x31   : > { %546 = vmatprep.subr.mxu1 %v473_v41  ;;  %410 = vmatpush1.msra.mxu0 %v332_v42  ;;  %v525_v1 = vld [vmem:[#allocation2 + $0x3f8] sm:$0xff]  ;;  %v384_v2 = vld [vmem:[#allocation2 + $0x1f0] sm:$0xff]  ;;  %v383_v4 = vld [vmem:[#allocation2 + $0x1e8] sm:$0xff] }
  0x32   : > { %547 = vmatpush1.msra.mxu1 %v472_v43  ;;  %411 = vmatprep.subr.mxu0 %v331_v44  ;;  %v524_v3 = vld [vmem:[#allocation2 + $0x3f0] sm:$0xff]  ;;  %v523_v5 = vld [vmem:[#allocation2 + $0x3e8] sm:$0xff]  ;;  %v382_v6 = vld [vmem:[#allocation2 + $0x1e0] sm:$0xff] }
  0x33   : > { %548 = vmatprep.subr.mxu1 %v471_v45  ;;  %412 = vmatpush1.msra.mxu0 %v330_v46  ;;  %v522_v7 = vld [vmem:[#allocation2 + $0x3e0] sm:$0xff]  ;;  %v381_v8 = vld [vmem:[#allocation2 + $0x1d8] sm:$0xff]  ;;  %v380_v10 = vld [vmem:[#allocation2 + $0x1d0] sm:$0xff] }
  0x34   : > { %549 = vmatpush1.msra.mxu1 %v470_v47  ;;  %413 = vmatprep.subr.mxu0 %v329_v48  ;;  %v521_v9 = vld [vmem:[#allocation2 + $0x3d8] sm:$0xff]  ;;  %v520_v11 = vld [vmem:[#allocation2 + $0x3d0] sm:$0xff]  ;;  %v379_v12 = vld [vmem:[#allocation2 + $0x1c8] sm:$0xff] }
  0x35   : > { %550 = vmatprep.subr.mxu1 %v469_v49  ;;  %414 = vmatpush1.msra.mxu0 %v328_v50  ;;  %v519_v13 = vld [vmem:[#allocation2 + $0x3c8] sm:$0xff]  ;;  %v378_v14 = vld [vmem:[#allocation2 + $0x1c0] sm:$0xff]  ;;  %v377_v16 = vld [vmem:[#allocation2 + $0x1b8] sm:$0xff] }
  0x36   : > { %551 = vmatpush1.msra.mxu1 %v468_v51  ;;  %415 = vmatprep.subr.mxu0 %v327_v52  ;;  %v518_v15 = vld [vmem:[#allocation2 + $0x3c0] sm:$0xff]  ;;  %v517_v17 = vld [vmem:[#allocation2 + $0x3b8] sm:$0xff]  ;;  %v376_v18 = vld [vmem:[#allocation2 + $0x1b0] sm:$0xff] }
  0x37   : > { %552 = vmatprep.subr.mxu1 %v467_v53  ;;  %416 = vmatpush1.msra.mxu0 %v326_v54  ;;  %v516_v19 = vld [vmem:[#allocation2 + $0x3b0] sm:$0xff]  ;;  %v375_v20 = vld [vmem:[#allocation2 + $0x1a8] sm:$0xff]  ;;  %v374_v22 = vld [vmem:[#allocation2 + $0x1a0] sm:$0xff] }
  0x38   : > { %553 = vmatpush1.msra.mxu1 %v466_v55  ;;  %417 = vmatprep.subr.mxu0 %v325_v56  ;;  %v515_v21 = vld [vmem:[#allocation2 + $0x3a8] sm:$0xff]  ;;  %v514_v23 = vld [vmem:[#allocation2 + $0x3a0] sm:$0xff]  ;;  %v373_v24 = vld [vmem:[#allocation2 + $0x198] sm:$0xff] }
  0x39   : > { %554 = vmatprep.subr.mxu1 %v465_v57  ;;  %418 = vmatpush1.msra.mxu0 %v324_v58  ;;  %v513_v25 = vld [vmem:[#allocation2 + $0x398] sm:$0xff]  ;;  %v372_v26 = vld [vmem:[#allocation2 + $0x190] sm:$0xff]  ;;  %v371_v28 = vld [vmem:[#allocation2 + $0x188] sm:$0xff] }
  0x3a   : > { %555 = vmatpush1.msra.mxu1 %v464_v59  ;;  %419 = vmatprep.subr.mxu0 %v323_v60  ;;  %v512_v27 = vld [vmem:[#allocation2 + $0x390] sm:$0xff]  ;;  %v511_v29 = vld [vmem:[#allocation2 + $0x388] sm:$0xff]  ;;  %v370_v30 = vld [vmem:[#allocation2 + $0x180] sm:$0xff] }
  0x3b   : > { %556 = vmatprep.subr.mxu1 %v463_v61  ;;  %420 = vmatpush1.msra.mxu0 %v322_v62  ;;  %v510_v31 = vld [vmem:[#allocation2 + $0x380] sm:$0xff]  ;;  %v369_v32 = vld [vmem:[#allocation2 + $0x178] sm:$0xff]  ;;  %v368_v34 = vld [vmem:[#allocation2 + $0x170] sm:$0xff] }
  0x3c   : > { %557 = vmatpush1.msra.mxu1 %v462_v63  ;;  %421 = vmatprep.subr.mxu0 %v385_v0  ;;  %v509_v33 = vld [vmem:[#allocation2 + $0x378] sm:$0xff]  ;;  %v508_v35 = vld [vmem:[#allocation2 + $0x370] sm:$0xff]  ;;  %v367_v36 = vld [vmem:[#allocation2 + $0x168] sm:$0xff] }
  0x3d   : > { %558 = vmatprep.subr.mxu1 %v525_v1  ;;  %422 = vmatpush2.msra.mxu0 %v384_v2  ;;  %v507_v37 = vld [vmem:[#allocation2 + $0x368] sm:$0xff]  ;;  %v366_v38 = vld [vmem:[#allocation2 + $0x160] sm:$0xff]  ;;  %v365_v40 = vld [vmem:[#allocation2 + $0x158] sm:$0xff]  ;;  %v6114_v2 = vmov 0.0  }
  0x3e   : > { %559 = vmatpush2.msra.mxu1 %v524_v3  ;;  %423 = vmatprep.subr.mxu0 %v383_v4  ;;  %v506_v39 = vld [vmem:[#allocation2 + $0x360] sm:$0xff]  ;;  %v505_v41 = vld [vmem:[#allocation2 + $0x358] sm:$0xff]  ;;  %v364_v42 = vld [vmem:[#allocation2 + $0x150] sm:$0xff] }
  0x3f   : > { %560 = vmatprep.subr.mxu1 %v523_v5  ;;  %424 = vmatpush2.msra.mxu0 %v382_v6  ;;  %v504_v43 = vld [vmem:[#allocation2 + $0x350] sm:$0xff]  ;;  %v363_v44 = vld [vmem:[#allocation2 + $0x148] sm:$0xff]  ;;  %v362_v46 = vld [vmem:[#allocation2 + $0x140] sm:$0xff] }
  0x40   : > { %561 = vmatpush2.msra.mxu1 %v522_v7  ;;  %425 = vmatprep.subr.mxu0 %v381_v8  ;;  %v503_v45 = vld [vmem:[#allocation2 + $0x348] sm:$0xff]  ;;  %v502_v47 = vld [vmem:[#allocation2 + $0x340] sm:$0xff]  ;;  %v361_v48 = vld [vmem:[#allocation2 + $0x138] sm:$0xff] }
  0x41   : > { %562 = vmatprep.subr.mxu1 %v521_v9  ;;  %426 = vmatpush2.msra.mxu0 %v380_v10  ;;  %v501_v49 = vld [vmem:[#allocation2 + $0x338] sm:$0xff]  ;;  %v360_v50 = vld [vmem:[#allocation2 + $0x130] sm:$0xff]  ;;  %v359_v52 = vld [vmem:[#allocation2 + $0x128] sm:$0xff] }
  0x42   : > { %563 = vmatpush2.msra.mxu1 %v520_v11  ;;  %427 = vmatprep.subr.mxu0 %v379_v12  ;;  %v500_v51 = vld [vmem:[#allocation2 + $0x330] sm:$0xff]  ;;  %v499_v53 = vld [vmem:[#allocation2 + $0x328] sm:$0xff]  ;;  %v358_v54 = vld [vmem:[#allocation2 + $0x120] sm:$0xff] }
  0x43   : > { %564 = vmatprep.subr.mxu1 %v519_v13  ;;  %428 = vmatpush2.msra.mxu0 %v378_v14  ;;  %v498_v55 = vld [vmem:[#allocation2 + $0x320] sm:$0xff]  ;;  %v357_v57 = vld [vmem:[#allocation2 + $0x118] sm:$0xff]  ;;  %v356_v59 = vld [vmem:[#allocation2 + $0x110] sm:$0xff] }
  0x44   : > { %565 = vmatpush2.msra.mxu1 %v518_v15  ;;  %429 = vmatprep.subr.mxu0 %v377_v16  ;;  %v6202_v56 = vld [vmem:[%s6199_s18] sm:$0xff]  ;;  %v497_v58 = vld [vmem:[#allocation2 + $0x318] sm:$0xff]  ;;  %v496_v60 = vld [vmem:[#allocation2 + $0x310] sm:$0xff] }
  0x45   : > { %566 = vmatprep.subr.mxu1 %v517_v17  ;;  %430 = vmatpush2.msra.mxu0 %v376_v18  ;;  %v355_v61 = vld [vmem:[#allocation2 + $0x108] sm:$0xff]  ;;  %v6206_v63 = vcombine.high %v6202_v56, %v6202_v56  ;;  %v354_v0 = vld [vmem:[#allocation2 + $0x100] sm:$0xff]  ;;  %v793_v9 = vld [vmem:[#allocation2 + $0x4f8] sm:$0xff] }
  0x46   : > { %567 = vmatpush2.msra.mxu1 %v516_v19  ;;  %431 = vmatprep.subr.mxu0 %v375_v20  ;;  %v495_v62 = vld [vmem:[#allocation2 + $0x308] sm:$0xff]  ;;  %v494_v1 = vld [vmem:[#allocation2 + $0x300] sm:$0xff]  ;;  %v792_v10 = vld [vmem:[#allocation2 + $0x4f0] sm:$0xff] }
  0x47   : > { %568 = vmatprep.subr.mxu1 %v515_v21  ;;  %432 = vmatpush2.msra.mxu0 %v374_v22  ;;  %v4913_v7 = vld [vmem:[%s6564_s2 + $0x8] sm:$0x3f]  ;;  %v460_v8 = vld [vmem:[%s6564_s2] sm:$0x3f]  ;;  %v789_v13 = vld [vmem:[#allocation2 + $0x4d8] sm:$0xff] }
  0x48   : > { %569 = vmatpush2.msra.mxu1 %v514_v23  ;;  %433 = vmatprep.subr.mxu0 %v373_v24  ;;  %v791_v11 = vld [vmem:[#allocation2 + $0x4e8] sm:$0xff]  ;;  %v790_v12 = vld [vmem:[#allocation2 + $0x4e0] sm:$0xff]  ;;  %v788_v14 = vld [vmem:[#allocation2 + $0x4d0] sm:$0xff] }
  0x49   : > { %570 = vmatprep.subr.mxu1 %v513_v25  ;;  %434 = vmatpush2.msra.mxu0 %v372_v26  ;;  %v787_v15 = vld [vmem:[#allocation2 + $0x4c8] sm:$0xff]  ;;  %v786_v16 = vld [vmem:[#allocation2 + $0x4c0] sm:$0xff]  ;;  %v785_v17 = vld [vmem:[#allocation2 + $0x4b8] sm:$0xff] }
  0x4a   : > { %571 = vmatpush2.msra.mxu1 %v512_v27  ;;  %435 = vmatprep.subr.mxu0 %v371_v28  ;;  %v784_v18 = vld [vmem:[#allocation2 + $0x4b0] sm:$0xff]  ;;  %v783_v19 = vld [vmem:[#allocation2 + $0x4a8] sm:$0xff]  ;;  %v782_v20 = vld [vmem:[#allocation2 + $0x4a0] sm:$0xff] }
  0x4b   : > { %572 = vmatprep.subr.mxu1 %v511_v29  ;;  %436 = vmatpush2.msra.mxu0 %v370_v30  ;;  %v781_v21 = vld [vmem:[#allocation2 + $0x498] sm:$0xff]  ;;  %v780_v22 = vld [vmem:[#allocation2 + $0x490] sm:$0xff]  ;;  %v779_v23 = vld [vmem:[#allocation2 + $0x488] sm:$0xff] }
  0x4c   : > { %573 = vmatpush2.msra.mxu1 %v510_v31  ;;  %437 = vmatprep.subr.mxu0 %v369_v32  ;;  %v778_v24 = vld [vmem:[#allocation2 + $0x480] sm:$0xff]  ;;  %v777_v25 = vld [vmem:[#allocation2 + $0x478] sm:$0xff]  ;;  %v776_v26 = vld [vmem:[#allocation2 + $0x470] sm:$0xff] }
  0x4d   : > { %574 = vmatprep.subr.mxu1 %v509_v33  ;;  %438 = vmatpush2.msra.mxu0 %v368_v34  ;;  %v775_v27 = vld [vmem:[#allocation2 + $0x468] sm:$0xff]  ;;  %v774_v28 = vld [vmem:[#allocation2 + $0x460] sm:$0xff]  ;;  %v773_v29 = vld [vmem:[#allocation2 + $0x458] sm:$0xff] }
  0x4e   : > { %575 = vmatpush2.msra.mxu1 %v508_v35  ;;  %439 = vmatprep.subr.mxu0 %v367_v36  ;;  %v772_v30 = vld [vmem:[#allocation2 + $0x450] sm:$0xff]  ;;  %v771_v31 = vld [vmem:[#allocation2 + $0x448] sm:$0xff]  ;;  %v770_v32 = vld [vmem:[#allocation2 + $0x440] sm:$0xff] }
  0x4f   : > { %576 = vmatprep.subr.mxu1 %v507_v37  ;;  %440 = vmatpush2.msra.mxu0 %v366_v38  ;;  %v769_v33 = vld [vmem:[#allocation2 + $0x438] sm:$0xff]  ;;  %v768_v34 = vld [vmem:[#allocation2 + $0x430] sm:$0xff]  ;;  %v767_v35 = vld [vmem:[#allocation2 + $0x428] sm:$0xff] }
  0x50   : > { %577 = vmatpush2.msra.mxu1 %v506_v39  ;;  %441 = vmatprep.subr.mxu0 %v365_v40  ;;  %v766_v36 = vld [vmem:[#allocation2 + $0x420] sm:$0xff]  ;;  %v765_v37 = vld [vmem:[#allocation2 + $0x418] sm:$0xff]  ;;  %v764_v38 = vld [vmem:[#allocation2 + $0x410] sm:$0xff] }
  0x51   : > { %578 = vmatprep.subr.mxu1 %v505_v41  ;;  %442 = vmatpush2.msra.mxu0 %v364_v42  ;;  %v763_v39 = vld [vmem:[#allocation2 + $0x408] sm:$0xff]  ;;  %v762_v40 = vld [vmem:[#allocation2 + $0x400] sm:$0xff]  ;;  %v825_v41 = vld [vmem:[#allocation2 + $0x5f8] sm:$0xff] }
  0x52   : > { %579 = vmatpush2.msra.mxu1 %v504_v43  ;;  %443 = vmatprep.subr.mxu0 %v363_v44  ;;  %v824_v42 = vld [vmem:[#allocation2 + $0x5f0] sm:$0xff]  ;;  %v823_v43 = vld [vmem:[#allocation2 + $0x5e8] sm:$0xff]  ;;  %v822_v44 = vld [vmem:[#allocation2 + $0x5e0] sm:$0xff] }
  0x53   : > { %580 = vmatprep.subr.mxu1 %v503_v45  ;;  %444 = vmatpush2.msra.mxu0 %v362_v46  ;;  %v821_v45 = vld [vmem:[#allocation2 + $0x5d8] sm:$0xff]  ;;  %v820_v46 = vld [vmem:[#allocation2 + $0x5d0] sm:$0xff] }
  0x54   : > { %581 = vmatpush2.msra.mxu1 %v502_v47  ;;  %445 = vmatprep.subr.mxu0 %v361_v48  ;;  %v819_v47 = vld [vmem:[#allocation2 + $0x5c8] sm:$0xff]  ;;  %v818_v48 = vld [vmem:[#allocation2 + $0x5c0] sm:$0xff] }
  0x55   : > { %582 = vmatprep.subr.mxu1 %v501_v49  ;;  %446 = vmatpush2.msra.mxu0 %v360_v50  ;;  %v817_v49 = vld [vmem:[#allocation2 + $0x5b8] sm:$0xff]  ;;  %v816_v50 = vld [vmem:[#allocation2 + $0x5b0] sm:$0xff] }
  0x56   : > { %583 = vmatpush2.msra.mxu1 %v500_v51  ;;  %447 = vmatprep.subr.mxu0 %v359_v52  ;;  %v815_v51 = vld [vmem:[#allocation2 + $0x5a8] sm:$0xff]  ;;  %v814_v52 = vld [vmem:[#allocation2 + $0x5a0] sm:$0xff] }
  0x57   : > { %584 = vmatprep.subr.mxu1 %v499_v53  ;;  %448 = vmatpush2.msra.mxu0 %v358_v54  ;;  %v813_v53 = vld [vmem:[#allocation2 + $0x598] sm:$0xff]  ;;  %v812_v54 = vld [vmem:[#allocation2 + $0x590] sm:$0xff] }
  0x58   : > { %585 = vmatpush2.msra.mxu1 %v498_v55  ;;  %449 = vmatprep.subr.mxu0 %v357_v57  ;;  %v811_v55 = vld [vmem:[#allocation2 + $0x588] sm:$0xff]  ;;  %v810_v57 = vld [vmem:[#allocation2 + $0x580] sm:$0xff] }
  0x59   : > { %586 = vmatprep.subr.mxu1 %v497_v58  ;;  %450 = vmatpush2.msra.mxu0 %v356_v59  ;;  %v809_v58 = vld [vmem:[#allocation2 + $0x578] sm:$0xff]  ;;  %v808_v59 = vld [vmem:[#allocation2 + $0x570] sm:$0xff] }
  0x5a   : > { %587 = vmatpush2.msra.mxu1 %v496_v60  ;;  %451 = vmatprep.subr.mxu0 %v355_v61  ;;  %v807_v60 = vld [vmem:[#allocation2 + $0x568] sm:$0xff]  ;;  %v806_v61 = vld [vmem:[#allocation2 + $0x560] sm:$0xff] }
  0x5b   : > { %588 = vmatprep.subr.mxu1 %v495_v62  ;;  %452 = vmatpush2.msra.mxu0 %v354_v0  ;;  %v805_v62 = vld [vmem:[#allocation2 + $0x558] sm:$0xff]  ;;  %v804_v0 = vld [vmem:[#allocation2 + $0x550] sm:$0xff] }
  0x5c   : > { %453 = vmatprep.mubr.f32.mxu0 %v6206_v63  ;;  %589 = vmatpush2.msra.mxu1 %v494_v1  ;;  %v803_v1 = vld [vmem:[#allocation2 + $0x548] sm:$0xff] }
  0x5d   : > { %590 = vmatprep.mubr.f32.mxu1 %v6206_v63  ;;  %454 = vmatmul.mubr.f32.vlgmr.msra.gmra.mxu0 %v6202_v56 }
  0x5e   : > { %591 = vmatmul.mubr.f32.vlgmr.msra.gmra.mxu1 %v6202_v56  ;;  %674 = vmatprep.mubr.f32.mxu0 %v6114_v2 }
  0x5f   : > { %754 = vmatprep.mubr.f32.mxu1 %v6114_v2 }
 0x11d   : > { %v455_v3 = vpop.f32.mrf.mxu0 }
 0x11e   : > { %v592_v4 = vpop.f32.mrf.mxu1 }
 0x11f   : > { %v457_v5 = vpop.f32.mrf.mxu0 }
 0x120   : > { %v594_v6 = vpop.f32.mrf.mxu1  ;;  %4917 = vmatprep.subr.msk.mxu1 %vm603_vm0, %v457_v5  ;;  %v800_v5 = vld [vmem:[#allocation2 + $0x530] sm:$0xff] }
 0x121   : > { %4914 = vmatprep.subr.msk.mxu0 %vm603_vm0, %v594_v6  ;;  %4918 = vmatpush1.msk.msra.mxu1 %vm603_vm0, %v455_v3  ;;  %v802_v3 = vld [vmem:[#allocation2 + $0x540] sm:$0xff]  ;;  %v799_v6 = vld [vmem:[#allocation2 + $0x528] sm:$0xff] }
 0x122   : > { %4915 = vmatpush1.msk.msra.mxu0 %vm603_vm0, %v592_v4  ;;  %4919 = vmatmul.mubr.msk.f32.vlgmr.msra.gmra.mxu1 %vm599_vm1, %v460_v8  ;;  %v801_v4 = vld [vmem:[#allocation2 + $0x538] sm:$0xff] }
 0x123   : > { %4916 = vmatmul.mubr.msk.f32.vlgmr.msra.gmra.mxu0 %vm599_vm1, %v4913_v7  ;;  %826 = vmatprep.subr.mxu0 %v793_v9  ;;  %v798_v7 = vld [vmem:[#allocation2 + $0x520] sm:$0xff]  ;;  %v797_v8 = vld [vmem:[#allocation2 + $0x518] sm:$0xff]  ;;  %v796_v9 = vld [vmem:[#allocation2 + $0x510] sm:$0xff] }
 0x124   : > { %890 = vmatprep.mubr.f32.mxu0 %v6206_v63  ;;  %827 = vmatpush1.msra.mxu0 %v792_v10  ;;  %v795_v10 = vld [vmem:[#allocation2 + $0x508] sm:$0xff] }
 0x125   : > { %972 = vmatprep.mubr.f32.mxu1 %v6114_v2  ;;  %828 = vmatprep.subr.mxu0 %v791_v11  ;;  %v794_v11 = vld [vmem:[#allocation2 + $0x500] sm:$0xff] }
 0x126   : > { %829 = vmatpush1.msra.mxu0 %v790_v12 }
 0x127   : > { %830 = vmatprep.subr.mxu0 %v789_v13 }
 0x128   : > { %831 = vmatpush1.msra.mxu0 %v788_v14 }
 0x129   : > { %832 = vmatprep.subr.mxu0 %v787_v15 }
 0x12a   : > { %833 = vmatpush1.msra.mxu0 %v786_v16 }
 0x12b   : > { %834 = vmatprep.subr.mxu0 %v785_v17 }
 0x12c   : > { %835 = vmatpush1.msra.mxu0 %v784_v18  ;;  %v4920_v18 = vld [vmem:[%s6564_s2 + $0x10] sm:$0x3f] }
 0x12d   : > { %836 = vmatprep.subr.mxu0 %v783_v19  ;;  %v1013_v19 = vld [vmem:[#allocation2 + $0x6f8] sm:$0xff] }
 0x12e   : > { %837 = vmatpush1.msra.mxu0 %v782_v20  ;;  %v1012_v20 = vld [vmem:[#allocation2 + $0x6f0] sm:$0xff] }
 0x12f   : > { %838 = vmatprep.subr.mxu0 %v781_v21  ;;  %v1011_v21 = vld [vmem:[#allocation2 + $0x6e8] sm:$0xff] }
 0x130   : > { %839 = vmatpush1.msra.mxu0 %v780_v22  ;;  %v1010_v22 = vld [vmem:[#allocation2 + $0x6e0] sm:$0xff] }
 0x131   : > { %840 = vmatprep.subr.mxu0 %v779_v23  ;;  %v1009_v23 = vld [vmem:[#allocation2 + $0x6d8] sm:$0xff] }
 0x132   : > { %841 = vmatpush1.msra.mxu0 %v778_v24  ;;  %v1008_v24 = vld [vmem:[#allocation2 + $0x6d0] sm:$0xff] }
 0x133   : > { %842 = vmatprep.subr.mxu0 %v777_v25  ;;  %v1007_v25 = vld [vmem:[#allocation2 + $0x6c8] sm:$0xff] }
 0x134   : > { %843 = vmatpush1.msra.mxu0 %v776_v26  ;;  %v1006_v26 = vld [vmem:[#allocation2 + $0x6c0] sm:$0xff] }
 0x135   : > { %844 = vmatprep.subr.mxu0 %v775_v27  ;;  %v1005_v27 = vld [vmem:[#allocation2 + $0x6b8] sm:$0xff] }
 0x136   : > { %845 = vmatpush1.msra.mxu0 %v774_v28  ;;  %v1004_v28 = vld [vmem:[#allocation2 + $0x6b0] sm:$0xff] }
 0x137   : > { %846 = vmatprep.subr.mxu0 %v773_v29  ;;  %v1003_v29 = vld [vmem:[#allocation2 + $0x6a8] sm:$0xff] }
 0x138   : > { %847 = vmatpush1.msra.mxu0 %v772_v30  ;;  %v1002_v30 = vld [vmem:[#allocation2 + $0x6a0] sm:$0xff] }
 0x139   : > { %848 = vmatprep.subr.mxu0 %v771_v31  ;;  %v1001_v31 = vld [vmem:[#allocation2 + $0x698] sm:$0xff] }
 0x13a   : > { %849 = vmatpush1.msra.mxu0 %v770_v32  ;;  %v1000_v32 = vld [vmem:[#allocation2 + $0x690] sm:$0xff] }
 0x13b   : > { %850 = vmatprep.subr.mxu0 %v769_v33  ;;  %v999_v33 = vld [vmem:[#allocation2 + $0x688] sm:$0xff] }
 0x13c   : > { %851 = vmatpush1.msra.mxu0 %v768_v34  ;;  %v998_v34 = vld [vmem:[#allocation2 + $0x680] sm:$0xff] }
 0x13d   : > { %852 = vmatprep.subr.mxu0 %v767_v35  ;;  %v997_v35 = vld [vmem:[#allocation2 + $0x678] sm:$0xff] }
 0x13e   : > { %853 = vmatpush1.msra.mxu0 %v766_v36  ;;  %v996_v36 = vld [vmem:[#allocation2 + $0x670] sm:$0xff] }
 0x13f   : > { %854 = vmatprep.subr.mxu0 %v765_v37  ;;  %v995_v37 = vld [vmem:[#allocation2 + $0x668] sm:$0xff] }
 0x140   : > { %855 = vmatpush1.msra.mxu0 %v764_v38  ;;  %v994_v38 = vld [vmem:[#allocation2 + $0x660] sm:$0xff] }
 0x141   : > { %856 = vmatprep.subr.mxu0 %v763_v39  ;;  %v993_v39 = vld [vmem:[#allocation2 + $0x658] sm:$0xff] }
 0x142   : > { %857 = vmatpush1.msra.mxu0 %v762_v40  ;;  %v992_v40 = vld [vmem:[#allocation2 + $0x650] sm:$0xff] }
 0x143   : > { %858 = vmatprep.subr.mxu0 %v825_v41  ;;  %v991_v41 = vld [vmem:[#allocation2 + $0x648] sm:$0xff] }
 0x144   : > { %859 = vmatpush2.msra.mxu0 %v824_v42  ;;  %v990_v42 = vld [vmem:[#allocation2 + $0x640] sm:$0xff] }
 0x145   : > { %860 = vmatprep.subr.mxu0 %v823_v43  ;;  %v989_v43 = vld [vmem:[#allocation2 + $0x638] sm:$0xff] }
 0x146   : > { %861 = vmatpush2.msra.mxu0 %v822_v44  ;;  %v988_v44 = vld [vmem:[#allocation2 + $0x630] sm:$0xff] }
 0x147   : > { %862 = vmatprep.subr.mxu0 %v821_v45  ;;  %v987_v45 = vld [vmem:[#allocation2 + $0x628] sm:$0xff] }
 0x148   : > { %863 = vmatpush2.msra.mxu0 %v820_v46  ;;  %v986_v46 = vld [vmem:[#allocation2 + $0x620] sm:$0xff] }
 0x149   : > { %864 = vmatprep.subr.mxu0 %v819_v47  ;;  %v985_v47 = vld [vmem:[#allocation2 + $0x618] sm:$0xff] }
 0x14a   : > { %865 = vmatpush2.msra.mxu0 %v818_v48  ;;  %v984_v48 = vld [vmem:[#allocation2 + $0x610] sm:$0xff] }
 0x14b   : > { %866 = vmatprep.subr.mxu0 %v817_v49  ;;  %v983_v49 = vld [vmem:[#allocation2 + $0x608] sm:$0xff] }
 0x14c   : > { %867 = vmatpush2.msra.mxu0 %v816_v50  ;;  %v982_v50 = vld [vmem:[#allocation2 + $0x600] sm:$0xff] }
 0x14d   : > { %868 = vmatprep.subr.mxu0 %v815_v51  ;;  %v1045_v51 = vld [vmem:[#allocation2 + $0x7f8] sm:$0xff] }
 0x14e   : > { %869 = vmatpush2.msra.mxu0 %v814_v52  ;;  %v1044_v52 = vld [vmem:[#allocation2 + $0x7f0] sm:$0xff] }
 0x14f   : > { %870 = vmatprep.subr.mxu0 %v813_v53  ;;  %v1043_v53 = vld [vmem:[#allocation2 + $0x7e8] sm:$0xff] }
 0x150   : > { %871 = vmatpush2.msra.mxu0 %v812_v54  ;;  %v1042_v54 = vld [vmem:[#allocation2 + $0x7e0] sm:$0xff] }
 0x151   : > { %872 = vmatprep.subr.mxu0 %v811_v55  ;;  %v1041_v55 = vld [vmem:[#allocation2 + $0x7d8] sm:$0xff] }
 0x152   : > { %873 = vmatpush2.msra.mxu0 %v810_v57  ;;  %v1040_v57 = vld [vmem:[#allocation2 + $0x7d0] sm:$0xff] }
 0x153   : > { %874 = vmatprep.subr.mxu0 %v809_v58  ;;  %v1039_v58 = vld [vmem:[#allocation2 + $0x7c8] sm:$0xff] }
 0x154   : > { %875 = vmatpush2.msra.mxu0 %v808_v59  ;;  %v1038_v59 = vld [vmem:[#allocation2 + $0x7c0] sm:$0xff] }
 0x155   : > { %876 = vmatprep.subr.mxu0 %v807_v60  ;;  %v1037_v60 = vld [vmem:[#allocation2 + $0x7b8] sm:$0xff] }
 0x156   : > { %877 = vmatpush2.msra.mxu0 %v806_v61  ;;  %v1036_v61 = vld [vmem:[#allocation2 + $0x7b0] sm:$0xff] }
 0x157   : > { %878 = vmatprep.subr.mxu0 %v805_v62  ;;  %v1035_v62 = vld [vmem:[#allocation2 + $0x7a8] sm:$0xff] }
 0x158   : > { %879 = vmatpush2.msra.mxu0 %v804_v0  ;;  %v1034_v0 = vld [vmem:[#allocation2 + $0x7a0] sm:$0xff] }
 0x159   : > { %880 = vmatprep.subr.mxu0 %v803_v1  ;;  %v1033_v1 = vld [vmem:[#allocation2 + $0x798] sm:$0xff] }
 0x15a   : > { %881 = vmatpush2.msra.mxu0 %v802_v3  ;;  %v1032_v3 = vld [vmem:[#allocation2 + $0x790] sm:$0xff] }
 0x15b   : > { %882 = vmatprep.subr.mxu0 %v801_v4  ;;  %v1031_v4 = vld [vmem:[#allocation2 + $0x788] sm:$0xff] }
 0x15c   : > { %883 = vmatpush2.msra.mxu0 %v800_v5  ;;  %v1030_v5 = vld [vmem:[#allocation2 + $0x780] sm:$0xff] }
 0x15d   : > { %884 = vmatprep.subr.mxu0 %v799_v6  ;;  %v1029_v6 = vld [vmem:[#allocation2 + $0x778] sm:$0xff] }
 0x15e   : > { %885 = vmatpush2.msra.mxu0 %v798_v7  ;;  %v1028_v7 = vld [vmem:[#allocation2 + $0x770] sm:$0xff] }
 0x15f   : > { %886 = vmatprep.subr.mxu0 %v797_v8  ;;  %v1027_v8 = vld [vmem:[#allocation2 + $0x768] sm:$0xff] }
 0x160   : > { %887 = vmatpush2.msra.mxu0 %v796_v9  ;;  %v1026_v9 = vld [vmem:[#allocation2 + $0x760] sm:$0xff] }
 0x161   : > { %888 = vmatprep.subr.mxu0 %v795_v10  ;;  %v1025_v10 = vld [vmem:[#allocation2 + $0x758] sm:$0xff] }
 0x162   : > { %889 = vmatpush2.msra.mxu0 %v794_v11  ;;  %v1024_v11 = vld [vmem:[#allocation2 + $0x750] sm:$0xff] }
 0x163   : > { %891 = vmatmul.mubr.f32.vlgmr.msra.gmra.mxu0 %v6202_v56 }
 0x164   : > { %1192 = vmatprep.mubr.f32.mxu0 %v6114_v2 }
 0x1e2   : > { %v756_v13 = vpop.f32.mrf.mxu1 }
 0x1e3   : > { %v676_v12 = vpop.f32.mrf.mxu0 }
 0x1e4   : > { %v6230_v14 = vadd.f32 %v756_v13, %v676_v12  ;;  %v1023_v12 = vld [vmem:[#allocation2 + $0x748] sm:$0xff]  ;;  %v1022_v13 = vld [vmem:[#allocation2 + $0x740] sm:$0xff] }
 0x1e5   : > { %v6232_v15 = vpop.f32.mrf.mxu0 }
 0x223   : > { %v892_v16 = vpop.f32.mrf.mxu0 }
 0x225   : > { %v894_v17 = vpop.f32.mrf.mxu0 }
 0x226   : > { %4921 = vmatprep.subr.msk.mxu1 %vm603_vm0, %v894_v17  ;;  %v1020_v17 = vld [vmem:[#allocation2 + $0x730] sm:$0xff] }
 0x227   : > { %4922 = vmatpush1.msk.msra.mxu1 %vm603_vm0, %v892_v16  ;;  %v1021_v16 = vld [vmem:[#allocation2 + $0x738] sm:$0xff] }
 0x228   : > { %4923 = vmatmul.mubr.msk.f32.vlgmr.msra.gmra.mxu1 %vm599_vm1, %v4920_v18  ;;  %1046 = vmatprep.subr.mxu1 %v1013_v19  ;;  %v1019_v18 = vld [vmem:[#allocation2 + $0x728] sm:$0xff]  ;;  %v1018_v19 = vld [vmem:[#allocation2 + $0x720] sm:$0xff] }
 0x229   : > { %1047 = vmatpush1.msra.mxu1 %v1012_v20  ;;  %1110 = vmatprep.mubr.f32.mxu1 %v6206_v63  ;;  %v1017_v20 = vld [vmem:[#allocation2 + $0x718] sm:$0xff] }
 0x22a   : > { %1048 = vmatprep.subr.mxu1 %v1011_v21  ;;  %v1016_v21 = vld [vmem:[#allocation2 + $0x710] sm:$0xff] }
 0x22b   : > { %1049 = vmatpush1.msra.mxu1 %v1010_v22  ;;  %v1015_v22 = vld [vmem:[#allocation2 + $0x708] sm:$0xff] }
 0x22c   : > { %1050 = vmatprep.subr.mxu1 %v1009_v23  ;;  %v1014_v23 = vld [vmem:[#allocation2 + $0x700] sm:$0xff] }
 0x22d   : > { %1051 = vmatpush1.msra.mxu1 %v1008_v24  ;;  %v1315_v24 = vld [vmem:[#allocation2 + $0xaf8] sm:$0xff] }
 0x22e   : > { %1052 = vmatprep.subr.mxu1 %v1007_v25  ;;  %v1314_v25 = vld [vmem:[#allocation2 + $0xaf0] sm:$0xff] }
 0x22f   : > { %1053 = vmatpush1.msra.mxu1 %v1006_v26  ;;  %v1313_v26 = vld [vmem:[#allocation2 + $0xae8] sm:$0xff] }
 0x230   : > { %1054 = vmatprep.subr.mxu1 %v1005_v27  ;;  %v1312_v27 = vld [vmem:[#allocation2 + $0xae0] sm:$0xff] }
 0x231   : > { %1055 = vmatpush1.msra.mxu1 %v1004_v28  ;;  %v1311_v28 = vld [vmem:[#allocation2 + $0xad8] sm:$0xff] }
 0x232   : > { %1056 = vmatprep.subr.mxu1 %v1003_v29  ;;  %v1310_v29 = vld [vmem:[#allocation2 + $0xad0] sm:$0xff] }
 0x233   : > { %1057 = vmatpush1.msra.mxu1 %v1002_v30  ;;  %v1309_v30 = vld [vmem:[#allocation2 + $0xac8] sm:$0xff] }
 0x234   : > { %1058 = vmatprep.subr.mxu1 %v1001_v31  ;;  %v1308_v31 = vld [vmem:[#allocation2 + $0xac0] sm:$0xff] }
 0x235   : > { %1059 = vmatpush1.msra.mxu1 %v1000_v32  ;;  %v1307_v32 = vld [vmem:[#allocation2 + $0xab8] sm:$0xff] }
 0x236   : > { %1060 = vmatprep.subr.mxu1 %v999_v33  ;;  %v1306_v33 = vld [vmem:[#allocation2 + $0xab0] sm:$0xff] }
 0x237   : > { %1061 = vmatpush1.msra.mxu1 %v998_v34  ;;  %v1305_v34 = vld [vmem:[#allocation2 + $0xaa8] sm:$0xff] }
 0x238   : > { %1062 = vmatprep.subr.mxu1 %v997_v35  ;;  %v1304_v35 = vld [vmem:[#allocation2 + $0xaa0] sm:$0xff] }
 0x239   : > { %1063 = vmatpush1.msra.mxu1 %v996_v36  ;;  %v1303_v36 = vld [vmem:[#allocation2 + $0xa98] sm:$0xff] }
 0x23a   : > { %1064 = vmatprep.subr.mxu1 %v995_v37  ;;  %v1302_v37 = vld [vmem:[#allocation2 + $0xa90] sm:$0xff] }
 0x23b   : > { %1065 = vmatpush1.msra.mxu1 %v994_v38  ;;  %v1301_v38 = vld [vmem:[#allocation2 + $0xa88] sm:$0xff] }
 0x23c   : > { %1066 = vmatprep.subr.mxu1 %v993_v39  ;;  %v1300_v39 = vld [vmem:[#allocation2 + $0xa80] sm:$0xff] }
 0x23d   : > { %1067 = vmatpush1.msra.mxu1 %v992_v40  ;;  %v1299_v40 = vld [vmem:[#allocation2 + $0xa78] sm:$0xff] }
 0x23e   : > { %1068 = vmatprep.subr.mxu1 %v991_v41  ;;  %v1298_v41 = vld [vmem:[#allocation2 + $0xa70] sm:$0xff] }
 0x23f   : > { %1069 = vmatpush1.msra.mxu1 %v990_v42  ;;  %v1297_v42 = vld [vmem:[#allocation2 + $0xa68] sm:$0xff] }
 0x240   : > { %1070 = vmatprep.subr.mxu1 %v989_v43  ;;  %v1296_v43 = vld [vmem:[#allocation2 + $0xa60] sm:$0xff] }
 0x241   : > { %1071 = vmatpush1.msra.mxu1 %v988_v44  ;;  %v1295_v44 = vld [vmem:[#allocation2 + $0xa58] sm:$0xff] }
 0x242   : > { %1072 = vmatprep.subr.mxu1 %v987_v45  ;;  %v1294_v45 = vld [vmem:[#allocation2 + $0xa50] sm:$0xff] }
 0x243   : > { %1073 = vmatpush1.msra.mxu1 %v986_v46  ;;  %v1293_v46 = vld [vmem:[#allocation2 + $0xa48] sm:$0xff] }
 0x244   : > { %1074 = vmatprep.subr.mxu1 %v985_v47  ;;  %v1292_v47 = vld [vmem:[#allocation2 + $0xa40] sm:$0xff] }
 0x245   : > { %1075 = vmatpush1.msra.mxu1 %v984_v48  ;;  %v1291_v48 = vld [vmem:[#allocation2 + $0xa38] sm:$0xff] }
 0x246   : > { %1076 = vmatprep.subr.mxu1 %v983_v49  ;;  %v1290_v49 = vld [vmem:[#allocation2 + $0xa30] sm:$0xff] }
 0x247   : > { %1077 = vmatpush1.msra.mxu1 %v982_v50  ;;  %v1289_v50 = vld [vmem:[#allocation2 + $0xa28] sm:$0xff] }
 0x248   : > { %1078 = vmatprep.subr.mxu1 %v1045_v51  ;;  %v1288_v51 = vld [vmem:[#allocation2 + $0xa20] sm:$0xff] }
 0x249   : > { %1079 = vmatpush2.msra.mxu1 %v1044_v52  ;;  %v1287_v52 = vld [vmem:[#allocation2 + $0xa18] sm:$0xff] }
 0x24a   : > { %1080 = vmatprep.subr.mxu1 %v1043_v53  ;;  %v1286_v53 = vld [vmem:[#allocation2 + $0xa10] sm:$0xff] }
 0x24b   : > { %1081 = vmatpush2.msra.mxu1 %v1042_v54  ;;  %v1285_v54 = vld [vmem:[#allocation2 + $0xa08] sm:$0xff] }
 0x24c   : > { %1082 = vmatprep.subr.mxu1 %v1041_v55  ;;  %v1284_v55 = vld [vmem:[#allocation2 + $0xa00] sm:$0xff] }
 0x24d   : > { %1083 = vmatpush2.msra.mxu1 %v1040_v57  ;;  %v1347_v57 = vld [vmem:[#allocation2 + $0xbf8] sm:$0xff] }
 0x24e   : > { %1084 = vmatprep.subr.mxu1 %v1039_v58  ;;  %v1346_v58 = vld [vmem:[#allocation2 + $0xbf0] sm:$0xff] }
 0x24f   : > { %1085 = vmatpush2.msra.mxu1 %v1038_v59  ;;  %v1345_v59 = vld [vmem:[#allocation2 + $0xbe8] sm:$0xff] }
 0x250   : > { %1086 = vmatprep.subr.mxu1 %v1037_v60  ;;  %v1344_v60 = vld [vmem:[#allocation2 + $0xbe0] sm:$0xff] }
 0x251   : > { %1087 = vmatpush2.msra.mxu1 %v1036_v61  ;;  %v1343_v61 = vld [vmem:[#allocation2 + $0xbd8] sm:$0xff] }
 0x252   : > { %1088 = vmatprep.subr.mxu1 %v1035_v62  ;;  %v1342_v62 = vld [vmem:[#allocation2 + $0xbd0] sm:$0xff] }
 0x253   : > { %1089 = vmatpush2.msra.mxu1 %v1034_v0  ;;  %v1341_v0 = vld [vmem:[#allocation2 + $0xbc8] sm:$0xff] }
 0x254   : > { %1090 = vmatprep.subr.mxu1 %v1033_v1  ;;  %v1340_v1 = vld [vmem:[#allocation2 + $0xbc0] sm:$0xff] }
 0x255   : > { %1091 = vmatpush2.msra.mxu1 %v1032_v3  ;;  %v1339_v3 = vld [vmem:[#allocation2 + $0xbb8] sm:$0xff] }
 0x256   : > { %1092 = vmatprep.subr.mxu1 %v1031_v4  ;;  %v1338_v4 = vld [vmem:[#allocation2 + $0xbb0] sm:$0xff] }
 0x257   : > { %1093 = vmatpush2.msra.mxu1 %v1030_v5  ;;  %v1337_v5 = vld [vmem:[#allocation2 + $0xba8] sm:$0xff] }
 0x258   : > { %1094 = vmatprep.subr.mxu1 %v1029_v6  ;;  %v1336_v6 = vld [vmem:[#allocation2 + $0xba0] sm:$0xff] }
 0x259   : > { %1095 = vmatpush2.msra.mxu1 %v1028_v7  ;;  %v1335_v7 = vld [vmem:[#allocation2 + $0xb98] sm:$0xff] }
 0x25a   : > { %1096 = vmatprep.subr.mxu1 %v1027_v8  ;;  %v1334_v8 = vld [vmem:[#allocation2 + $0xb90] sm:$0xff] }
 0x25b   : > { %1097 = vmatpush2.msra.mxu1 %v1026_v9  ;;  %v1333_v9 = vld [vmem:[#allocation2 + $0xb88] sm:$0xff] }
 0x25c   : > { %1098 = vmatprep.subr.mxu1 %v1025_v10  ;;  %v1332_v10 = vld [vmem:[#allocation2 + $0xb80] sm:$0xff] }
 0x25d   : > { %1099 = vmatpush2.msra.mxu1 %v1024_v11  ;;  %v1331_v11 = vld [vmem:[#allocation2 + $0xb78] sm:$0xff] }
 0x25e   : > { %1100 = vmatprep.subr.mxu1 %v1023_v12  ;;  %v1330_v12 = vld [vmem:[#allocation2 + $0xb70] sm:$0xff] }
 0x25f   : > { %1101 = vmatpush2.msra.mxu1 %v1022_v13  ;;  %v1329_v13 = vld [vmem:[#allocation2 + $0xb68] sm:$0xff] }
 0x260   : > { %1102 = vmatprep.subr.mxu1 %v1021_v16  ;;  %v1328_v16 = vld [vmem:[#allocation2 + $0xb60] sm:$0xff] }
 0x261   : > { %1103 = vmatpush2.msra.mxu1 %v1020_v17  ;;  %v1327_v17 = vld [vmem:[#allocation2 + $0xb58] sm:$0xff] }
 0x262   : > { %1104 = vmatprep.subr.mxu1 %v1019_v18  ;;  %v1326_v18 = vld [vmem:[#allocation2 + $0xb50] sm:$0xff] }
 0x263   : > { %1105 = vmatpush2.msra.mxu1 %v1018_v19  ;;  %v1325_v19 = vld [vmem:[#allocation2 + $0xb48] sm:$0xff] }
 0x264   : > { %1106 = vmatprep.subr.mxu1 %v1017_v20  ;;  %v1324_v20 = vld [vmem:[#allocation2 + $0xb40] sm:$0xff] }
 0x265   : > { %1107 = vmatpush2.msra.mxu1 %v1016_v21  ;;  %v1323_v21 = vld [vmem:[#allocation2 + $0xb38] sm:$0xff] }
 0x266   : > { %1108 = vmatprep.subr.mxu1 %v1015_v22  ;;  %v1322_v22 = vld [vmem:[#allocation2 + $0xb30] sm:$0xff] }
 0x267   : > { %1109 = vmatpush2.msra.mxu1 %v1014_v23  ;;  %v1321_v23 = vld [vmem:[#allocation2 + $0xb28] sm:$0xff] }
 0x268   : > { %1111 = vmatmul.mubr.f32.vlgmr.msra.gmra.mxu1 %v6202_v56  ;;  %1348 = vmatprep.subr.mxu1 %v1315_v24  ;;  %v1320_v24 = vld [vmem:[#allocation2 + $0xb20] sm:$0xff] }
 0x269   : > { %1349 = vmatpush1.msra.mxu1 %v1314_v25  ;;  %1412 = vmatprep.mubr.f32.mxu1 %v6206_v63  ;;  %v1319_v25 = vld [vmem:[#allocation2 + $0xb18] sm:$0xff] }
 0x26a   : > { %1350 = vmatprep.subr.mxu1 %v1313_v26  ;;  %v1318_v26 = vld [vmem:[#allocation2 + $0xb10] sm:$0xff] }
 0x26b   : > { %1351 = vmatpush1.msra.mxu1 %v1312_v27  ;;  %v1317_v27 = vld [vmem:[#allocation2 + $0xb08] sm:$0xff] }
 0x26c   : > { %1352 = vmatprep.subr.mxu1 %v1311_v28  ;;  %v1316_v28 = vld [vmem:[#allocation2 + $0xb00] sm:$0xff] }
 0x26d   : > { %1353 = vmatpush1.msra.mxu1 %v1310_v29  ;;  %v758_v29 = vpop.f32.mrf.mxu1 }
 0x26e   : > { %1354 = vmatprep.subr.mxu1 %v1309_v30 }
 0x26f   : > { %1355 = vmatpush1.msra.mxu1 %v1308_v31  ;;  %v759_v31 = vadd.f32 %v758_v29, %v6232_v15  ;;  %v1550_v29 = vld [vmem:[#allocation2 + $0xd70] sm:$0xff] }
 0x270   : > { %1356 = vmatprep.subr.mxu1 %v1307_v32 }
 0x271   : > { %1357 = vmatpush1.msra.mxu1 %v1306_v33 }
 0x272   : > { %1358 = vmatprep.subr.mxu1 %v1305_v34 }
 0x273   : > { %1359 = vmatpush1.msra.mxu1 %v1304_v35 }
 0x274   : > { %1360 = vmatprep.subr.mxu1 %v1303_v36 }
 0x275   : > { %1361 = vmatpush1.msra.mxu1 %v1302_v37  ;;  %v4924_v37 = vld [vmem:[%s6564_s2 + $0x18] sm:$0x3f] }
 0x276   : > { %1362 = vmatprep.subr.mxu1 %v1301_v38 }
 0x277   : > { %1363 = vmatpush1.msra.mxu1 %v1300_v39  ;;  %v4932_v39 = vld [vmem:[%s6564_s2 + $0x28] sm:$0x3f] }
 0x278   : > { %1364 = vmatprep.subr.mxu1 %v1299_v40  ;;  %v1535_v40 = vld [vmem:[#allocation2 + $0xcf8] sm:$0xff] }
 0x279   : > { %1365 = vmatpush1.msra.mxu1 %v1298_v41  ;;  %v1533_v41 = vld [vmem:[#allocation2 + $0xce8] sm:$0xff] }
 0x27a   : > { %1366 = vmatprep.subr.mxu1 %v1297_v42  ;;  %v1532_v42 = vld [vmem:[#allocation2 + $0xce0] sm:$0xff] }
 0x27b   : > { %1367 = vmatpush1.msra.mxu1 %v1296_v43  ;;  %v1531_v43 = vld [vmem:[#allocation2 + $0xcd8] sm:$0xff] }
 0x27c   : > { %1368 = vmatprep.subr.mxu1 %v1295_v44  ;;  %v1530_v44 = vld [vmem:[#allocation2 + $0xcd0] sm:$0xff] }
 0x27d   : > { %1369 = vmatpush1.msra.mxu1 %v1294_v45  ;;  %v1529_v45 = vld [vmem:[#allocation2 + $0xcc8] sm:$0xff] }
 0x27e   : > { %1370 = vmatprep.subr.mxu1 %v1293_v46  ;;  %v1528_v46 = vld [vmem:[#allocation2 + $0xcc0] sm:$0xff] }
 0x27f   : > { %1371 = vmatpush1.msra.mxu1 %v1292_v47  ;;  %v1527_v47 = vld [vmem:[#allocation2 + $0xcb8] sm:$0xff] }
 0x280   : > { %1372 = vmatprep.subr.mxu1 %v1291_v48  ;;  %v1526_v48 = vld [vmem:[#allocation2 + $0xcb0] sm:$0xff] }
 0x281   : > { %1373 = vmatpush1.msra.mxu1 %v1290_v49  ;;  %v1525_v49 = vld [vmem:[#allocation2 + $0xca8] sm:$0xff] }
 0x282   : > { %1374 = vmatprep.subr.mxu1 %v1289_v50  ;;  %v1524_v50 = vld [vmem:[#allocation2 + $0xca0] sm:$0xff] }
 0x283   : > { %1375 = vmatpush1.msra.mxu1 %v1288_v51  ;;  %v1523_v51 = vld [vmem:[#allocation2 + $0xc98] sm:$0xff] }
 0x284   : > { %1376 = vmatprep.subr.mxu1 %v1287_v52  ;;  %v1522_v52 = vld [vmem:[#allocation2 + $0xc90] sm:$0xff] }
 0x285   : > { %1377 = vmatpush1.msra.mxu1 %v1286_v53  ;;  %v1521_v53 = vld [vmem:[#allocation2 + $0xc88] sm:$0xff] }
 0x286   : > { %1378 = vmatprep.subr.mxu1 %v1285_v54  ;;  %v1520_v54 = vld [vmem:[#allocation2 + $0xc80] sm:$0xff] }
 0x287   : > { %1379 = vmatpush1.msra.mxu1 %v1284_v55  ;;  %v1519_v55 = vld [vmem:[#allocation2 + $0xc78] sm:$0xff] }
 0x288   : > { %1380 = vmatprep.subr.mxu1 %v1347_v57  ;;  %v1518_v57 = vld [vmem:[#allocation2 + $0xc70] sm:$0xff] }
 0x289   : > { %1381 = vmatpush2.msra.mxu1 %v1346_v58  ;;  %v1517_v58 = vld [vmem:[#allocation2 + $0xc68] sm:$0xff] }
 0x28a   : > { %1382 = vmatprep.subr.mxu1 %v1345_v59  ;;  %v1516_v59 = vld [vmem:[#allocation2 + $0xc60] sm:$0xff] }
 0x28b   : > { %1383 = vmatpush2.msra.mxu1 %v1344_v60  ;;  %v1515_v60 = vld [vmem:[#allocation2 + $0xc58] sm:$0xff] }
 0x28c   : > { %1384 = vmatprep.subr.mxu1 %v1343_v61  ;;  %v1514_v61 = vld [vmem:[#allocation2 + $0xc50] sm:$0xff] }
 0x28d   : > { %1385 = vmatpush2.msra.mxu1 %v1342_v62  ;;  %v1513_v62 = vld [vmem:[#allocation2 + $0xc48] sm:$0xff] }
 0x28e   : > { %1386 = vmatprep.subr.mxu1 %v1341_v0  ;;  %v1512_v0 = vld [vmem:[#allocation2 + $0xc40] sm:$0xff] }
 0x28f   : > { %1387 = vmatpush2.msra.mxu1 %v1340_v1  ;;  %v1511_v1 = vld [vmem:[#allocation2 + $0xc38] sm:$0xff] }
 0x290   : > { %1388 = vmatprep.subr.mxu1 %v1339_v3  ;;  %v1510_v3 = vld [vmem:[#allocation2 + $0xc30] sm:$0xff] }
 0x291   : > { %1389 = vmatpush2.msra.mxu1 %v1338_v4  ;;  %v1509_v4 = vld [vmem:[#allocation2 + $0xc28] sm:$0xff] }
 0x292   : > { %1390 = vmatprep.subr.mxu1 %v1337_v5  ;;  %v1508_v5 = vld [vmem:[#allocation2 + $0xc20] sm:$0xff] }
 0x293   : > { %1391 = vmatpush2.msra.mxu1 %v1336_v6  ;;  %v1507_v6 = vld [vmem:[#allocation2 + $0xc18] sm:$0xff] }
 0x294   : > { %1392 = vmatprep.subr.mxu1 %v1335_v7  ;;  %v1506_v7 = vld [vmem:[#allocation2 + $0xc10] sm:$0xff] }
 0x295   : > { %1393 = vmatpush2.msra.mxu1 %v1334_v8  ;;  %v1505_v8 = vld [vmem:[#allocation2 + $0xc08] sm:$0xff] }
 0x296   : > { %1394 = vmatprep.subr.mxu1 %v1333_v9  ;;  %v1504_v9 = vld [vmem:[#allocation2 + $0xc00] sm:$0xff] }
 0x297   : > { %1395 = vmatpush2.msra.mxu1 %v1332_v10  ;;  %v1567_v10 = vld [vmem:[#allocation2 + $0xdf8] sm:$0xff] }
 0x298   : > { %1396 = vmatprep.subr.mxu1 %v1331_v11  ;;  %v1566_v11 = vld [vmem:[#allocation2 + $0xdf0] sm:$0xff] }
 0x299   : > { %1397 = vmatpush2.msra.mxu1 %v1330_v12  ;;  %v1565_v12 = vld [vmem:[#allocation2 + $0xde8] sm:$0xff] }
 0x29a   : > { %1398 = vmatprep.subr.mxu1 %v1329_v13  ;;  %v1564_v13 = vld [vmem:[#allocation2 + $0xde0] sm:$0xff] }
 0x29b   : > { %1399 = vmatpush2.msra.mxu1 %v1328_v16  ;;  %v1563_v16 = vld [vmem:[#allocation2 + $0xdd8] sm:$0xff] }
 0x29c   : > { %1400 = vmatprep.subr.mxu1 %v1327_v17  ;;  %v1562_v17 = vld [vmem:[#allocation2 + $0xdd0] sm:$0xff] }
 0x29d   : > { %1401 = vmatpush2.msra.mxu1 %v1326_v18  ;;  %v1561_v18 = vld [vmem:[#allocation2 + $0xdc8] sm:$0xff] }
 0x29e   : > { %1402 = vmatprep.subr.mxu1 %v1325_v19  ;;  %v1560_v19 = vld [vmem:[#allocation2 + $0xdc0] sm:$0xff] }
 0x29f   : > { %1403 = vmatpush2.msra.mxu1 %v1324_v20  ;;  %v1559_v20 = vld [vmem:[#allocation2 + $0xdb8] sm:$0xff] }
 0x2a0   : > { %1404 = vmatprep.subr.mxu1 %v1323_v21  ;;  %v1558_v21 = vld [vmem:[#allocation2 + $0xdb0] sm:$0xff] }
 0x2a1   : > { %1405 = vmatpush2.msra.mxu1 %v1322_v22  ;;  %v1557_v22 = vld [vmem:[#allocation2 + $0xda8] sm:$0xff] }
 0x2a2   : > { %1406 = vmatprep.subr.mxu1 %v1321_v23  ;;  %v1556_v23 = vld [vmem:[#allocation2 + $0xda0] sm:$0xff] }
 0x2a3   : > { %1407 = vmatpush2.msra.mxu1 %v1320_v24  ;;  %v1555_v24 = vld [vmem:[#allocation2 + $0xd98] sm:$0xff] }
 0x2a4   : > { %1408 = vmatprep.subr.mxu1 %v1319_v25  ;;  %v1554_v25 = vld [vmem:[#allocation2 + $0xd90] sm:$0xff] }
 0x2a5   : > { %1409 = vmatpush2.msra.mxu1 %v1318_v26  ;;  %v1553_v26 = vld [vmem:[#allocation2 + $0xd88] sm:$0xff] }
 0x2a6   : > { %1410 = vmatprep.subr.mxu1 %v1317_v27  ;;  %v1552_v27 = vld [vmem:[#allocation2 + $0xd80] sm:$0xff] }
 0x2a7   : > { %1411 = vmatpush2.msra.mxu1 %v1316_v28  ;;  %v1551_v28 = vld [vmem:[#allocation2 + $0xd78] sm:$0xff] }
 0x2a8   : > { %1413 = vmatmul.mubr.f32.vlgmr.msra.gmra.mxu1 %v6202_v56 }
 0x2a9   : > { %1714 = vmatprep.mubr.f32.mxu1 %v6114_v2 }
 0x2e8   : > { %v974_v30 = vpop.f32.mrf.mxu1 }
 0x2e9   : > { %v6247_v32 = vadd.f32 %v974_v30, %v6230_v14  ;;  %v4928_v14 = vld [vmem:[%s6564_s2 + $0x20] sm:$0x3f]  ;;  %v1549_v30 = vld [vmem:[#allocation2 + $0xd68] sm:$0xff] }
 0x2ea   : > { %v976_v33 = vpop.f32.mrf.mxu1 }
 0x2eb   : > { %v6249_v34 = vadd.f32 %v976_v33, %v759_v31  ;;  %v1548_v31 = vld [vmem:[#allocation2 + $0xd60] sm:$0xff]  ;;  %v1547_v33 = vld [vmem:[#allocation2 + $0xd58] sm:$0xff] }
 0x328   : > { %v1112_v35 = vpop.f32.mrf.mxu1 }
 0x32a   : > { %v1114_v36 = vpop.f32.mrf.mxu1 }
 0x32b   : > { %4925 = vmatprep.subr.msk.mxu0 %vm603_vm0, %v1114_v36  ;;  %v1545_v36 = vld [vmem:[#allocation2 + $0xd48] sm:$0xff] }
 0x32c   : > { %4926 = vmatpush1.msk.msra.mxu0 %vm603_vm0, %v1112_v35  ;;  %v1546_v35 = vld [vmem:[#allocation2 + $0xd50] sm:$0xff] }
 0x32d   : > { %4927 = vmatmul.mubr.msk.f32.vlgmr.msra.gmra.mxu0 %vm599_vm1, %v4924_v37  ;;  %4929 = vmatprep.subr.msk.mxu0 %vm603_vm0, %v6206_v63  ;;  %v1544_v37 = vld [vmem:[#allocation2 + $0xd40] sm:$0xff] }
 0x32e   : > { %4930 = vmatpush1.msk.msra.mxu0 %vm603_vm0, %v6202_v56  ;;  %1274 = vmatprep.mubr.f32.mxu0 %v6114_v2  ;;  %v1534_v56 = vld [vmem:[#allocation2 + $0xcf0] sm:$0xff] }
 0x331   : > { %4931 = vmatmul.mubr.msk.f32.vlgmr.msra.gmra.mxu0 %vm599_vm1, %v4928_v14  ;;  %v1543_v14 = vld [vmem:[#allocation2 + $0xd38] sm:$0xff] }
 0x332   : > { %1494 = vmatprep.mubr.f32.mxu0 %v6114_v2 }
 0x368   : > { %v1414_v15 = vpop.f32.mrf.mxu1 }
 0x36a   : > { %v1416_v38 = vpop.f32.mrf.mxu1 }
 0x36b   : > { %4933 = vmatprep.subr.msk.mxu0 %vm603_vm0, %v1416_v38  ;;  %v1541_v38 = vld [vmem:[#allocation2 + $0xd28] sm:$0xff] }
 0x36c   : > { %4934 = vmatpush1.msk.msra.mxu0 %vm603_vm0, %v1414_v15  ;;  %v1542_v15 = vld [vmem:[#allocation2 + $0xd30] sm:$0xff] }
 0x36d   : > { %4935 = vmatmul.mubr.msk.f32.vlgmr.msra.gmra.mxu0 %vm599_vm1, %v4932_v39  ;;  %1568 = vmatprep.subr.mxu0 %v1535_v40  ;;  %v1540_v39 = vld [vmem:[#allocation2 + $0xd20] sm:$0xff]  ;;  %v1539_v40 = vld [vmem:[#allocation2 + $0xd18] sm:$0xff] }
 0x36e   : > { %1569 = vmatpush1.msra.mxu0 %v1534_v56  ;;  %1632 = vmatprep.mubr.f32.mxu0 %v6206_v63  ;;  %v1538_v56 = vld [vmem:[#allocation2 + $0xd10] sm:$0xff] }
 0x36f   : > { %1570 = vmatprep.subr.mxu0 %v1533_v41  ;;  %v1537_v41 = vld [vmem:[#allocation2 + $0xd08] sm:$0xff] }
 0x370   : > { %1571 = vmatpush1.msra.mxu0 %v1532_v42  ;;  %v1536_v42 = vld [vmem:[#allocation2 + $0xd00] sm:$0xff] }
 0x371   : > { %1572 = vmatprep.subr.mxu0 %v1531_v43  ;;  %v6275_v43 = vld [vmem:[%s6199_s18] sm:$0xff] }
 0x372   : > { %1573 = vmatpush1.msra.mxu0 %v1530_v44 }
 0x373   : > { %1574 = vmatprep.subr.mxu0 %v1529_v45 }
 0x374   : > { %1575 = vmatpush1.msra.mxu0 %v1528_v46 }
 0x375   : > { %1576 = vmatprep.subr.mxu0 %v1527_v47 }
 0x376   : > { %1577 = vmatpush1.msra.mxu0 %v1526_v48 }
 0x377   : > { %1578 = vmatprep.subr.mxu0 %v1525_v49 }
 0x378   : > { %1579 = vmatpush1.msra.mxu0 %v1524_v50 }
 0x379   : > { %1580 = vmatprep.subr.mxu0 %v1523_v51 }
 0x37a   : > { %1581 = vmatpush1.msra.mxu0 %v1522_v52 }
 0x37b   : > { %1582 = vmatprep.subr.mxu0 %v1521_v53 }
 0x37c   : > { %1583 = vmatpush1.msra.mxu0 %v1520_v54 }
 0x37d   : > { %1584 = vmatprep.subr.mxu0 %v1519_v55 }
 0x37e   : > { %1585 = vmatpush1.msra.mxu0 %v1518_v57 }
 0x37f   : > { %1586 = vmatprep.subr.mxu0 %v1517_v58 }
 0x380   : > { %1587 = vmatpush1.msra.mxu0 %v1516_v59  ;;  %v4936_v59 = vld [vmem:[%s6564_s2 + $0x30] sm:$0x3f] }
 0x381   : > { %1588 = vmatprep.subr.mxu0 %v1515_v60  ;;  %v1753_v60 = vld [vmem:[#allocation2 + $0xee8] sm:$0xff] }
 0x382   : > { %1589 = vmatpush1.msra.mxu0 %v1514_v61  ;;  %v1752_v61 = vld [vmem:[#allocation2 + $0xee0] sm:$0xff] }
 0x383   : > { %1590 = vmatprep.subr.mxu0 %v1513_v62  ;;  %v1751_v62 = vld [vmem:[#allocation2 + $0xed8] sm:$0xff] }
 0x384   : > { %1591 = vmatpush1.msra.mxu0 %v1512_v0  ;;  %v1750_v0 = vld [vmem:[#allocation2 + $0xed0] sm:$0xff] }
 0x385   : > { %1592 = vmatprep.subr.mxu0 %v1511_v1  ;;  %v1749_v1 = vld [vmem:[#allocation2 + $0xec8] sm:$0xff] }
 0x386   : > { %1593 = vmatpush1.msra.mxu0 %v1510_v3  ;;  %v1748_v3 = vld [vmem:[#allocation2 + $0xec0] sm:$0xff] }
 0x387   : > { %1594 = vmatprep.subr.mxu0 %v1509_v4  ;;  %v1747_v4 = vld [vmem:[#allocation2 + $0xeb8] sm:$0xff] }
 0x388   : > { %1595 = vmatpush1.msra.mxu0 %v1508_v5  ;;  %v1746_v5 = vld [vmem:[#allocation2 + $0xeb0] sm:$0xff] }
 0x389   : > { %1596 = vmatprep.subr.mxu0 %v1507_v6  ;;  %v1745_v6 = vld [vmem:[#allocation2 + $0xea8] sm:$0xff] }
 0x38a   : > { %1597 = vmatpush1.msra.mxu0 %v1506_v7  ;;  %v1744_v7 = vld [vmem:[#allocation2 + $0xea0] sm:$0xff] }
 0x38b   : > { %1598 = vmatprep.subr.mxu0 %v1505_v8  ;;  %v1743_v8 = vld [vmem:[#allocation2 + $0xe98] sm:$0xff] }
 0x38c   : > { %1599 = vmatpush1.msra.mxu0 %v1504_v9  ;;  %v1742_v9 = vld [vmem:[#allocation2 + $0xe90] sm:$0xff] }
 0x38d   : > { %1600 = vmatprep.subr.mxu0 %v1567_v10  ;;  %v1741_v10 = vld [vmem:[#allocation2 + $0xe88] sm:$0xff] }
 0x38e   : > { %1601 = vmatpush2.msra.mxu0 %v1566_v11  ;;  %v1740_v11 = vld [vmem:[#allocation2 + $0xe80] sm:$0xff] }
 0x38f   : > { %1602 = vmatprep.subr.mxu0 %v1565_v12  ;;  %v1739_v12 = vld [vmem:[#allocation2 + $0xe78] sm:$0xff] }
 0x390   : > { %1603 = vmatpush2.msra.mxu0 %v1564_v13  ;;  %v1738_v13 = vld [vmem:[#allocation2 + $0xe70] sm:$0xff] }
 0x391   : > { %1604 = vmatprep.subr.mxu0 %v1563_v16  ;;  %v1737_v16 = vld [vmem:[#allocation2 + $0xe68] sm:$0xff] }
 0x392   : > { %1605 = vmatpush2.msra.mxu0 %v1562_v17  ;;  %v1736_v17 = vld [vmem:[#allocation2 + $0xe60] sm:$0xff] }
 0x393   : > { %1606 = vmatprep.subr.mxu0 %v1561_v18  ;;  %v1735_v18 = vld [vmem:[#allocation2 + $0xe58] sm:$0xff] }
 0x394   : > { %1607 = vmatpush2.msra.mxu0 %v1560_v19  ;;  %v1734_v19 = vld [vmem:[#allocation2 + $0xe50] sm:$0xff] }
 0x395   : > { %1608 = vmatprep.subr.mxu0 %v1559_v20  ;;  %v1733_v20 = vld [vmem:[#allocation2 + $0xe48] sm:$0xff] }
 0x396   : > { %1609 = vmatpush2.msra.mxu0 %v1558_v21  ;;  %v1732_v21 = vld [vmem:[#allocation2 + $0xe40] sm:$0xff] }
 0x397   : > { %1610 = vmatprep.subr.mxu0 %v1557_v22  ;;  %v1731_v22 = vld [vmem:[#allocation2 + $0xe38] sm:$0xff] }
 0x398   : > { %1611 = vmatpush2.msra.mxu0 %v1556_v23  ;;  %v1730_v23 = vld [vmem:[#allocation2 + $0xe30] sm:$0xff] }
 0x399   : > { %1612 = vmatprep.subr.mxu0 %v1555_v24  ;;  %v1729_v24 = vld [vmem:[#allocation2 + $0xe28] sm:$0xff] }
 0x39a   : > { %1613 = vmatpush2.msra.mxu0 %v1554_v25  ;;  %v1728_v25 = vld [vmem:[#allocation2 + $0xe20] sm:$0xff] }
 0x39b   : > { %1614 = vmatprep.subr.mxu0 %v1553_v26  ;;  %v1727_v26 = vld [vmem:[#allocation2 + $0xe18] sm:$0xff] }
 0x39c   : > { %1615 = vmatpush2.msra.mxu0 %v1552_v27  ;;  %v1726_v27 = vld [vmem:[#allocation2 + $0xe10] sm:$0xff] }
 0x39d   : > { %1616 = vmatprep.subr.mxu0 %v1551_v28  ;;  %v1725_v28 = vld [vmem:[#allocation2 + $0xe08] sm:$0xff] }
 0x39e   : > { %1617 = vmatpush2.msra.mxu0 %v1550_v29  ;;  %v1724_v29 = vld [vmem:[#allocation2 + $0xe00] sm:$0xff] }
 0x39f   : > { %1618 = vmatprep.subr.mxu0 %v1549_v30  ;;  %v1787_v30 = vld [vmem:[#allocation2 + $0xff8] sm:$0xff] }
 0x3a0   : > { %1619 = vmatpush2.msra.mxu0 %v1548_v31  ;;  %v1786_v31 = vld [vmem:[#allocation2 + $0xff0] sm:$0xff] }
 0x3a1   : > { %1620 = vmatprep.subr.mxu0 %v1547_v33  ;;  %v1785_v33 = vld [vmem:[#allocation2 + $0xfe8] sm:$0xff] }
 0x3a2   : > { %1621 = vmatpush2.msra.mxu0 %v1546_v35  ;;  %v1784_v35 = vld [vmem:[#allocation2 + $0xfe0] sm:$0xff] }
 0x3a3   : > { %1622 = vmatprep.subr.mxu0 %v1545_v36  ;;  %v1783_v36 = vld [vmem:[#allocation2 + $0xfd8] sm:$0xff] }
 0x3a4   : > { %1623 = vmatpush2.msra.mxu0 %v1544_v37  ;;  %v1782_v37 = vld [vmem:[#allocation2 + $0xfd0] sm:$0xff] }
 0x3a5   : > { %1624 = vmatprep.subr.mxu0 %v1543_v14  ;;  %v1781_v14 = vld [vmem:[#allocation2 + $0xfc8] sm:$0xff] }
 0x3a6   : > { %1625 = vmatpush2.msra.mxu0 %v1542_v15  ;;  %v1780_v15 = vld [vmem:[#allocation2 + $0xfc0] sm:$0xff] }
 0x3a7   : > { %1626 = vmatprep.subr.mxu0 %v1541_v38  ;;  %v1779_v38 = vld [vmem:[#allocation2 + $0xfb8] sm:$0xff] }
 0x3a8   : > { %1627 = vmatpush2.msra.mxu0 %v1540_v39  ;;  %v1778_v39 = vld [vmem:[#allocation2 + $0xfb0] sm:$0xff] }
 0x3a9   : > { %1628 = vmatprep.subr.mxu0 %v1539_v40  ;;  %v1777_v40 = vld [vmem:[#allocation2 + $0xfa8] sm:$0xff] }
 0x3aa   : > { %1629 = vmatpush2.msra.mxu0 %v1538_v56  ;;  %v1776_v56 = vld [vmem:[#allocation2 + $0xfa0] sm:$0xff] }
 0x3ab   : > { %1630 = vmatprep.subr.mxu0 %v1537_v41  ;;  %v1775_v41 = vld [vmem:[#allocation2 + $0xf98] sm:$0xff] }
 0x3ac   : > { %1631 = vmatpush2.msra.mxu0 %v1536_v42  ;;  %v1774_v42 = vld [vmem:[#allocation2 + $0xf90] sm:$0xff] }
 0x3ad   : > { %1633 = vmatmul.mubr.f32.vlgmr.msra.gmra.mxu0 %v6275_v43 }
 0x3ae   : > { %1934 = vmatprep.mubr.f32.mxu0 %v6114_v2 }
 0x3ed   : > { %v1194_v44 = vpop.f32.mrf.mxu0 }
 0x3ee   : > { %v1199_v45 = vadd.f32 %v1194_v44, %v6247_v32  ;;  %v1755_v32 = vld [vmem:[#allocation2 + $0xef8] sm:$0xff]  ;;  %v1773_v44 = vld [vmem:[#allocation2 + $0xf88] sm:$0xff] }
 0x3ef   : > { %v1196_v46 = vpop.f32.mrf.mxu0 }
 0x3f0   : > { %v1200_v47 = vadd.f32 %v1196_v46, %v6249_v34  ;;  %v1754_v34 = vld [vmem:[#allocation2 + $0xef0] sm:$0xff]  ;;  %v1771_v46 = vld [vmem:[#allocation2 + $0xf78] sm:$0xff] }
 0x3f1   : > { %v1276_v48 = vpop.f32.mrf.mxu0 }
 0x3f2   : > { %v1281_v49 = vadd.f32 %v1276_v48, %v1199_v45  ;;  %v1772_v45 = vld [vmem:[#allocation2 + $0xf80] sm:$0xff]  ;;  %v1769_v48 = vld [vmem:[#allocation2 + $0xf68] sm:$0xff] }
 0x3f3   : > { %v1278_v50 = vpop.f32.mrf.mxu0 }
 0x3f4   : > { %v1282_v51 = vadd.f32 %v1278_v50, %v1200_v47  ;;  %v1770_v47 = vld [vmem:[#allocation2 + $0xf70] sm:$0xff]  ;;  %v1767_v50 = vld [vmem:[#allocation2 + $0xf58] sm:$0xff] }
 0x42d   : > { %v1496_v52 = vpop.f32.mrf.mxu0 }
 0x42e   : > { %v6281_v53 = vadd.f32 %v1496_v52, %v1281_v49  ;;  %v1768_v49 = vld [vmem:[#allocation2 + $0xf60] sm:$0xff]  ;;  %v1765_v52 = vld [vmem:[#allocation2 + $0xf48] sm:$0xff] }
 0x42f   : > { %v1498_v54 = vpop.f32.mrf.mxu0 }
 0x430   : > { %v6283_v55 = vadd.f32 %v1498_v54, %v1282_v51  ;;  %v1766_v51 = vld [vmem:[#allocation2 + $0xf50] sm:$0xff]  ;;  %v1764_v54 = vld [vmem:[#allocation2 + $0xf40] sm:$0xff] }
 0x46d   : > { %v1634_v57 = vpop.f32.mrf.mxu0 }
 0x46f   : > { %v1636_v58 = vpop.f32.mrf.mxu0 }
 0x470   : > { %4937 = vmatprep.subr.msk.mxu1 %vm603_vm0, %v1636_v58  ;;  %v1762_v58 = vld [vmem:[#allocation2 + $0xf30] sm:$0xff] }
 0x471   : > { %4938 = vmatpush1.msk.msra.mxu1 %vm603_vm0, %v1634_v57  ;;  %v1763_v57 = vld [vmem:[#allocation2 + $0xf38] sm:$0xff] }
 0x472   : > { %4939 = vmatmul.mubr.msk.f32.vlgmr.msra.gmra.mxu1 %vm599_vm1, %v4936_v59  ;;  %1788 = vmatprep.subr.mxu1 %v1755_v32  ;;  %v1761_v59 = vld [vmem:[#allocation2 + $0xf28] sm:$0xff]  ;;  %v1760_v32 = vld [vmem:[#allocation2 + $0xf20] sm:$0xff] }
 0x473   : > { %1789 = vmatpush1.msra.mxu1 %v1754_v34  ;;  %1852 = vmatprep.mubr.f32.mxu1 %v6206_v63  ;;  %v1759_v34 = vld [vmem:[#allocation2 + $0xf18] sm:$0xff] }
 0x474   : > { %1790 = vmatprep.subr.mxu1 %v1753_v60  ;;  %v1758_v60 = vld [vmem:[#allocation2 + $0xf10] sm:$0xff] }
 0x475   : > { %1791 = vmatpush1.msra.mxu1 %v1752_v61  ;;  %v1757_v61 = vld [vmem:[#allocation2 + $0xf08] sm:$0xff] }
 0x476   : > { %1792 = vmatprep.subr.mxu1 %v1751_v62  ;;  %v1756_v62 = vld [vmem:[#allocation2 + $0xf00] sm:$0xff] }
 0x477   : > { %1793 = vmatpush1.msra.mxu1 %v1750_v0 }
 0x478   : > { %1794 = vmatprep.subr.mxu1 %v1749_v1 }
 0x479   : > { %1795 = vmatpush1.msra.mxu1 %v1748_v3 }
 0x47a   : > { %1796 = vmatprep.subr.mxu1 %v1747_v4 }
 0x47b   : > { %1797 = vmatpush1.msra.mxu1 %v1746_v5 }
 0x47c   : > { %1798 = vmatprep.subr.mxu1 %v1745_v6 }
 0x47d   : > { %1799 = vmatpush1.msra.mxu1 %v1744_v7  ;;  %v4940_v7 = vld [vmem:[%s6564_s2 + $0x38] sm:$0x3f] }
 0x47e   : > { %1800 = vmatprep.subr.mxu1 %v1743_v8  ;;  %v1975_v8 = vld [vmem:[#allocation2 + $0x10f8] sm:$0xff] }
 0x47f   : > { %1801 = vmatpush1.msra.mxu1 %v1742_v9  ;;  %v1974_v9 = vld [vmem:[#allocation2 + $0x10f0] sm:$0xff] }
 0x480   : > { %1802 = vmatprep.subr.mxu1 %v1741_v10  ;;  %v1973_v10 = vld [vmem:[#allocation2 + $0x10e8] sm:$0xff] }
 0x481   : > { %1803 = vmatpush1.msra.mxu1 %v1740_v11  ;;  %v1970_v11 = vld [vmem:[#allocation2 + $0x10d0] sm:$0xff] }
 0x482   : > { %1804 = vmatprep.subr.mxu1 %v1739_v12  ;;  %v1969_v12 = vld [vmem:[#allocation2 + $0x10c8] sm:$0xff] }
 0x483   : > { %1805 = vmatpush1.msra.mxu1 %v1738_v13  ;;  %v1968_v13 = vld [vmem:[#allocation2 + $0x10c0] sm:$0xff] }
 0x484   : > { %1806 = vmatprep.subr.mxu1 %v1737_v16  ;;  %v1967_v16 = vld [vmem:[#allocation2 + $0x10b8] sm:$0xff] }
 0x485   : > { %1807 = vmatpush1.msra.mxu1 %v1736_v17  ;;  %v1966_v17 = vld [vmem:[#allocation2 + $0x10b0] sm:$0xff] }
 0x486   : > { %1808 = vmatprep.subr.mxu1 %v1735_v18  ;;  %v1965_v18 = vld [vmem:[#allocation2 + $0x10a8] sm:$0xff] }
 0x487   : > { %1809 = vmatpush1.msra.mxu1 %v1734_v19  ;;  %v1964_v19 = vld [vmem:[#allocation2 + $0x10a0] sm:$0xff] }
 0x488   : > { %1810 = vmatprep.subr.mxu1 %v1733_v20  ;;  %v1963_v20 = vld [vmem:[#allocation2 + $0x1098] sm:$0xff] }
 0x489   : > { %1811 = vmatpush1.msra.mxu1 %v1732_v21  ;;  %v1962_v21 = vld [vmem:[#allocation2 + $0x1090] sm:$0xff] }
 0x48a   : > { %1812 = vmatprep.subr.mxu1 %v1731_v22  ;;  %v1960_v22 = vld [vmem:[#allocation2 + $0x1080] sm:$0xff] }
 0x48b   : > { %1813 = vmatpush1.msra.mxu1 %v1730_v23  ;;  %v1959_v23 = vld [vmem:[#allocation2 + $0x1078] sm:$0xff] }
 0x48c   : > { %1814 = vmatprep.subr.mxu1 %v1729_v24  ;;  %v1958_v24 = vld [vmem:[#allocation2 + $0x1070] sm:$0xff] }
 0x48d   : > { %1815 = vmatpush1.msra.mxu1 %v1728_v25  ;;  %v1957_v25 = vld [vmem:[#allocation2 + $0x1068] sm:$0xff] }
 0x48e   : > { %1816 = vmatprep.subr.mxu1 %v1727_v26  ;;  %v1956_v26 = vld [vmem:[#allocation2 + $0x1060] sm:$0xff] }
 0x48f   : > { %1817 = vmatpush1.msra.mxu1 %v1726_v27  ;;  %v1955_v27 = vld [vmem:[#allocation2 + $0x1058] sm:$0xff] }
 0x490   : > { %1818 = vmatprep.subr.mxu1 %v1725_v28  ;;  %v1954_v28 = vld [vmem:[#allocation2 + $0x1050] sm:$0xff] }
 0x491   : > { %1819 = vmatpush1.msra.mxu1 %v1724_v29  ;;  %v1953_v29 = vld [vmem:[#allocation2 + $0x1048] sm:$0xff] }
 0x492   : > { %1820 = vmatprep.subr.mxu1 %v1787_v30  ;;  %v1952_v30 = vld [vmem:[#allocation2 + $0x1040] sm:$0xff] }
 0x493   : > { %1821 = vmatpush2.msra.mxu1 %v1786_v31  ;;  %v1951_v31 = vld [vmem:[#allocation2 + $0x1038] sm:$0xff] }
 0x494   : > { %1822 = vmatprep.subr.mxu1 %v1785_v33  ;;  %v1950_v33 = vld [vmem:[#allocation2 + $0x1030] sm:$0xff] }
 0x495   : > { %1823 = vmatpush2.msra.mxu1 %v1784_v35  ;;  %v1949_v35 = vld [vmem:[#allocation2 + $0x1028] sm:$0xff] }
 0x496   : > { %1824 = vmatprep.subr.mxu1 %v1783_v36  ;;  %v1948_v36 = vld [vmem:[#allocation2 + $0x1020] sm:$0xff] }
 0x497   : > { %1825 = vmatpush2.msra.mxu1 %v1782_v37  ;;  %v1947_v37 = vld [vmem:[#allocation2 + $0x1018] sm:$0xff] }
 0x498   : > { %1826 = vmatprep.subr.mxu1 %v1781_v14  ;;  %v1946_v14 = vld [vmem:[#allocation2 + $0x1010] sm:$0xff] }
 0x499   : > { %1827 = vmatpush2.msra.mxu1 %v1780_v15  ;;  %v1945_v15 = vld [vmem:[#allocation2 + $0x1008] sm:$0xff] }
 0x49a   : > { %1828 = vmatprep.subr.mxu1 %v1779_v38  ;;  %v1944_v38 = vld [vmem:[#allocation2 + $0x1000] sm:$0xff] }
 0x49b   : > { %1829 = vmatpush2.msra.mxu1 %v1778_v39  ;;  %v2007_v39 = vld [vmem:[#allocation2 + $0x11f8] sm:$0xff] }
 0x49c   : > { %1830 = vmatprep.subr.mxu1 %v1777_v40  ;;  %v2006_v40 = vld [vmem:[#allocation2 + $0x11f0] sm:$0xff] }
 0x49d   : > { %1831 = vmatpush2.msra.mxu1 %v1776_v56  ;;  %v2005_v56 = vld [vmem:[#allocation2 + $0x11e8] sm:$0xff] }
 0x49e   : > { %1832 = vmatprep.subr.mxu1 %v1775_v41  ;;  %v2004_v41 = vld [vmem:[#allocation2 + $0x11e0] sm:$0xff] }
 0x49f   : > { %1833 = vmatpush2.msra.mxu1 %v1774_v42  ;;  %v2003_v42 = vld [vmem:[#allocation2 + $0x11d8] sm:$0xff] }
 0x4a0   : > { %1834 = vmatprep.subr.mxu1 %v1773_v44  ;;  %v2002_v44 = vld [vmem:[#allocation2 + $0x11d0] sm:$0xff] }
 0x4a1   : > { %1835 = vmatpush2.msra.mxu1 %v1772_v45  ;;  %v2001_v45 = vld [vmem:[#allocation2 + $0x11c8] sm:$0xff] }
 0x4a2   : > { %1836 = vmatprep.subr.mxu1 %v1771_v46  ;;  %v2000_v46 = vld [vmem:[#allocation2 + $0x11c0] sm:$0xff] }
 0x4a3   : > { %1837 = vmatpush2.msra.mxu1 %v1770_v47  ;;  %v1999_v47 = vld [vmem:[#allocation2 + $0x11b8] sm:$0xff] }
 0x4a4   : > { %1838 = vmatprep.subr.mxu1 %v1769_v48  ;;  %v1998_v48 = vld [vmem:[#allocation2 + $0x11b0] sm:$0xff] }
 0x4a5   : > { %1839 = vmatpush2.msra.mxu1 %v1768_v49  ;;  %v1997_v49 = vld [vmem:[#allocation2 + $0x11a8] sm:$0xff] }
 0x4a6   : > { %1840 = vmatprep.subr.mxu1 %v1767_v50  ;;  %v1996_v50 = vld [vmem:[#allocation2 + $0x11a0] sm:$0xff] }
 0x4a7   : > { %1841 = vmatpush2.msra.mxu1 %v1766_v51  ;;  %v1995_v51 = vld [vmem:[#allocation2 + $0x1198] sm:$0xff] }
 0x4a8   : > { %1842 = vmatprep.subr.mxu1 %v1765_v52  ;;  %v1994_v52 = vld [vmem:[#allocation2 + $0x1190] sm:$0xff] }
 0x4a9   : > { %1843 = vmatpush2.msra.mxu1 %v1764_v54  ;;  %v1993_v54 = vld [vmem:[#allocation2 + $0x1188] sm:$0xff] }
 0x4aa   : > { %1844 = vmatprep.subr.mxu1 %v1763_v57  ;;  %v1992_v57 = vld [vmem:[#allocation2 + $0x1180] sm:$0xff] }
 0x4ab   : > { %1845 = vmatpush2.msra.mxu1 %v1762_v58  ;;  %v1991_v58 = vld [vmem:[#allocation2 + $0x1178] sm:$0xff] }
 0x4ac   : > { %1846 = vmatprep.subr.mxu1 %v1761_v59  ;;  %v1990_v59 = vld [vmem:[#allocation2 + $0x1170] sm:$0xff] }
 0x4ad   : > { %1847 = vmatpush2.msra.mxu1 %v1760_v32  ;;  %v1989_v32 = vld [vmem:[#allocation2 + $0x1168] sm:$0xff] }
 0x4ae   : > { %1848 = vmatprep.subr.mxu1 %v1759_v34  ;;  %v1988_v34 = vld [vmem:[#allocation2 + $0x1160] sm:$0xff] }
 0x4af   : > { %1849 = vmatpush2.msra.mxu1 %v1758_v60  ;;  %v1987_v60 = vld [vmem:[#allocation2 + $0x1158] sm:$0xff] }
 0x4b0   : > { %1850 = vmatprep.subr.mxu1 %v1757_v61  ;;  %v1986_v61 = vld [vmem:[#allocation2 + $0x1150] sm:$0xff] }
 0x4b1   : > { %1851 = vmatpush2.msra.mxu1 %v1756_v62  ;;  %v1985_v62 = vld [vmem:[#allocation2 + $0x1148] sm:$0xff] }
 0x4b2   : > { %1853 = vmatmul.mubr.f32.vlgmr.msra.gmra.mxu1 %v6275_v43 }
 0x4b3   : > { %2154 = vmatprep.mubr.f32.mxu1 %v6114_v2 }
 0x532   : > { %v1716_v0 = vpop.f32.mrf.mxu1 }
 0x533   : > { %v6295_v1 = vadd.f32 %v1716_v0, %v6281_v53  ;;  %v1972_v53 = vld [vmem:[#allocation2 + $0x10e0] sm:$0xff] }
 0x534   : > { %v1718_v3 = vpop.f32.mrf.mxu1  ;;  %v1984_v0 = vld [vmem:[#allocation2 + $0x1140] sm:$0xff] }
 0x535   : > { %v6298_v4 = vadd.f32 %v1718_v3, %v6283_v55  ;;  %v1971_v55 = vld [vmem:[#allocation2 + $0x10d8] sm:$0xff] }
 0x536   : > { %v1983_v3 = vld [vmem:[#allocation2 + $0x1138] sm:$0xff] }
 0x572   : > { %v1854_v5 = vpop.f32.mrf.mxu1 }
 0x574   : > { %v1856_v6 = vpop.f32.mrf.mxu1 }
 0x575   : > { %4941 = vmatprep.subr.msk.mxu0 %vm603_vm0, %v1856_v6  ;;  %v1981_v6 = vld [vmem:[#allocation2 + $0x1128] sm:$0xff] }
 0x576   : > { %4942 = vmatpush1.msk.msra.mxu0 %vm603_vm0, %v1854_v5  ;;  %v1982_v5 = vld [vmem:[#allocation2 + $0x1130] sm:$0xff] }
 0x577   : > { %4943 = vmatmul.mubr.msk.f32.vlgmr.msra.gmra.mxu0 %vm599_vm1, %v4940_v7  ;;  %2008 = vmatprep.subr.mxu0 %v1975_v8  ;;  %v1980_v7 = vld [vmem:[#allocation2 + $0x1120] sm:$0xff]  ;;  %v1979_v8 = vld [vmem:[#allocation2 + $0x1118] sm:$0xff] }
 0x578   : > { %2009 = vmatpush1.msra.mxu0 %v1974_v9  ;;  %2072 = vmatprep.mubr.f32.mxu0 %v6206_v63  ;;  %v1961_v63 = vld [vmem:[#allocation2 + $0x1088] sm:$0xff]  ;;  %v1978_v9 = vld [vmem:[#allocation2 + $0x1110] sm:$0xff] }
 0x579   : > { %2010 = vmatprep.subr.mxu0 %v1973_v10  ;;  %v1977_v10 = vld [vmem:[#allocation2 + $0x1108] sm:$0xff] }
 0x57a   : > { %2011 = vmatpush1.msra.mxu0 %v1972_v53  ;;  %v1976_v53 = vld [vmem:[#allocation2 + $0x1100] sm:$0xff] }
 0x57b   : > { %2012 = vmatprep.subr.mxu0 %v1971_v55  ;;  %v5049_v55 = vld [vmem:[#allocation2 + $0x2f8] sm:$0xff] }
 0x57c   : > { %2013 = vmatpush1.msra.mxu0 %v1970_v11  ;;  %v5050_v11 = vld [vmem:[#allocation2 + $0x2f0] sm:$0xff] }
 0x57d   : > { %2014 = vmatprep.subr.mxu0 %v1969_v12  ;;  %v5051_v12 = vld [vmem:[#allocation2 + $0x2e8] sm:$0xff] }
 0x57e   : > { %2015 = vmatpush1.msra.mxu0 %v1968_v13  ;;  %v5052_v13 = vld [vmem:[#allocation2 + $0x2e0] sm:$0xff] }
 0x57f   : > { %2016 = vmatprep.subr.mxu0 %v1967_v16  ;;  %v5053_v16 = vld [vmem:[#allocation2 + $0x2d8] sm:$0xff] }
 0x580   : > { %2017 = vmatpush1.msra.mxu0 %v1966_v17  ;;  %v5054_v17 = vld [vmem:[#allocation2 + $0x2d0] sm:$0xff] }
 0x581   : > { %2018 = vmatprep.subr.mxu0 %v1965_v18  ;;  %v5055_v18 = vld [vmem:[#allocation2 + $0x2c8] sm:$0xff] }
 0x582   : > { %2019 = vmatpush1.msra.mxu0 %v1964_v19  ;;  %v5056_v19 = vld [vmem:[#allocation2 + $0x2c0] sm:$0xff] }
 0x583   : > { %2020 = vmatprep.subr.mxu0 %v1963_v20  ;;  %v5057_v20 = vld [vmem:[#allocation2 + $0x2b8] sm:$0xff] }
 0x584   : > { %2021 = vmatpush1.msra.mxu0 %v1962_v21  ;;  %v5058_v21 = vld [vmem:[#allocation2 + $0x2b0] sm:$0xff] }
 0x585   : > { %2022 = vmatprep.subr.mxu0 %v1961_v63  ;;  %v5060_v63 = vld [vmem:[#allocation2 + $0x2a0] sm:$0xff] }
 0x586   : > { %2023 = vmatpush1.msra.mxu0 %v1960_v22  ;;  %v5061_v22 = vld [vmem:[#allocation2 + $0x298] sm:$0xff] }
 0x587   : > { %2024 = vmatprep.subr.mxu0 %v1959_v23  ;;  %v5062_v23 = vld [vmem:[#allocation2 + $0x290] sm:$0xff] }
 0x588   : > { %2025 = vmatpush1.msra.mxu0 %v1958_v24  ;;  %v5063_v24 = vld [vmem:[#allocation2 + $0x288] sm:$0xff] }
 0x589   : > { %2026 = vmatprep.subr.mxu0 %v1957_v25  ;;  %v5064_v25 = vld [vmem:[#allocation2 + $0x280] sm:$0xff] }
 0x58a   : > { %2027 = vmatpush1.msra.mxu0 %v1956_v26  ;;  %v5065_v26 = vld [vmem:[#allocation2 + $0x278] sm:$0xff] }
 0x58b   : > { %2028 = vmatprep.subr.mxu0 %v1955_v27  ;;  %v5066_v27 = vld [vmem:[#allocation2 + $0x270] sm:$0xff] }
 0x58c   : > { %2029 = vmatpush1.msra.mxu0 %v1954_v28  ;;  %v5067_v28 = vld [vmem:[#allocation2 + $0x268] sm:$0xff] }
 0x58d   : > { %2030 = vmatprep.subr.mxu0 %v1953_v29  ;;  %v5068_v29 = vld [vmem:[#allocation2 + $0x260] sm:$0xff] }
 0x58e   : > { %2031 = vmatpush1.msra.mxu0 %v1952_v30  ;;  %v5069_v30 = vld [vmem:[#allocation2 + $0x258] sm:$0xff] }
 0x58f   : > { %2032 = vmatprep.subr.mxu0 %v1951_v31  ;;  %v5070_v31 = vld [vmem:[#allocation2 + $0x250] sm:$0xff] }
 0x590   : > { %2033 = vmatpush1.msra.mxu0 %v1950_v33  ;;  %v5071_v33 = vld [vmem:[#allocation2 + $0x248] sm:$0xff] }
 0x591   : > { %2034 = vmatprep.subr.mxu0 %v1949_v35  ;;  %v5072_v35 = vld [vmem:[#allocation2 + $0x240] sm:$0xff] }
 0x592   : > { %2035 = vmatpush1.msra.mxu0 %v1948_v36  ;;  %v5073_v36 = vld [vmem:[#allocation2 + $0x238] sm:$0xff] }
 0x593   : > { %2036 = vmatprep.subr.mxu0 %v1947_v37  ;;  %v5074_v37 = vld [vmem:[#allocation2 + $0x230] sm:$0xff] }
 0x594   : > { %2037 = vmatpush1.msra.mxu0 %v1946_v14  ;;  %v5075_v14 = vld [vmem:[#allocation2 + $0x228] sm:$0xff] }
 0x595   : > { %2038 = vmatprep.subr.mxu0 %v1945_v15  ;;  %v5076_v15 = vld [vmem:[#allocation2 + $0x220] sm:$0xff] }
 0x596   : > { %2039 = vmatpush1.msra.mxu0 %v1944_v38  ;;  %v5077_v38 = vld [vmem:[#allocation2 + $0x218] sm:$0xff] }
 0x597   : > { %2040 = vmatprep.subr.mxu0 %v2007_v39  ;;  %v5078_v39 = vld [vmem:[#allocation2 + $0x210] sm:$0xff] }
 0x598   : > { %2041 = vmatpush2.msra.mxu0 %v2006_v40  ;;  %v5079_v40 = vld [vmem:[#allocation2 + $0x208] sm:$0xff] }
 0x599   : > { %2042 = vmatprep.subr.mxu0 %v2005_v56  ;;  %v5080_v56 = vld [vmem:[#allocation2 + $0x200] sm:$0xff] }
 0x59a   : > { %2043 = vmatpush2.msra.mxu0 %v2004_v41  ;;  %v5081_v41 = vld [vmem:[#allocation2 + $0x3f8] sm:$0xff] }
 0x59b   : > { %2044 = vmatprep.subr.mxu0 %v2003_v42  ;;  %v5082_v42 = vld [vmem:[#allocation2 + $0x3f0] sm:$0xff] }
 0x59c   : > { %2045 = vmatpush2.msra.mxu0 %v2002_v44  ;;  %v5083_v44 = vld [vmem:[#allocation2 + $0x3e8] sm:$0xff] }
 0x59d   : > { %2046 = vmatprep.subr.mxu0 %v2001_v45  ;;  %v5084_v45 = vld [vmem:[#allocation2 + $0x3e0] sm:$0xff] }
 0x59e   : > { %2047 = vmatpush2.msra.mxu0 %v2000_v46  ;;  %v5085_v46 = vld [vmem:[#allocation2 + $0x3d8] sm:$0xff] }
 0x59f   : > { %2048 = vmatprep.subr.mxu0 %v1999_v47  ;;  %v5086_v47 = vld [vmem:[#allocation2 + $0x3d0] sm:$0xff] }
 0x5a0   : > { %2049 = vmatpush2.msra.mxu0 %v1998_v48  ;;  %v5087_v48 = vld [vmem:[#allocation2 + $0x3c8] sm:$0xff] }
 0x5a1   : > { %2050 = vmatprep.subr.mxu0 %v1997_v49  ;;  %v5088_v49 = vld [vmem:[#allocation2 + $0x3c0] sm:$0xff] }
 0x5a2   : > { %2051 = vmatpush2.msra.mxu0 %v1996_v50  ;;  %v5089_v50 = vld [vmem:[#allocation2 + $0x3b8] sm:$0xff] }
 0x5a3   : > { %2052 = vmatprep.subr.mxu0 %v1995_v51  ;;  %v5090_v51 = vld [vmem:[#allocation2 + $0x3b0] sm:$0xff] }
 0x5a4   : > { %2053 = vmatpush2.msra.mxu0 %v1994_v52  ;;  %v5091_v52 = vld [vmem:[#allocation2 + $0x3a8] sm:$0xff] }
 0x5a5   : > { %2054 = vmatprep.subr.mxu0 %v1993_v54  ;;  %v5092_v54 = vld [vmem:[#allocation2 + $0x3a0] sm:$0xff] }
 0x5a6   : > { %2055 = vmatpush2.msra.mxu0 %v1992_v57  ;;  %v5093_v57 = vld [vmem:[#allocation2 + $0x398] sm:$0xff] }
 0x5a7   : > { %2056 = vmatprep.subr.mxu0 %v1991_v58  ;;  %v5094_v58 = vld [vmem:[#allocation2 + $0x390] sm:$0xff] }
 0x5a8   : > { %2057 = vmatpush2.msra.mxu0 %v1990_v59  ;;  %v5095_v59 = vld [vmem:[#allocation2 + $0x388] sm:$0xff] }
 0x5a9   : > { %2058 = vmatprep.subr.mxu0 %v1989_v32  ;;  %v5096_v32 = vld [vmem:[#allocation2 + $0x380] sm:$0xff] }
 0x5aa   : > { %2059 = vmatpush2.msra.mxu0 %v1988_v34  ;;  %v5097_v34 = vld [vmem:[#allocation2 + $0x378] sm:$0xff] }
 0x5ab   : > { %2060 = vmatprep.subr.mxu0 %v1987_v60  ;;  %v5098_v60 = vld [vmem:[#allocation2 + $0x370] sm:$0xff] }
 0x5ac   : > { %2061 = vmatpush2.msra.mxu0 %v1986_v61  ;;  %v5099_v61 = vld [vmem:[#allocation2 + $0x368] sm:$0xff] }
 0x5ad   : > { %2062 = vmatprep.subr.mxu0 %v1985_v62  ;;  %v5100_v62 = vld [vmem:[#allocation2 + $0x360] sm:$0xff] }
 0x5ae   : > { %2063 = vmatpush2.msra.mxu0 %v1984_v0  ;;  %v5101_v0 = vld [vmem:[#allocation2 + $0x358] sm:$0xff] }
 0x5af   : > { %2064 = vmatprep.subr.mxu0 %v1983_v3  ;;  %v5102_v3 = vld [vmem:[#allocation2 + $0x350] sm:$0xff] }
 0x5b0   : > { %2065 = vmatpush2.msra.mxu0 %v1982_v5  ;;  %v5103_v5 = vld [vmem:[#allocation2 + $0x348] sm:$0xff] }
 0x5b1   : > { %2066 = vmatprep.subr.mxu0 %v1981_v6  ;;  %v5104_v6 = vld [vmem:[#allocation2 + $0x340] sm:$0xff] }
 0x5b2   : > { %2067 = vmatpush2.msra.mxu0 %v1980_v7  ;;  %v5105_v7 = vld [vmem:[#allocation2 + $0x338] sm:$0xff] }
 0x5b3   : > { %2068 = vmatprep.subr.mxu0 %v1979_v8  ;;  %v5106_v8 = vld [vmem:[#allocation2 + $0x330] sm:$0xff] }
 0x5b4   : > { %2069 = vmatpush2.msra.mxu0 %v1978_v9  ;;  %v5107_v9 = vld [vmem:[#allocation2 + $0x328] sm:$0xff] }
 0x5b5   : > { %2070 = vmatprep.subr.mxu0 %v1977_v10  ;;  %v5108_v10 = vld [vmem:[#allocation2 + $0x320] sm:$0xff] }
 0x5b6   : > { %2071 = vmatpush2.msra.mxu0 %v1976_v53  ;;  %v5109_v53 = vld [vmem:[#allocation2 + $0x318] sm:$0xff] }
 0x5b7   : > { %2073 = vmatmul.mubr.f32.vlgmr.msra.gmra.mxu0 %v6275_v43  ;;  %2245 = vmatprep.subr.mxu0 %v5049_v55  ;;  %v5059_v43 = vld [vmem:[#allocation2 + $0x2a8] sm:$0xff]  ;;  %v5110_v55 = vld [vmem:[#allocation2 + $0x310] sm:$0xff] }
 0x5b8   : > { %2246 = vmatpush1.msra.mxu0 %v5050_v11  ;;  %v5111_v11 = vld [vmem:[#allocation2 + $0x308] sm:$0xff] }
 0x5b9   : > { %2247 = vmatprep.subr.mxu0 %v5051_v12  ;;  %v5112_v12 = vld [vmem:[#allocation2 + $0x300] sm:$0xff] }
 0x5ba   : > { %2248 = vmatpush1.msra.mxu0 %v5052_v13  ;;  %v2163_v13 = vld [vmem:[%s6565_s3] sm:$0x3f] }
 0x5bb   : > { %2249 = vmatprep.subr.mxu0 %v5053_v16  ;;  %v6115_v16 = vmov 0  }
 0x5bc   : > { %2250 = vmatpush1.msra.mxu0 %v5054_v17  ;;  %5045 = vset.pattern.permute.xlu0 %v6115_v16  ;;  %v3494_v17 = vld [vmem:[%s6567_s5] sm:$0x3f] }
 0x5bd   : > { %2251 = vmatprep.subr.mxu0 %v5055_v18  ;;  %5046 = vset.pattern.permute.xlu1 %v6115_v16  ;;  %v5167_v16 = vld [vmem:[#allocation2 + $0x148] sm:$0xff] }
 0x5be   : > { %2252 = vmatpush1.msra.mxu0 %v5056_v19  ;;  %2166 = vperm.xlu0 %5045, %v2163_v13   ;;  %v5166_v13 = vld [vmem:[#allocation2 + $0x150] sm:$0xff] }
 0x5bf   : > { %2253 = vmatprep.subr.mxu0 %v5057_v20 }
 0x5c0   : > { %2254 = vmatpush1.msra.mxu0 %v5058_v21 }
 0x5c1   : > { %2255 = vmatprep.subr.mxu0 %v5059_v43 }
 0x5c2   : > { %2256 = vmatpush1.msra.mxu0 %v5060_v63  ;;  %3497 = vperm.xlu0 %5045, %v3494_v17   ;;  %v5168_v17 = vld [vmem:[#allocation2 + $0x140] sm:$0xff] }
 0x5c3   : > { %2257 = vmatprep.subr.mxu0 %v5061_v22  ;;  %v4944_v22 = vld [vmem:[%s6564_s2 + $0x40] sm:$0x3f] }
 0x5c4   : > { %2258 = vmatpush1.msra.mxu0 %v5062_v23  ;;  %v5113_v23 = vld [vmem:[#allocation2 + $0xf8] sm:$0xff] }
 0x5c5   : > { %2259 = vmatprep.subr.mxu0 %v5063_v24  ;;  %v5115_v24 = vld [vmem:[#allocation2 + $0xe8] sm:$0xff] }
 0x5c6   : > { %2260 = vmatpush1.msra.mxu0 %v5064_v25  ;;  %v5117_v25 = vld [vmem:[#allocation2 + $0xd8] sm:$0xff] }
 0x5c7   : > { %2261 = vmatprep.subr.mxu0 %v5065_v26  ;;  %v5118_v26 = vld [vmem:[#allocation2 + $0xd0] sm:$0xff] }
 0x5c8   : > { %2262 = vmatpush1.msra.mxu0 %v5066_v27  ;;  %v5119_v27 = vld [vmem:[#allocation2 + $0xc8] sm:$0xff] }
 0x5c9   : > { %2263 = vmatprep.subr.mxu0 %v5067_v28  ;;  %v5120_v28 = vld [vmem:[#allocation2 + $0xc0] sm:$0xff] }
 0x5ca   : > { %2264 = vmatpush1.msra.mxu0 %v5068_v29  ;;  %v5121_v29 = vld [vmem:[#allocation2 + $0xb8] sm:$0xff] }
 0x5cb   : > { %2265 = vmatprep.subr.mxu0 %v5069_v30  ;;  %v5122_v30 = vld [vmem:[#allocation2 + $0xb0] sm:$0xff] }
 0x5cc   : > { %2266 = vmatpush1.msra.mxu0 %v5070_v31  ;;  %v5123_v31 = vld [vmem:[#allocation2 + $0xa8] sm:$0xff] }
 0x5cd   : > { %2267 = vmatprep.subr.mxu0 %v5071_v33  ;;  %v5124_v33 = vld [vmem:[#allocation2 + $0xa0] sm:$0xff] }
 0x5ce   : > { %2268 = vmatpush1.msra.mxu0 %v5072_v35  ;;  %v5125_v35 = vld [vmem:[#allocation2 + $0x98] sm:$0xff] }
 0x5cf   : > { %2269 = vmatprep.subr.mxu0 %v5073_v36  ;;  %v5126_v36 = vld [vmem:[#allocation2 + $0x90] sm:$0xff] }
 0x5d0   : > { %2270 = vmatpush1.msra.mxu0 %v5074_v37  ;;  %v5127_v37 = vld [vmem:[#allocation2 + $0x88] sm:$0xff] }
 0x5d1   : > { %2271 = vmatprep.subr.mxu0 %v5075_v14  ;;  %v5128_v14 = vld [vmem:[#allocation2 + $0x80] sm:$0xff] }
 0x5d2   : > { %2272 = vmatpush1.msra.mxu0 %v5076_v15  ;;  %v5129_v15 = vld [vmem:[#allocation2 + $0x78] sm:$0xff] }
 0x5d3   : > { %2273 = vmatprep.subr.mxu0 %v5077_v38  ;;  %v5130_v38 = vld [vmem:[#allocation2 + $0x70] sm:$0xff] }
 0x5d4   : > { %2274 = vmatpush1.msra.mxu0 %v5078_v39  ;;  %v5131_v39 = vld [vmem:[#allocation2 + $0x68] sm:$0xff] }
 0x5d5   : > { %2275 = vmatprep.subr.mxu0 %v5079_v40  ;;  %v5132_v40 = vld [vmem:[#allocation2 + $0x60] sm:$0xff] }
 0x5d6   : > { %2276 = vmatpush1.msra.mxu0 %v5080_v56  ;;  %v5133_v56 = vld [vmem:[#allocation2 + $0x58] sm:$0xff] }
 0x5d7   : > { %2277 = vmatprep.subr.mxu0 %v5081_v41  ;;  %v5134_v41 = vld [vmem:[#allocation2 + $0x50] sm:$0xff] }
 0x5d8   : > { %2278 = vmatpush2.msra.mxu0 %v5082_v42  ;;  %v5135_v42 = vld [vmem:[#allocation2 + $0x48] sm:$0xff] }
 0x5d9   : > { %2279 = vmatprep.subr.mxu0 %v5083_v44  ;;  %v5136_v44 = vld [vmem:[#allocation2 + $0x40] sm:$0xff] }
 0x5da   : > { %2280 = vmatpush2.msra.mxu0 %v5084_v45  ;;  %v5137_v45 = vld [vmem:[#allocation2 + $0x38] sm:$0xff] }
 0x5db   : > { %2281 = vmatprep.subr.mxu0 %v5085_v46  ;;  %v5138_v46 = vld [vmem:[#allocation2 + $0x30] sm:$0xff] }
 0x5dc   : > { %2282 = vmatpush2.msra.mxu0 %v5086_v47  ;;  %v5139_v47 = vld [vmem:[#allocation2 + $0x28] sm:$0xff] }
 0x5dd   : > { %2283 = vmatprep.subr.mxu0 %v5087_v48  ;;  %v5140_v48 = vld [vmem:[#allocation2 + $0x20] sm:$0xff] }
 0x5de   : > { %2284 = vmatpush2.msra.mxu0 %v5088_v49  ;;  %v5141_v49 = vld [vmem:[#allocation2 + $0x18] sm:$0xff] }
 0x5df   : > { %2285 = vmatprep.subr.mxu0 %v5089_v50  ;;  %v5142_v50 = vld [vmem:[#allocation2 + $0x10] sm:$0xff] }
 0x5e0   : > { %2286 = vmatpush2.msra.mxu0 %v5090_v51  ;;  %v5143_v51 = vld [vmem:[#allocation2 + $0x8] sm:$0xff] }
 0x5e1   : > { %2287 = vmatprep.subr.mxu0 %v5091_v52  ;;  %v5144_v52 = vld [vmem:[#allocation2] sm:$0xff] }
 0x5e2   : > { %2288 = vmatpush2.msra.mxu0 %v5092_v54  ;;  %v5145_v54 = vld [vmem:[#allocation2 + $0x1f8] sm:$0xff] }
 0x5e3   : > { %2289 = vmatprep.subr.mxu0 %v5093_v57  ;;  %v5146_v57 = vld [vmem:[#allocation2 + $0x1f0] sm:$0xff] }
 0x5e4   : > { %2290 = vmatpush2.msra.mxu0 %v5094_v58  ;;  %v5147_v58 = vld [vmem:[#allocation2 + $0x1e8] sm:$0xff] }
 0x5e5   : > { %2291 = vmatprep.subr.mxu0 %v5095_v59  ;;  %v5148_v59 = vld [vmem:[#allocation2 + $0x1e0] sm:$0xff] }
 0x5e6   : > { %2292 = vmatpush2.msra.mxu0 %v5096_v32  ;;  %v5149_v32 = vld [vmem:[#allocation2 + $0x1d8] sm:$0xff] }
 0x5e7   : > { %2293 = vmatprep.subr.mxu0 %v5097_v34  ;;  %v5150_v34 = vld [vmem:[#allocation2 + $0x1d0] sm:$0xff] }
 0x5e8   : > { %2294 = vmatpush2.msra.mxu0 %v5098_v60  ;;  %v5151_v60 = vld [vmem:[#allocation2 + $0x1c8] sm:$0xff] }
 0x5e9   : > { %2295 = vmatprep.subr.mxu0 %v5099_v61  ;;  %v5152_v61 = vld [vmem:[#allocation2 + $0x1c0] sm:$0xff] }
 0x5ea   : > { %2296 = vmatpush2.msra.mxu0 %v5100_v62  ;;  %v5153_v62 = vld [vmem:[#allocation2 + $0x1b8] sm:$0xff] }
 0x5eb   : > { %2297 = vmatprep.subr.mxu0 %v5101_v0  ;;  %v5154_v0 = vld [vmem:[#allocation2 + $0x1b0] sm:$0xff] }
 0x5ec   : > { %2298 = vmatpush2.msra.mxu0 %v5102_v3  ;;  %v5155_v3 = vld [vmem:[#allocation2 + $0x1a8] sm:$0xff] }
 0x5ed   : > { %2299 = vmatprep.subr.mxu0 %v5103_v5  ;;  %v5156_v5 = vld [vmem:[#allocation2 + $0x1a0] sm:$0xff] }
 0x5ee   : > { %2300 = vmatpush2.msra.mxu0 %v5104_v6  ;;  %v5157_v6 = vld [vmem:[#allocation2 + $0x198] sm:$0xff] }
 0x5ef   : > { %2301 = vmatprep.subr.mxu0 %v5105_v7  ;;  %v5158_v7 = vld [vmem:[#allocation2 + $0x190] sm:$0xff] }
 0x5f0   : > { %2302 = vmatpush2.msra.mxu0 %v5106_v8  ;;  %v5159_v8 = vld [vmem:[#allocation2 + $0x188] sm:$0xff] }
 0x5f1   : > { %2303 = vmatprep.subr.mxu0 %v5107_v9  ;;  %v5160_v9 = vld [vmem:[#allocation2 + $0x180] sm:$0xff] }
 0x5f2   : > { %2304 = vmatpush2.msra.mxu0 %v5108_v10  ;;  %v5161_v10 = vld [vmem:[#allocation2 + $0x178] sm:$0xff] }
 0x5f3   : > { %2305 = vmatprep.subr.mxu0 %v5109_v53  ;;  %v5162_v53 = vld [vmem:[#allocation2 + $0x170] sm:$0xff] }
 0x5f4   : > { %2306 = vmatpush2.msra.mxu0 %v5110_v55  ;;  %v5163_v55 = vld [vmem:[#allocation2 + $0x168] sm:$0xff] }
 0x5f5   : > { %2307 = vmatprep.subr.mxu0 %v5111_v11  ;;  %v5164_v11 = vld [vmem:[#allocation2 + $0x160] sm:$0xff] }
 0x5f6   : > { %2308 = vmatpush2.msra.mxu0 %v5112_v12  ;;  %v5165_v12 = vld [vmem:[#allocation2 + $0x158] sm:$0xff] }
 0x637   : > { %v1936_v18 = vpop.f32.mrf.mxu0 }
 0x638   : > { %v6315_v19 = vadd.f32 %v1936_v18, %v6295_v1  ;;  %v5114_v1 = vld [vmem:[#allocation2 + $0xf0] sm:$0xff]  ;;  %v5169_v18 = vld [vmem:[#allocation2 + $0x138] sm:$0xff] }
 0x639   : > { %v1938_v20 = vpop.f32.mrf.mxu0 }
 0x63a   : > { %v6318_v21 = vadd.f32 %v1938_v20, %v6298_v4  ;;  %v5116_v4 = vld [vmem:[#allocation2 + $0xe0] sm:$0xff]  ;;  %v5170_v20 = vld [vmem:[#allocation2 + $0x130] sm:$0xff] }
 0x677   : > { %v2074_v43 = vpop.f32.mrf.mxu0 }
 0x679   : > { %v2076_v63 = vpop.f32.mrf.mxu0 }
 0x67a   : > { %4945 = vmatprep.subr.msk.mxu1 %vm603_vm0, %v2076_v63  ;;  %v5172_v63 = vld [vmem:[#allocation2 + $0x120] sm:$0xff] }
 0x67b   : > { %4946 = vmatpush1.msk.msra.mxu1 %vm603_vm0, %v2074_v43  ;;  %v5171_v43 = vld [vmem:[#allocation2 + $0x128] sm:$0xff] }
 0x67c   : > { %4947 = vmatmul.mubr.msk.f32.vlgmr.msra.gmra.mxu1 %vm599_vm1, %v4944_v22  ;;  %2173 = vmatprep.subr.mxu1 %v5113_v23  ;;  %v5173_v22 = vld [vmem:[#allocation2 + $0x118] sm:$0xff]  ;;  %v5174_v23 = vld [vmem:[#allocation2 + $0x110] sm:$0xff] }
 0x67d   : > { %2174 = vmatpush1.msra.mxu1 %v5114_v1  ;;  %v5175_v1 = vld [vmem:[#allocation2 + $0x108] sm:$0xff] }
 0x67e   : > { %2175 = vmatprep.subr.mxu1 %v5115_v24  ;;  %v5176_v24 = vld [vmem:[#allocation2 + $0x100] sm:$0xff] }
 0x67f   : > { %2176 = vmatpush1.msra.mxu1 %v5116_v4 }
 0x680   : > { %2177 = vmatprep.subr.mxu1 %v5117_v25 }
 0x681   : > { %2178 = vmatpush1.msra.mxu1 %v5118_v26 }
 0x682   : > { %2179 = vmatprep.subr.mxu1 %v5119_v27  ;;  %v2167_v27 = vpop.permute.xlu0 %2166 }
 0x683   : > { %2180 = vmatpush1.msra.mxu1 %v5120_v28 }
 0x684   : > { %2181 = vmatprep.subr.mxu1 %v5121_v29 }
 0x685   : > { %2182 = vmatpush1.msra.mxu1 %v5122_v30 }
 0x686   : > { %2183 = vmatprep.subr.mxu1 %v5123_v31 }
 0x687   : > { %2184 = vmatpush1.msra.mxu1 %v5124_v33 }
 0x688   : > { %2185 = vmatprep.subr.mxu1 %v5125_v35 }
 0x689   : > { %2186 = vmatpush1.msra.mxu1 %v5126_v36 }
 0x68a   : > { %2187 = vmatprep.subr.mxu1 %v5127_v37  ;;  %v4948_v37 = vld [vmem:[%s6566_s4 + $0x8] sm:$0x3f] }
 0x68b   : > { %2188 = vmatpush1.msra.mxu1 %v5128_v14  ;;  %v2244_v14 = vld [vmem:[%s6566_s4] sm:$0x3f] }
 0x68c   : > { %2189 = vmatprep.subr.mxu1 %v5129_v15  ;;  %v5177_v15 = vld [vmem:[#allocation2 + $0x4f8] sm:$0xff] }
 0x68d   : > { %2190 = vmatpush1.msra.mxu1 %v5130_v38  ;;  %v5178_v38 = vld [vmem:[#allocation2 + $0x4f0] sm:$0xff] }
 0x68e   : > { %2191 = vmatprep.subr.mxu1 %v5131_v39  ;;  %v5179_v39 = vld [vmem:[#allocation2 + $0x4e8] sm:$0xff] }
 0x68f   : > { %2192 = vmatpush1.msra.mxu1 %v5132_v40  ;;  %v5180_v40 = vld [vmem:[#allocation2 + $0x4e0] sm:$0xff] }
 0x690   : > { %2193 = vmatprep.subr.mxu1 %v5133_v56  ;;  %v5181_v56 = vld [vmem:[#allocation2 + $0x4d8] sm:$0xff] }
 0x691   : > { %2194 = vmatpush1.msra.mxu1 %v5134_v41  ;;  %v5182_v41 = vld [vmem:[#allocation2 + $0x4d0] sm:$0xff] }
 0x692   : > { %2195 = vmatprep.subr.mxu1 %v5135_v42  ;;  %v5183_v42 = vld [vmem:[#allocation2 + $0x4c8] sm:$0xff] }
 0x693   : > { %2196 = vmatpush1.msra.mxu1 %v5136_v44  ;;  %v5184_v44 = vld [vmem:[#allocation2 + $0x4c0] sm:$0xff] }
 0x694   : > { %2197 = vmatprep.subr.mxu1 %v5137_v45  ;;  %v5185_v45 = vld [vmem:[#allocation2 + $0x4b8] sm:$0xff] }
 0x695   : > { %2198 = vmatpush1.msra.mxu1 %v5138_v46  ;;  %v5186_v46 = vld [vmem:[#allocation2 + $0x4b0] sm:$0xff] }
 0x696   : > { %2199 = vmatprep.subr.mxu1 %v5139_v47  ;;  %v5187_v47 = vld [vmem:[#allocation2 + $0x4a8] sm:$0xff] }
 0x697   : > { %2200 = vmatpush1.msra.mxu1 %v5140_v48  ;;  %v5188_v48 = vld [vmem:[#allocation2 + $0x4a0] sm:$0xff] }
 0x698   : > { %2201 = vmatprep.subr.mxu1 %v5141_v49  ;;  %v5189_v49 = vld [vmem:[#allocation2 + $0x498] sm:$0xff] }
 0x699   : > { %2202 = vmatpush1.msra.mxu1 %v5142_v50  ;;  %v5190_v50 = vld [vmem:[#allocation2 + $0x490] sm:$0xff] }
 0x69a   : > { %2203 = vmatprep.subr.mxu1 %v5143_v51  ;;  %v5191_v51 = vld [vmem:[#allocation2 + $0x488] sm:$0xff] }
 0x69b   : > { %2204 = vmatpush1.msra.mxu1 %v5144_v52  ;;  %v5192_v52 = vld [vmem:[#allocation2 + $0x480] sm:$0xff] }
 0x69c   : > { %2205 = vmatprep.subr.mxu1 %v5145_v54  ;;  %v5193_v54 = vld [vmem:[#allocation2 + $0x478] sm:$0xff] }
 0x69d   : > { %2206 = vmatpush2.msra.mxu1 %v5146_v57  ;;  %v5194_v57 = vld [vmem:[#allocation2 + $0x470] sm:$0xff] }
 0x69e   : > { %2207 = vmatprep.subr.mxu1 %v5147_v58  ;;  %v5195_v58 = vld [vmem:[#allocation2 + $0x468] sm:$0xff] }
 0x69f   : > { %2208 = vmatpush2.msra.mxu1 %v5148_v59  ;;  %v5196_v59 = vld [vmem:[#allocation2 + $0x460] sm:$0xff] }
 0x6a0   : > { %2209 = vmatprep.subr.mxu1 %v5149_v32  ;;  %v5197_v32 = vld [vmem:[#allocation2 + $0x458] sm:$0xff] }
 0x6a1   : > { %2210 = vmatpush2.msra.mxu1 %v5150_v34  ;;  %v5198_v34 = vld [vmem:[#allocation2 + $0x450] sm:$0xff] }
 0x6a2   : > { %2211 = vmatprep.subr.mxu1 %v5151_v60  ;;  %v5199_v60 = vld [vmem:[#allocation2 + $0x448] sm:$0xff] }
 0x6a3   : > { %2212 = vmatpush2.msra.mxu1 %v5152_v61  ;;  %v5200_v61 = vld [vmem:[#allocation2 + $0x440] sm:$0xff] }
 0x6a4   : > { %2213 = vmatprep.subr.mxu1 %v5153_v62  ;;  %v5201_v62 = vld [vmem:[#allocation2 + $0x438] sm:$0xff] }
 0x6a5   : > { %2214 = vmatpush2.msra.mxu1 %v5154_v0  ;;  %v5202_v0 = vld [vmem:[#allocation2 + $0x430] sm:$0xff] }
 0x6a6   : > { %2215 = vmatprep.subr.mxu1 %v5155_v3  ;;  %v5203_v3 = vld [vmem:[#allocation2 + $0x428] sm:$0xff] }
 0x6a7   : > { %2216 = vmatpush2.msra.mxu1 %v5156_v5  ;;  %v5204_v5 = vld [vmem:[#allocation2 + $0x420] sm:$0xff] }
 0x6a8   : > { %2217 = vmatprep.subr.mxu1 %v5157_v6  ;;  %v5205_v6 = vld [vmem:[#allocation2 + $0x418] sm:$0xff] }
 0x6a9   : > { %2218 = vmatpush2.msra.mxu1 %v5158_v7  ;;  %v5206_v7 = vld [vmem:[#allocation2 + $0x410] sm:$0xff] }
 0x6aa   : > { %2219 = vmatprep.subr.mxu1 %v5159_v8  ;;  %v5207_v8 = vld [vmem:[#allocation2 + $0x408] sm:$0xff] }
 0x6ab   : > { %2220 = vmatpush2.msra.mxu1 %v5160_v9  ;;  %v5208_v9 = vld [vmem:[#allocation2 + $0x400] sm:$0xff] }
 0x6ac   : > { %2221 = vmatprep.subr.mxu1 %v5161_v10  ;;  %v5209_v10 = vld [vmem:[#allocation2 + $0x5f8] sm:$0xff] }
 0x6ad   : > { %2222 = vmatpush2.msra.mxu1 %v5162_v53  ;;  %v5210_v53 = vld [vmem:[#allocation2 + $0x5f0] sm:$0xff] }
 0x6ae   : > { %2223 = vmatprep.subr.mxu1 %v5163_v55  ;;  %v5211_v55 = vld [vmem:[#allocation2 + $0x5e8] sm:$0xff] }
 0x6af   : > { %2224 = vmatpush2.msra.mxu1 %v5164_v11  ;;  %v5212_v11 = vld [vmem:[#allocation2 + $0x5e0] sm:$0xff] }
 0x6b0   : > { %2225 = vmatprep.subr.mxu1 %v5165_v12  ;;  %v5213_v12 = vld [vmem:[#allocation2 + $0x5d8] sm:$0xff] }
 0x6b1   : > { %2226 = vmatpush2.msra.mxu1 %v5166_v13  ;;  %v5214_v13 = vld [vmem:[#allocation2 + $0x5d0] sm:$0xff] }
 0x6b2   : > { %2227 = vmatprep.subr.mxu1 %v5167_v16  ;;  %v5215_v16 = vld [vmem:[#allocation2 + $0x5c8] sm:$0xff] }
 0x6b3   : > { %2228 = vmatpush2.msra.mxu1 %v5168_v17  ;;  %v5216_v17 = vld [vmem:[#allocation2 + $0x5c0] sm:$0xff] }
 0x6b4   : > { %2229 = vmatprep.subr.mxu1 %v5169_v18  ;;  %v5217_v18 = vld [vmem:[#allocation2 + $0x5b8] sm:$0xff] }
 0x6b5   : > { %2230 = vmatpush2.msra.mxu1 %v5170_v20  ;;  %v5218_v20 = vld [vmem:[#allocation2 + $0x5b0] sm:$0xff] }
 0x6b6   : > { %2231 = vmatprep.subr.mxu1 %v5171_v43  ;;  %v5219_v43 = vld [vmem:[#allocation2 + $0x5a8] sm:$0xff] }
 0x6b7   : > { %2232 = vmatpush2.msra.mxu1 %v5172_v63  ;;  %v5220_v63 = vld [vmem:[#allocation2 + $0x5a0] sm:$0xff] }
 0x6b8   : > { %2233 = vmatprep.subr.mxu1 %v5173_v22  ;;  %v5221_v22 = vld [vmem:[#allocation2 + $0x598] sm:$0xff] }
 0x6b9   : > { %2234 = vmatpush2.msra.mxu1 %v5174_v23  ;;  %v5222_v23 = vld [vmem:[#allocation2 + $0x590] sm:$0xff] }
 0x6ba   : > { %2235 = vmatprep.subr.mxu1 %v5175_v1  ;;  %v5223_v1 = vld [vmem:[#allocation2 + $0x588] sm:$0xff] }
 0x6bb   : > { %2236 = vmatpush2.msra.mxu1 %v5176_v24  ;;  %v5224_v24 = vld [vmem:[#allocation2 + $0x580] sm:$0xff] }
 0x73c   : > { %v2156_v4 = vpop.f32.mrf.mxu1 }
 0x73d   : > { %v2161_v25 = vadd.f32 %v2156_v4, %v6315_v19  ;;  %v5225_v4 = vld [vmem:[#allocation2 + $0x578] sm:$0xff] }
 0x73e   : > { %v2158_v26 = vpop.f32.mrf.mxu1 }
 0x73f   : > { %v2162_v28 = vadd.f32 %v2158_v26, %v6318_v21  ;;  %v2169_v29 = vadd.f32 %v2167_v27, %v2161_v25  ;;  %v5226_v25 = vld [vmem:[#allocation2 + $0x570] sm:$0xff]  ;;  %v5227_v26 = vld [vmem:[#allocation2 + $0x568] sm:$0xff] }
 0x741   : > { %v2170_v30 = vadd.f32 %v2167_v27, %v2162_v28  ;;  %v6330_v33 = vmax.f32 %v2169_v29, 0.0  ;;  %v5228_v27 = vld [vmem:[#allocation2 + $0x560] sm:$0xff]  ;;  %v5229_v28 = vld [vmem:[#allocation2 + $0x558] sm:$0xff]  ;;  %v5230_v29 = vld [vmem:[#allocation2 + $0x550] sm:$0xff] }
 0x743   : > { %v6328_v31 = vmax.f32 %v2170_v30, 0.0  ;;  %v5231_v30 = vld [vmem:[#allocation2 + $0x548] sm:$0xff] }
 0x745   : > { %2237 = vmatprep.mubr.f32.mxu1 %v6328_v31  ;;  %2309 = vmatprep.mubr.f32.mxu0 %v6328_v31 }
 0x746   : > { %2238 = vmatmul.mubr.f32.vlgmr.msra.gmra.mxu1 %v6330_v33  ;;  %2310 = vmatmul.mubr.f32.vlgmr.msra.gmra.mxu0 %v6330_v33 }
 0x747   : > { %2393 = vmatprep.mubr.f32.mxu1 %v6114_v2  ;;  %2473 = vmatprep.mubr.f32.mxu0 %v6114_v2 }
 0x806   : > { %v2239_v19 = vpop.f32.mrf.mxu1  ;;  %v2311_v21 = vpop.f32.mrf.mxu0 }
 0x808   : > { %v2241_v35 = vpop.f32.mrf.mxu1  ;;  %v2313_v36 = vpop.f32.mrf.mxu0 }
 0x809   : > { %4949 = vmatprep.subr.msk.mxu1 %vm2322_vm2, %v2313_v36  ;;  %4952 = vmatprep.subr.msk.mxu0 %vm2322_vm2, %v2241_v35  ;;  %v5234_v35 = vld [vmem:[#allocation2 + $0x530] sm:$0xff]  ;;  %v5235_v36 = vld [vmem:[#allocation2 + $0x528] sm:$0xff] }
 0x80a   : > { %4950 = vmatpush1.msk.msra.mxu1 %vm2322_vm2, %v2311_v21  ;;  %4953 = vmatpush1.msk.msra.mxu0 %vm2322_vm2, %v2239_v19  ;;  %v5232_v19 = vld [vmem:[#allocation2 + $0x540] sm:$0xff]  ;;  %v5233_v21 = vld [vmem:[#allocation2 + $0x538] sm:$0xff] }
 0x80b   : > { %4951 = vmatmul.mubr.msk.f32.vlgmr.msra.gmra.mxu1 %vm2318_vm3, %v4948_v37  ;;  %4954 = vmatmul.mubr.msk.f32.vlgmr.msra.gmra.mxu0 %vm2318_vm3, %v2244_v14  ;;  %v5236_v37 = vld [vmem:[#allocation2 + $0x520] sm:$0xff]  ;;  %v5237_v14 = vld [vmem:[#allocation2 + $0x518] sm:$0xff] }
 0x80c   : > { %2480 = vmatprep.subr.mxu1 %v5177_v15  ;;  %2544 = vmatprep.mubr.f32.mxu1 %v6328_v31  ;;  %v5238_v15 = vld [vmem:[#allocation2 + $0x510] sm:$0xff] }
 0x80d   : > { %2481 = vmatpush1.msra.mxu1 %v5178_v38  ;;  %2626 = vmatprep.mubr.f32.mxu0 %v6114_v2  ;;  %v5239_v38 = vld [vmem:[#allocation2 + $0x508] sm:$0xff] }
 0x80e   : > { %2482 = vmatprep.subr.mxu1 %v5179_v39  ;;  %v5240_v39 = vld [vmem:[#allocation2 + $0x500] sm:$0xff] }
 0x80f   : > { %2483 = vmatpush1.msra.mxu1 %v5180_v40 }
 0x810   : > { %2484 = vmatprep.subr.mxu1 %v5181_v56 }
 0x811   : > { %2485 = vmatpush1.msra.mxu1 %v5182_v41 }
 0x812   : > { %2486 = vmatprep.subr.mxu1 %v5183_v42 }
 0x813   : > { %2487 = vmatpush1.msra.mxu1 %v5184_v44 }
 0x814   : > { %2488 = vmatprep.subr.mxu1 %v5185_v45 }
 0x815   : > { %2489 = vmatpush1.msra.mxu1 %v5186_v46  ;;  %v4955_v46 = vld [vmem:[%s6566_s4 + $0x10] sm:$0x3f] }
 0x816   : > { %2490 = vmatprep.subr.mxu1 %v5187_v47  ;;  %v5241_v47 = vld [vmem:[#allocation2 + $0x6f8] sm:$0xff] }
 0x817   : > { %2491 = vmatpush1.msra.mxu1 %v5188_v48  ;;  %v5242_v48 = vld [vmem:[#allocation2 + $0x6f0] sm:$0xff] }
 0x818   : > { %2492 = vmatprep.subr.mxu1 %v5189_v49  ;;  %v5243_v49 = vld [vmem:[#allocation2 + $0x6e8] sm:$0xff] }
 0x819   : > { %2493 = vmatpush1.msra.mxu1 %v5190_v50  ;;  %v5244_v50 = vld [vmem:[#allocation2 + $0x6e0] sm:$0xff] }
 0x81a   : > { %2494 = vmatprep.subr.mxu1 %v5191_v51  ;;  %v5245_v51 = vld [vmem:[#allocation2 + $0x6d8] sm:$0xff] }
 0x81b   : > { %2495 = vmatpush1.msra.mxu1 %v5192_v52  ;;  %v5246_v52 = vld [vmem:[#allocation2 + $0x6d0] sm:$0xff] }
 0x81c   : > { %2496 = vmatprep.subr.mxu1 %v5193_v54  ;;  %v5247_v54 = vld [vmem:[#allocation2 + $0x6c8] sm:$0xff] }
 0x81d   : > { %2497 = vmatpush1.msra.mxu1 %v5194_v57  ;;  %v5248_v57 = vld [vmem:[#allocation2 + $0x6c0] sm:$0xff] }
 0x81e   : > { %2498 = vmatprep.subr.mxu1 %v5195_v58  ;;  %v5249_v58 = vld [vmem:[#allocation2 + $0x6b8] sm:$0xff] }
 0x81f   : > { %2499 = vmatpush1.msra.mxu1 %v5196_v59  ;;  %v5250_v59 = vld [vmem:[#allocation2 + $0x6b0] sm:$0xff] }
 0x820   : > { %2500 = vmatprep.subr.mxu1 %v5197_v32  ;;  %v5251_v32 = vld [vmem:[#allocation2 + $0x6a8] sm:$0xff] }
 0x821   : > { %2501 = vmatpush1.msra.mxu1 %v5198_v34  ;;  %v5252_v34 = vld [vmem:[#allocation2 + $0x6a0] sm:$0xff] }
 0x822   : > { %2502 = vmatprep.subr.mxu1 %v5199_v60  ;;  %v5253_v60 = vld [vmem:[#allocation2 + $0x698] sm:$0xff] }
 0x823   : > { %2503 = vmatpush1.msra.mxu1 %v5200_v61  ;;  %v5254_v61 = vld [vmem:[#allocation2 + $0x690] sm:$0xff] }
 0x824   : > { %2504 = vmatprep.subr.mxu1 %v5201_v62  ;;  %v5255_v62 = vld [vmem:[#allocation2 + $0x688] sm:$0xff] }
 0x825   : > { %2505 = vmatpush1.msra.mxu1 %v5202_v0  ;;  %v5256_v0 = vld [vmem:[#allocation2 + $0x680] sm:$0xff] }
 0x826   : > { %2506 = vmatprep.subr.mxu1 %v5203_v3  ;;  %v5257_v3 = vld [vmem:[#allocation2 + $0x678] sm:$0xff] }
 0x827   : > { %2507 = vmatpush1.msra.mxu1 %v5204_v5  ;;  %v5258_v5 = vld [vmem:[#allocation2 + $0x670] sm:$0xff] }
 0x828   : > { %2508 = vmatprep.subr.mxu1 %v5205_v6  ;;  %v5259_v6 = vld [vmem:[#allocation2 + $0x668] sm:$0xff] }
 0x829   : > { %2509 = vmatpush1.msra.mxu1 %v5206_v7  ;;  %v5260_v7 = vld [vmem:[#allocation2 + $0x660] sm:$0xff] }
 0x82a   : > { %2510 = vmatprep.subr.mxu1 %v5207_v8  ;;  %v5261_v8 = vld [vmem:[#allocation2 + $0x658] sm:$0xff] }
 0x82b   : > { %2511 = vmatpush1.msra.mxu1 %v5208_v9  ;;  %v5262_v9 = vld [vmem:[#allocation2 + $0x650] sm:$0xff] }
 0x82c   : > { %2512 = vmatprep.subr.mxu1 %v5209_v10  ;;  %v5263_v10 = vld [vmem:[#allocation2 + $0x648] sm:$0xff] }
 0x82d   : > { %2513 = vmatpush2.msra.mxu1 %v5210_v53  ;;  %v5264_v53 = vld [vmem:[#allocation2 + $0x640] sm:$0xff] }
 0x82e   : > { %2514 = vmatprep.subr.mxu1 %v5211_v55  ;;  %v5265_v55 = vld [vmem:[#allocation2 + $0x638] sm:$0xff] }
 0x82f   : > { %2515 = vmatpush2.msra.mxu1 %v5212_v11  ;;  %v5266_v11 = vld [vmem:[#allocation2 + $0x630] sm:$0xff] }
 0x830   : > { %2516 = vmatprep.subr.mxu1 %v5213_v12  ;;  %v5267_v12 = vld [vmem:[#allocation2 + $0x628] sm:$0xff] }
 0x831   : > { %2517 = vmatpush2.msra.mxu1 %v5214_v13  ;;  %v5268_v13 = vld [vmem:[#allocation2 + $0x620] sm:$0xff] }
 0x832   : > { %2518 = vmatprep.subr.mxu1 %v5215_v16  ;;  %v5269_v16 = vld [vmem:[#allocation2 + $0x618] sm:$0xff] }
 0x833   : > { %2519 = vmatpush2.msra.mxu1 %v5216_v17  ;;  %v5270_v17 = vld [vmem:[#allocation2 + $0x610] sm:$0xff] }
 0x834   : > { %2520 = vmatprep.subr.mxu1 %v5217_v18  ;;  %v5271_v18 = vld [vmem:[#allocation2 + $0x608] sm:$0xff] }
 0x835   : > { %2521 = vmatpush2.msra.mxu1 %v5218_v20  ;;  %v5272_v20 = vld [vmem:[#allocation2 + $0x600] sm:$0xff] }
 0x836   : > { %2522 = vmatprep.subr.mxu1 %v5219_v43  ;;  %v5273_v43 = vld [vmem:[#allocation2 + $0x7f8] sm:$0xff] }
 0x837   : > { %2523 = vmatpush2.msra.mxu1 %v5220_v63  ;;  %v5274_v63 = vld [vmem:[#allocation2 + $0x7f0] sm:$0xff] }
 0x838   : > { %2524 = vmatprep.subr.mxu1 %v5221_v22  ;;  %v5275_v22 = vld [vmem:[#allocation2 + $0x7e8] sm:$0xff] }
 0x839   : > { %2525 = vmatpush2.msra.mxu1 %v5222_v23  ;;  %v5276_v23 = vld [vmem:[#allocation2 + $0x7e0] sm:$0xff] }
 0x83a   : > { %2526 = vmatprep.subr.mxu1 %v5223_v1  ;;  %v5277_v1 = vld [vmem:[#allocation2 + $0x7d8] sm:$0xff] }
 0x83b   : > { %2527 = vmatpush2.msra.mxu1 %v5224_v24  ;;  %v5278_v24 = vld [vmem:[#allocation2 + $0x7d0] sm:$0xff] }
 0x83c   : > { %2528 = vmatprep.subr.mxu1 %v5225_v4  ;;  %v5279_v4 = vld [vmem:[#allocation2 + $0x7c8] sm:$0xff] }
 0x83d   : > { %2529 = vmatpush2.msra.mxu1 %v5226_v25  ;;  %v5280_v25 = vld [vmem:[#allocation2 + $0x7c0] sm:$0xff] }
 0x83e   : > { %2530 = vmatprep.subr.mxu1 %v5227_v26  ;;  %v5281_v26 = vld [vmem:[#allocation2 + $0x7b8] sm:$0xff] }
 0x83f   : > { %2531 = vmatpush2.msra.mxu1 %v5228_v27  ;;  %v5282_v27 = vld [vmem:[#allocation2 + $0x7b0] sm:$0xff] }
 0x840   : > { %2532 = vmatprep.subr.mxu1 %v5229_v28  ;;  %v5283_v28 = vld [vmem:[#allocation2 + $0x7a8] sm:$0xff] }
 0x841   : > { %2533 = vmatpush2.msra.mxu1 %v5230_v29  ;;  %v5284_v29 = vld [vmem:[#allocation2 + $0x7a0] sm:$0xff] }
 0x842   : > { %2534 = vmatprep.subr.mxu1 %v5231_v30  ;;  %v5285_v30 = vld [vmem:[#allocation2 + $0x798] sm:$0xff] }
 0x843   : > { %2535 = vmatpush2.msra.mxu1 %v5232_v19  ;;  %v5286_v19 = vld [vmem:[#allocation2 + $0x790] sm:$0xff] }
 0x844   : > { %2536 = vmatprep.subr.mxu1 %v5233_v21  ;;  %v5287_v21 = vld [vmem:[#allocation2 + $0x788] sm:$0xff] }
 0x845   : > { %2537 = vmatpush2.msra.mxu1 %v5234_v35  ;;  %v5288_v35 = vld [vmem:[#allocation2 + $0x780] sm:$0xff] }
 0x846   : > { %2538 = vmatprep.subr.mxu1 %v5235_v36  ;;  %v5289_v36 = vld [vmem:[#allocation2 + $0x778] sm:$0xff] }
 0x847   : > { %2539 = vmatpush2.msra.mxu1 %v5236_v37  ;;  %v5290_v37 = vld [vmem:[#allocation2 + $0x770] sm:$0xff] }
 0x848   : > { %2540 = vmatprep.subr.mxu1 %v5237_v14  ;;  %v5291_v14 = vld [vmem:[#allocation2 + $0x768] sm:$0xff] }
 0x849   : > { %2541 = vmatpush2.msra.mxu1 %v5238_v15  ;;  %v5292_v15 = vld [vmem:[#allocation2 + $0x760] sm:$0xff] }
 0x84a   : > { %2542 = vmatprep.subr.mxu1 %v5239_v38  ;;  %v5293_v38 = vld [vmem:[#allocation2 + $0x758] sm:$0xff] }
 0x84b   : > { %2543 = vmatpush2.msra.mxu1 %v5240_v39  ;;  %v5294_v39 = vld [vmem:[#allocation2 + $0x750] sm:$0xff] }
 0x84c   : > { %2545 = vmatmul.mubr.f32.vlgmr.msra.gmra.mxu1 %v6330_v33 }
 0x84d   : > { %2781 = vmatprep.mubr.f32.mxu1 %v6114_v2 }
 0x8cb   : > { %v2395_v40 = vpop.f32.mrf.mxu1  ;;  %v2475_v56 = vpop.f32.mrf.mxu0 }
 0x8cc   : > { %v6354_v41 = vadd.f32 %v2475_v56, %v2395_v40  ;;  %v5295_v40 = vld [vmem:[#allocation2 + $0x748] sm:$0xff]  ;;  %v5296_v56 = vld [vmem:[#allocation2 + $0x740] sm:$0xff] }
 0x8cd   : > { %v6356_v42 = vpop.f32.mrf.mxu1 }
 0x90c   : > { %v2546_v44 = vpop.f32.mrf.mxu1 }
 0x90e   : > { %v2548_v45 = vpop.f32.mrf.mxu1 }
 0x90f   : > { %4956 = vmatprep.subr.msk.mxu0 %vm2322_vm2, %v2548_v45  ;;  %v5298_v45 = vld [vmem:[#allocation2 + $0x730] sm:$0xff] }
 0x910   : > { %4957 = vmatpush1.msk.msra.mxu0 %vm2322_vm2, %v2546_v44  ;;  %v5297_v44 = vld [vmem:[#allocation2 + $0x738] sm:$0xff] }
 0x911   : > { %4958 = vmatmul.mubr.msk.f32.vlgmr.msra.gmra.mxu0 %vm2318_vm3, %v4955_v46  ;;  %2635 = vmatprep.subr.mxu0 %v5241_v47  ;;  %v5299_v46 = vld [vmem:[#allocation2 + $0x728] sm:$0xff]  ;;  %v5300_v47 = vld [vmem:[#allocation2 + $0x720] sm:$0xff] }
 0x912   : > { %2636 = vmatpush1.msra.mxu0 %v5242_v48  ;;  %2699 = vmatprep.mubr.f32.mxu0 %v6328_v31  ;;  %v5301_v48 = vld [vmem:[#allocation2 + $0x718] sm:$0xff] }
 0x913   : > { %2637 = vmatprep.subr.mxu0 %v5243_v49  ;;  %v5302_v49 = vld [vmem:[#allocation2 + $0x710] sm:$0xff] }
 0x914   : > { %2638 = vmatpush1.msra.mxu0 %v5244_v50  ;;  %v5303_v50 = vld [vmem:[#allocation2 + $0x708] sm:$0xff] }
 0x915   : > { %2639 = vmatprep.subr.mxu0 %v5245_v51  ;;  %v5304_v51 = vld [vmem:[#allocation2 + $0x700] sm:$0xff] }
 0x916   : > { %2640 = vmatpush1.msra.mxu0 %v5246_v52  ;;  %v5305_v52 = vld [vmem:[#allocation2 + $0xaf8] sm:$0xff] }
 0x917   : > { %2641 = vmatprep.subr.mxu0 %v5247_v54  ;;  %v5306_v54 = vld [vmem:[#allocation2 + $0xaf0] sm:$0xff] }
 0x918   : > { %2642 = vmatpush1.msra.mxu0 %v5248_v57  ;;  %v5307_v57 = vld [vmem:[#allocation2 + $0xae8] sm:$0xff] }
 0x919   : > { %2643 = vmatprep.subr.mxu0 %v5249_v58  ;;  %v5308_v58 = vld [vmem:[#allocation2 + $0xae0] sm:$0xff] }
 0x91a   : > { %2644 = vmatpush1.msra.mxu0 %v5250_v59  ;;  %v5309_v59 = vld [vmem:[#allocation2 + $0xad8] sm:$0xff] }
 0x91b   : > { %2645 = vmatprep.subr.mxu0 %v5251_v32  ;;  %v5310_v32 = vld [vmem:[#allocation2 + $0xad0] sm:$0xff] }
 0x91c   : > { %2646 = vmatpush1.msra.mxu0 %v5252_v34  ;;  %v5311_v34 = vld [vmem:[#allocation2 + $0xac8] sm:$0xff] }
 0x91d   : > { %2647 = vmatprep.subr.mxu0 %v5253_v60  ;;  %v5312_v60 = vld [vmem:[#allocation2 + $0xac0] sm:$0xff] }
 0x91e   : > { %2648 = vmatpush1.msra.mxu0 %v5254_v61  ;;  %v5313_v61 = vld [vmem:[#allocation2 + $0xab8] sm:$0xff] }
 0x91f   : > { %2649 = vmatprep.subr.mxu0 %v5255_v62  ;;  %v5314_v62 = vld [vmem:[#allocation2 + $0xab0] sm:$0xff] }
 0x920   : > { %2650 = vmatpush1.msra.mxu0 %v5256_v0  ;;  %v5315_v0 = vld [vmem:[#allocation2 + $0xaa8] sm:$0xff] }
 0x921   : > { %2651 = vmatprep.subr.mxu0 %v5257_v3  ;;  %v5316_v3 = vld [vmem:[#allocation2 + $0xaa0] sm:$0xff] }
 0x922   : > { %2652 = vmatpush1.msra.mxu0 %v5258_v5  ;;  %v5317_v5 = vld [vmem:[#allocation2 + $0xa98] sm:$0xff] }
 0x923   : > { %2653 = vmatprep.subr.mxu0 %v5259_v6  ;;  %v5318_v6 = vld [vmem:[#allocation2 + $0xa90] sm:$0xff] }
 0x924   : > { %2654 = vmatpush1.msra.mxu0 %v5260_v7  ;;  %v5319_v7 = vld [vmem:[#allocation2 + $0xa88] sm:$0xff] }
 0x925   : > { %2655 = vmatprep.subr.mxu0 %v5261_v8  ;;  %v5320_v8 = vld [vmem:[#allocation2 + $0xa80] sm:$0xff] }
 0x926   : > { %2656 = vmatpush1.msra.mxu0 %v5262_v9  ;;  %v5321_v9 = vld [vmem:[#allocation2 + $0xa78] sm:$0xff] }
 0x927   : > { %2657 = vmatprep.subr.mxu0 %v5263_v10  ;;  %v5322_v10 = vld [vmem:[#allocation2 + $0xa70] sm:$0xff] }
 0x928   : > { %2658 = vmatpush1.msra.mxu0 %v5264_v53  ;;  %v5323_v53 = vld [vmem:[#allocation2 + $0xa68] sm:$0xff] }
 0x929   : > { %2659 = vmatprep.subr.mxu0 %v5265_v55  ;;  %v5324_v55 = vld [vmem:[#allocation2 + $0xa60] sm:$0xff] }
 0x92a   : > { %2660 = vmatpush1.msra.mxu0 %v5266_v11  ;;  %v5325_v11 = vld [vmem:[#allocation2 + $0xa58] sm:$0xff] }
 0x92b   : > { %2661 = vmatprep.subr.mxu0 %v5267_v12  ;;  %v5326_v12 = vld [vmem:[#allocation2 + $0xa50] sm:$0xff] }
 0x92c   : > { %2662 = vmatpush1.msra.mxu0 %v5268_v13  ;;  %v5327_v13 = vld [vmem:[#allocation2 + $0xa48] sm:$0xff] }
 0x92d   : > { %2663 = vmatprep.subr.mxu0 %v5269_v16  ;;  %v5328_v16 = vld [vmem:[#allocation2 + $0xa40] sm:$0xff] }
 0x92e   : > { %2664 = vmatpush1.msra.mxu0 %v5270_v17  ;;  %v5329_v17 = vld [vmem:[#allocation2 + $0xa38] sm:$0xff] }
 0x92f   : > { %2665 = vmatprep.subr.mxu0 %v5271_v18  ;;  %v5330_v18 = vld [vmem:[#allocation2 + $0xa30] sm:$0xff] }
 0x930   : > { %2666 = vmatpush1.msra.mxu0 %v5272_v20  ;;  %v5331_v20 = vld [vmem:[#allocation2 + $0xa28] sm:$0xff] }
 0x931   : > { %2667 = vmatprep.subr.mxu0 %v5273_v43  ;;  %v5332_v43 = vld [vmem:[#allocation2 + $0xa20] sm:$0xff] }
 0x932   : > { %2668 = vmatpush2.msra.mxu0 %v5274_v63  ;;  %v5333_v63 = vld [vmem:[#allocation2 + $0xa18] sm:$0xff] }
 0x933   : > { %2669 = vmatprep.subr.mxu0 %v5275_v22  ;;  %v5334_v22 = vld [vmem:[#allocation2 + $0xa10] sm:$0xff] }
 0x934   : > { %2670 = vmatpush2.msra.mxu0 %v5276_v23  ;;  %v5335_v23 = vld [vmem:[#allocation2 + $0xa08] sm:$0xff] }
 0x935   : > { %2671 = vmatprep.subr.mxu0 %v5277_v1  ;;  %v5336_v1 = vld [vmem:[#allocation2 + $0xa00] sm:$0xff] }
 0x936   : > { %2672 = vmatpush2.msra.mxu0 %v5278_v24  ;;  %v5337_v24 = vld [vmem:[#allocation2 + $0xbf8] sm:$0xff] }
 0x937   : > { %2673 = vmatprep.subr.mxu0 %v5279_v4  ;;  %v5338_v4 = vld [vmem:[#allocation2 + $0xbf0] sm:$0xff] }
 0x938   : > { %2674 = vmatpush2.msra.mxu0 %v5280_v25  ;;  %v5339_v25 = vld [vmem:[#allocation2 + $0xbe8] sm:$0xff] }
 0x939   : > { %2675 = vmatprep.subr.mxu0 %v5281_v26  ;;  %v5340_v26 = vld [vmem:[#allocation2 + $0xbe0] sm:$0xff] }
 0x93a   : > { %2676 = vmatpush2.msra.mxu0 %v5282_v27  ;;  %v5341_v27 = vld [vmem:[#allocation2 + $0xbd8] sm:$0xff] }
 0x93b   : > { %2677 = vmatprep.subr.mxu0 %v5283_v28  ;;  %v5342_v28 = vld [vmem:[#allocation2 + $0xbd0] sm:$0xff] }
 0x93c   : > { %2678 = vmatpush2.msra.mxu0 %v5284_v29  ;;  %v5343_v29 = vld [vmem:[#allocation2 + $0xbc8] sm:$0xff] }
 0x93d   : > { %2679 = vmatprep.subr.mxu0 %v5285_v30  ;;  %v5344_v30 = vld [vmem:[#allocation2 + $0xbc0] sm:$0xff] }
 0x93e   : > { %2680 = vmatpush2.msra.mxu0 %v5286_v19  ;;  %v5345_v19 = vld [vmem:[#allocation2 + $0xbb8] sm:$0xff] }
 0x93f   : > { %2681 = vmatprep.subr.mxu0 %v5287_v21  ;;  %v5346_v21 = vld [vmem:[#allocation2 + $0xbb0] sm:$0xff] }
 0x940   : > { %2682 = vmatpush2.msra.mxu0 %v5288_v35  ;;  %v5347_v35 = vld [vmem:[#allocation2 + $0xba8] sm:$0xff] }
 0x941   : > { %2683 = vmatprep.subr.mxu0 %v5289_v36  ;;  %v5348_v36 = vld [vmem:[#allocation2 + $0xba0] sm:$0xff] }
 0x942   : > { %2684 = vmatpush2.msra.mxu0 %v5290_v37  ;;  %v5349_v37 = vld [vmem:[#allocation2 + $0xb98] sm:$0xff] }
 0x943   : > { %2685 = vmatprep.subr.mxu0 %v5291_v14  ;;  %v5350_v14 = vld [vmem:[#allocation2 + $0xb90] sm:$0xff] }
 0x944   : > { %2686 = vmatpush2.msra.mxu0 %v5292_v15  ;;  %v5351_v15 = vld [vmem:[#allocation2 + $0xb88] sm:$0xff] }
 0x945   : > { %2687 = vmatprep.subr.mxu0 %v5293_v38  ;;  %v5352_v38 = vld [vmem:[#allocation2 + $0xb80] sm:$0xff] }
 0x946   : > { %2688 = vmatpush2.msra.mxu0 %v5294_v39  ;;  %v5353_v39 = vld [vmem:[#allocation2 + $0xb78] sm:$0xff] }
 0x947   : > { %2689 = vmatprep.subr.mxu0 %v5295_v40  ;;  %v5354_v40 = vld [vmem:[#allocation2 + $0xb70] sm:$0xff] }
 0x948   : > { %2690 = vmatpush2.msra.mxu0 %v5296_v56  ;;  %v5355_v56 = vld [vmem:[#allocation2 + $0xb68] sm:$0xff] }
 0x949   : > { %2691 = vmatprep.subr.mxu0 %v5297_v44  ;;  %v5356_v44 = vld [vmem:[#allocation2 + $0xb60] sm:$0xff] }
 0x94a   : > { %2692 = vmatpush2.msra.mxu0 %v5298_v45  ;;  %v5357_v45 = vld [vmem:[#allocation2 + $0xb58] sm:$0xff] }
 0x94b   : > { %2693 = vmatprep.subr.mxu0 %v5299_v46  ;;  %v5358_v46 = vld [vmem:[#allocation2 + $0xb50] sm:$0xff] }
 0x94c   : > { %2694 = vmatpush2.msra.mxu0 %v5300_v47  ;;  %v5359_v47 = vld [vmem:[#allocation2 + $0xb48] sm:$0xff] }
 0x94d   : > { %2695 = vmatprep.subr.mxu0 %v5301_v48  ;;  %v5360_v48 = vld [vmem:[#allocation2 + $0xb40] sm:$0xff] }
 0x94e   : > { %2696 = vmatpush2.msra.mxu0 %v5302_v49  ;;  %v5361_v49 = vld [vmem:[#allocation2 + $0xb38] sm:$0xff] }
 0x94f   : > { %2697 = vmatprep.subr.mxu0 %v5303_v50  ;;  %v5362_v50 = vld [vmem:[#allocation2 + $0xb30] sm:$0xff] }
 0x950   : > { %2698 = vmatpush2.msra.mxu0 %v5304_v51  ;;  %v5363_v51 = vld [vmem:[#allocation2 + $0xb28] sm:$0xff] }
 0x951   : > { %2700 = vmatmul.mubr.f32.vlgmr.msra.gmra.mxu0 %v6330_v33  ;;  %2874 = vmatprep.subr.mxu0 %v5305_v52  ;;  %v5364_v52 = vld [vmem:[#allocation2 + $0xb20] sm:$0xff] }
 0x952   : > { %2875 = vmatpush1.msra.mxu0 %v5306_v54  ;;  %2938 = vmatprep.mubr.f32.mxu0 %v6328_v31  ;;  %v5365_v54 = vld [vmem:[#allocation2 + $0xb18] sm:$0xff] }
 0x953   : > { %2876 = vmatprep.subr.mxu0 %v5307_v57  ;;  %v5366_v57 = vld [vmem:[#allocation2 + $0xb10] sm:$0xff] }
 0x954   : > { %2877 = vmatpush1.msra.mxu0 %v5308_v58  ;;  %v5367_v58 = vld [vmem:[#allocation2 + $0xb08] sm:$0xff] }
 0x955   : > { %2878 = vmatprep.subr.mxu0 %v5309_v59  ;;  %v5368_v59 = vld [vmem:[#allocation2 + $0xb00] sm:$0xff] }
 0x956   : > { %2879 = vmatpush1.msra.mxu0 %v5310_v32  ;;  %v2477_v32 = vpop.f32.mrf.mxu0 }
 0x957   : > { %2880 = vmatprep.subr.mxu0 %v5311_v34 }
 0x958   : > { %2881 = vmatpush1.msra.mxu0 %v5312_v60  ;;  %v2478_v60 = vadd.f32 %v2477_v32, %v6356_v42  ;;  %v5417_v32 = vld [vmem:[#allocation2 + $0xd78] sm:$0xff] }
 0x959   : > { %2882 = vmatprep.subr.mxu0 %v5313_v61 }
 0x95a   : > { %2883 = vmatpush1.msra.mxu0 %v5314_v62 }
 0x95b   : > { %2884 = vmatprep.subr.mxu0 %v5315_v0 }
 0x95c   : > { %2885 = vmatpush1.msra.mxu0 %v5316_v3 }
 0x95d   : > { %2886 = vmatprep.subr.mxu0 %v5317_v5 }
 0x95e   : > { %2887 = vmatpush1.msra.mxu0 %v5318_v6  ;;  %v4959_v6 = vld [vmem:[%s6566_s4 + $0x18] sm:$0x3f] }
 0x95f   : > { %2888 = vmatprep.subr.mxu0 %v5319_v7 }
 0x960   : > { %2889 = vmatpush1.msra.mxu0 %v5320_v8  ;;  %v4967_v8 = vld [vmem:[%s6566_s4 + $0x28] sm:$0x3f] }
 0x961   : > { %2890 = vmatprep.subr.mxu0 %v5321_v9  ;;  %v5369_v9 = vld [vmem:[#allocation2 + $0xcf8] sm:$0xff] }
 0x962   : > { %2891 = vmatpush1.msra.mxu0 %v5322_v10  ;;  %v5370_v10 = vld [vmem:[#allocation2 + $0xcf0] sm:$0xff] }
 0x963   : > { %2892 = vmatprep.subr.mxu0 %v5323_v53  ;;  %v5371_v53 = vld [vmem:[#allocation2 + $0xce8] sm:$0xff] }
 0x964   : > { %2893 = vmatpush1.msra.mxu0 %v5324_v55  ;;  %v5372_v55 = vld [vmem:[#allocation2 + $0xce0] sm:$0xff] }
 0x965   : > { %2894 = vmatprep.subr.mxu0 %v5325_v11  ;;  %v5373_v11 = vld [vmem:[#allocation2 + $0xcd8] sm:$0xff] }
 0x966   : > { %2895 = vmatpush1.msra.mxu0 %v5326_v12  ;;  %v5374_v12 = vld [vmem:[#allocation2 + $0xcd0] sm:$0xff] }
 0x967   : > { %2896 = vmatprep.subr.mxu0 %v5327_v13  ;;  %v5375_v13 = vld [vmem:[#allocation2 + $0xcc8] sm:$0xff] }
 0x968   : > { %2897 = vmatpush1.msra.mxu0 %v5328_v16  ;;  %v5376_v16 = vld [vmem:[#allocation2 + $0xcc0] sm:$0xff] }
 0x969   : > { %2898 = vmatprep.subr.mxu0 %v5329_v17  ;;  %v5377_v17 = vld [vmem:[#allocation2 + $0xcb8] sm:$0xff] }
 0x96a   : > { %2899 = vmatpush1.msra.mxu0 %v5330_v18  ;;  %v5378_v18 = vld [vmem:[#allocation2 + $0xcb0] sm:$0xff] }
 0x96b   : > { %2900 = vmatprep.subr.mxu0 %v5331_v20  ;;  %v5379_v20 = vld [vmem:[#allocation2 + $0xca8] sm:$0xff] }
 0x96c   : > { %2901 = vmatpush1.msra.mxu0 %v5332_v43  ;;  %v5380_v43 = vld [vmem:[#allocation2 + $0xca0] sm:$0xff] }
 0x96d   : > { %2902 = vmatprep.subr.mxu0 %v5333_v63  ;;  %v5381_v63 = vld [vmem:[#allocation2 + $0xc98] sm:$0xff] }
 0x96e   : > { %2903 = vmatpush1.msra.mxu0 %v5334_v22  ;;  %v5382_v22 = vld [vmem:[#allocation2 + $0xc90] sm:$0xff] }
 0x96f   : > { %2904 = vmatprep.subr.mxu0 %v5335_v23  ;;  %v5383_v23 = vld [vmem:[#allocation2 + $0xc88] sm:$0xff] }
 0x970   : > { %2905 = vmatpush1.msra.mxu0 %v5336_v1  ;;  %v5384_v1 = vld [vmem:[#allocation2 + $0xc80] sm:$0xff] }
 0x971   : > { %2906 = vmatprep.subr.mxu0 %v5337_v24  ;;  %v5385_v24 = vld [vmem:[#allocation2 + $0xc78] sm:$0xff] }
 0x972   : > { %2907 = vmatpush2.msra.mxu0 %v5338_v4  ;;  %v5386_v4 = vld [vmem:[#allocation2 + $0xc70] sm:$0xff] }
 0x973   : > { %2908 = vmatprep.subr.mxu0 %v5339_v25  ;;  %v5387_v25 = vld [vmem:[#allocation2 + $0xc68] sm:$0xff] }
 0x974   : > { %2909 = vmatpush2.msra.mxu0 %v5340_v26  ;;  %v5388_v26 = vld [vmem:[#allocation2 + $0xc60] sm:$0xff] }
 0x975   : > { %2910 = vmatprep.subr.mxu0 %v5341_v27  ;;  %v5389_v27 = vld [vmem:[#allocation2 + $0xc58] sm:$0xff] }
 0x976   : > { %2911 = vmatpush2.msra.mxu0 %v5342_v28  ;;  %v5390_v28 = vld [vmem:[#allocation2 + $0xc50] sm:$0xff] }
 0x977   : > { %2912 = vmatprep.subr.mxu0 %v5343_v29  ;;  %v5391_v29 = vld [vmem:[#allocation2 + $0xc48] sm:$0xff] }
 0x978   : > { %2913 = vmatpush2.msra.mxu0 %v5344_v30  ;;  %v5392_v30 = vld [vmem:[#allocation2 + $0xc40] sm:$0xff] }
 0x979   : > { %2914 = vmatprep.subr.mxu0 %v5345_v19  ;;  %v5393_v19 = vld [vmem:[#allocation2 + $0xc38] sm:$0xff] }
 0x97a   : > { %2915 = vmatpush2.msra.mxu0 %v5346_v21  ;;  %v5394_v21 = vld [vmem:[#allocation2 + $0xc30] sm:$0xff] }
 0x97b   : > { %2916 = vmatprep.subr.mxu0 %v5347_v35  ;;  %v5395_v35 = vld [vmem:[#allocation2 + $0xc28] sm:$0xff] }
 0x97c   : > { %2917 = vmatpush2.msra.mxu0 %v5348_v36  ;;  %v5396_v36 = vld [vmem:[#allocation2 + $0xc20] sm:$0xff] }
 0x97d   : > { %2918 = vmatprep.subr.mxu0 %v5349_v37  ;;  %v5397_v37 = vld [vmem:[#allocation2 + $0xc18] sm:$0xff] }
 0x97e   : > { %2919 = vmatpush2.msra.mxu0 %v5350_v14  ;;  %v5398_v14 = vld [vmem:[#allocation2 + $0xc10] sm:$0xff] }
 0x97f   : > { %2920 = vmatprep.subr.mxu0 %v5351_v15  ;;  %v5399_v15 = vld [vmem:[#allocation2 + $0xc08] sm:$0xff] }
 0x980   : > { %2921 = vmatpush2.msra.mxu0 %v5352_v38  ;;  %v5400_v38 = vld [vmem:[#allocation2 + $0xc00] sm:$0xff] }
 0x981   : > { %2922 = vmatprep.subr.mxu0 %v5353_v39  ;;  %v5401_v39 = vld [vmem:[#allocation2 + $0xdf8] sm:$0xff] }
 0x982   : > { %2923 = vmatpush2.msra.mxu0 %v5354_v40  ;;  %v5402_v40 = vld [vmem:[#allocation2 + $0xdf0] sm:$0xff] }
 0x983   : > { %2924 = vmatprep.subr.mxu0 %v5355_v56  ;;  %v5403_v56 = vld [vmem:[#allocation2 + $0xde8] sm:$0xff] }
 0x984   : > { %2925 = vmatpush2.msra.mxu0 %v5356_v44  ;;  %v5404_v44 = vld [vmem:[#allocation2 + $0xde0] sm:$0xff] }
 0x985   : > { %2926 = vmatprep.subr.mxu0 %v5357_v45  ;;  %v5405_v45 = vld [vmem:[#allocation2 + $0xdd8] sm:$0xff] }
 0x986   : > { %2927 = vmatpush2.msra.mxu0 %v5358_v46  ;;  %v5406_v46 = vld [vmem:[#allocation2 + $0xdd0] sm:$0xff] }
 0x987   : > { %2928 = vmatprep.subr.mxu0 %v5359_v47  ;;  %v5407_v47 = vld [vmem:[#allocation2 + $0xdc8] sm:$0xff] }
 0x988   : > { %2929 = vmatpush2.msra.mxu0 %v5360_v48  ;;  %v5408_v48 = vld [vmem:[#allocation2 + $0xdc0] sm:$0xff] }
 0x989   : > { %2930 = vmatprep.subr.mxu0 %v5361_v49  ;;  %v5409_v49 = vld [vmem:[#allocation2 + $0xdb8] sm:$0xff] }
 0x98a   : > { %2931 = vmatpush2.msra.mxu0 %v5362_v50  ;;  %v5410_v50 = vld [vmem:[#allocation2 + $0xdb0] sm:$0xff] }
 0x98b   : > { %2932 = vmatprep.subr.mxu0 %v5363_v51  ;;  %v5411_v51 = vld [vmem:[#allocation2 + $0xda8] sm:$0xff] }
 0x98c   : > { %2933 = vmatpush2.msra.mxu0 %v5364_v52  ;;  %v5412_v52 = vld [vmem:[#allocation2 + $0xda0] sm:$0xff] }
 0x98d   : > { %2934 = vmatprep.subr.mxu0 %v5365_v54  ;;  %v5413_v54 = vld [vmem:[#allocation2 + $0xd98] sm:$0xff] }
 0x98e   : > { %2935 = vmatpush2.msra.mxu0 %v5366_v57  ;;  %v5414_v57 = vld [vmem:[#allocation2 + $0xd90] sm:$0xff] }
 0x98f   : > { %2936 = vmatprep.subr.mxu0 %v5367_v58  ;;  %v5415_v58 = vld [vmem:[#allocation2 + $0xd88] sm:$0xff] }
 0x990   : > { %2937 = vmatpush2.msra.mxu0 %v5368_v59  ;;  %v5416_v59 = vld [vmem:[#allocation2 + $0xd80] sm:$0xff] }
 0x991   : > { %2939 = vmatmul.mubr.f32.vlgmr.msra.gmra.mxu0 %v6330_v33 }
 0x992   : > { %3175 = vmatprep.mubr.f32.mxu0 %v6114_v2 }
 0x9d1   : > { %v2628_v34 = vpop.f32.mrf.mxu0 }
 0x9d2   : > { %v6371_v61 = vadd.f32 %v2628_v34, %v6354_v41  ;;  %v4963_v41 = vld [vmem:[%s6566_s4 + $0x20] sm:$0x3f]  ;;  %v5418_v34 = vld [vmem:[#allocation2 + $0xd70] sm:$0xff] }
 0x9d3   : > { %v2630_v62 = vpop.f32.mrf.mxu0 }
 0x9d4   : > { %v6373_v0 = vadd.f32 %v2630_v62, %v2478_v60  ;;  %v5419_v60 = vld [vmem:[#allocation2 + $0xd68] sm:$0xff]  ;;  %v5420_v62 = vld [vmem:[#allocation2 + $0xd60] sm:$0xff] }
 0xa11   : > { %v2701_v3 = vpop.f32.mrf.mxu0 }
 0xa13   : > { %v2703_v5 = vpop.f32.mrf.mxu0 }
 0xa14   : > { %4960 = vmatprep.subr.msk.mxu1 %vm2322_vm2, %v2703_v5  ;;  %v5422_v5 = vld [vmem:[#allocation2 + $0xd50] sm:$0xff] }
 0xa15   : > { %4961 = vmatpush1.msk.msra.mxu1 %vm2322_vm2, %v2701_v3  ;;  %v5421_v3 = vld [vmem:[#allocation2 + $0xd58] sm:$0xff] }
 0xa16   : > { %4962 = vmatmul.mubr.msk.f32.vlgmr.msra.gmra.mxu1 %vm2318_vm3, %v4959_v6  ;;  %4964 = vmatprep.subr.msk.mxu1 %vm2322_vm2, %v6328_v31  ;;  %v5423_v6 = vld [vmem:[#allocation2 + $0xd48] sm:$0xff] }
 0xa17   : > { %4965 = vmatpush1.msk.msra.mxu1 %vm2322_vm2, %v6330_v33  ;;  %2865 = vmatprep.mubr.f32.mxu1 %v6114_v2 }
 0xa1a   : > { %4966 = vmatmul.mubr.msk.f32.vlgmr.msra.gmra.mxu1 %vm2318_vm3, %v4963_v41  ;;  %v5424_v41 = vld [vmem:[#allocation2 + $0xd40] sm:$0xff] }
 0xa1b   : > { %3020 = vmatprep.mubr.f32.mxu1 %v6114_v2 }
 0xa51   : > { %v2940_v42 = vpop.f32.mrf.mxu0 }
 0xa53   : > { %v2942_v7 = vpop.f32.mrf.mxu0 }
 0xa54   : > { %4968 = vmatprep.subr.msk.mxu1 %vm2322_vm2, %v2942_v7  ;;  %v5426_v7 = vld [vmem:[#allocation2 + $0xd30] sm:$0xff] }
 0xa55   : > { %4969 = vmatpush1.msk.msra.mxu1 %vm2322_vm2, %v2940_v42  ;;  %v5425_v42 = vld [vmem:[#allocation2 + $0xd38] sm:$0xff] }
 0xa56   : > { %4970 = vmatmul.mubr.msk.f32.vlgmr.msra.gmra.mxu1 %vm2318_vm3, %v4967_v8  ;;  %3029 = vmatprep.subr.mxu1 %v5369_v9  ;;  %v5427_v8 = vld [vmem:[#allocation2 + $0xd28] sm:$0xff]  ;;  %v5428_v9 = vld [vmem:[#allocation2 + $0xd20] sm:$0xff] }
 0xa57   : > { %3030 = vmatpush1.msra.mxu1 %v5370_v10  ;;  %3093 = vmatprep.mubr.f32.mxu1 %v6328_v31  ;;  %v5429_v10 = vld [vmem:[#allocation2 + $0xd18] sm:$0xff] }
 0xa58   : > { %3031 = vmatprep.subr.mxu1 %v5371_v53  ;;  %v5430_v53 = vld [vmem:[#allocation2 + $0xd10] sm:$0xff] }
 0xa59   : > { %3032 = vmatpush1.msra.mxu1 %v5372_v55  ;;  %v5431_v55 = vld [vmem:[#allocation2 + $0xd08] sm:$0xff] }
 0xa5a   : > { %3033 = vmatprep.subr.mxu1 %v5373_v11  ;;  %v5432_v11 = vld [vmem:[#allocation2 + $0xd00] sm:$0xff] }
 0xa5b   : > { %3034 = vmatpush1.msra.mxu1 %v5374_v12 }
 0xa5c   : > { %3035 = vmatprep.subr.mxu1 %v5375_v13 }
 0xa5d   : > { %3036 = vmatpush1.msra.mxu1 %v5376_v16 }
 0xa5e   : > { %3037 = vmatprep.subr.mxu1 %v5377_v17 }
 0xa5f   : > { %3038 = vmatpush1.msra.mxu1 %v5378_v18 }
 0xa60   : > { %3039 = vmatprep.subr.mxu1 %v5379_v20 }
 0xa61   : > { %3040 = vmatpush1.msra.mxu1 %v5380_v43 }
 0xa62   : > { %3041 = vmatprep.subr.mxu1 %v5381_v63 }
 0xa63   : > { %3042 = vmatpush1.msra.mxu1 %v5382_v22 }
 0xa64   : > { %3043 = vmatprep.subr.mxu1 %v5383_v23 }
 0xa65   : > { %3044 = vmatpush1.msra.mxu1 %v5384_v1 }
 0xa66   : > { %3045 = vmatprep.subr.mxu1 %v5385_v24 }
 0xa67   : > { %3046 = vmatpush1.msra.mxu1 %v5386_v4 }
 0xa68   : > { %3047 = vmatprep.subr.mxu1 %v5387_v25 }
 0xa69   : > { %3048 = vmatpush1.msra.mxu1 %v5388_v26  ;;  %v4971_v26 = vld [vmem:[%s6566_s4 + $0x30] sm:$0x3f] }
 0xa6a   : > { %3049 = vmatprep.subr.mxu1 %v5389_v27  ;;  %v5435_v27 = vld [vmem:[#allocation2 + $0xee8] sm:$0xff] }
 0xa6b   : > { %3050 = vmatpush1.msra.mxu1 %v5390_v28  ;;  %v5436_v28 = vld [vmem:[#allocation2 + $0xee0] sm:$0xff] }
 0xa6c   : > { %3051 = vmatprep.subr.mxu1 %v5391_v29  ;;  %v5437_v29 = vld [vmem:[#allocation2 + $0xed8] sm:$0xff] }
 0xa6d   : > { %3052 = vmatpush1.msra.mxu1 %v5392_v30  ;;  %v5438_v30 = vld [vmem:[#allocation2 + $0xed0] sm:$0xff] }
 0xa6e   : > { %3053 = vmatprep.subr.mxu1 %v5393_v19  ;;  %v5439_v19 = vld [vmem:[#allocation2 + $0xec8] sm:$0xff] }
 0xa6f   : > { %3054 = vmatpush1.msra.mxu1 %v5394_v21  ;;  %v5440_v21 = vld [vmem:[#allocation2 + $0xec0] sm:$0xff] }
 0xa70   : > { %3055 = vmatprep.subr.mxu1 %v5395_v35  ;;  %v5441_v35 = vld [vmem:[#allocation2 + $0xeb8] sm:$0xff] }
 0xa71   : > { %3056 = vmatpush1.msra.mxu1 %v5396_v36  ;;  %v5442_v36 = vld [vmem:[#allocation2 + $0xeb0] sm:$0xff] }
 0xa72   : > { %3057 = vmatprep.subr.mxu1 %v5397_v37  ;;  %v5443_v37 = vld [vmem:[#allocation2 + $0xea8] sm:$0xff] }
 0xa73   : > { %3058 = vmatpush1.msra.mxu1 %v5398_v14  ;;  %v5444_v14 = vld [vmem:[#allocation2 + $0xea0] sm:$0xff] }
 0xa74   : > { %3059 = vmatprep.subr.mxu1 %v5399_v15  ;;  %v5445_v15 = vld [vmem:[#allocation2 + $0xe98] sm:$0xff] }
 0xa75   : > { %3060 = vmatpush1.msra.mxu1 %v5400_v38  ;;  %v5446_v38 = vld [vmem:[#allocation2 + $0xe90] sm:$0xff] }
 0xa76   : > { %3061 = vmatprep.subr.mxu1 %v5401_v39  ;;  %v5447_v39 = vld [vmem:[#allocation2 + $0xe88] sm:$0xff] }
 0xa77   : > { %3062 = vmatpush2.msra.mxu1 %v5402_v40  ;;  %v5448_v40 = vld [vmem:[#allocation2 + $0xe80] sm:$0xff] }
 0xa78   : > { %3063 = vmatprep.subr.mxu1 %v5403_v56  ;;  %v5449_v56 = vld [vmem:[#allocation2 + $0xe78] sm:$0xff] }
 0xa79   : > { %3064 = vmatpush2.msra.mxu1 %v5404_v44  ;;  %v5450_v44 = vld [vmem:[#allocation2 + $0xe70] sm:$0xff] }
 0xa7a   : > { %3065 = vmatprep.subr.mxu1 %v5405_v45  ;;  %v5451_v45 = vld [vmem:[#allocation2 + $0xe68] sm:$0xff] }
 0xa7b   : > { %3066 = vmatpush2.msra.mxu1 %v5406_v46  ;;  %v5452_v46 = vld [vmem:[#allocation2 + $0xe60] sm:$0xff] }
 0xa7c   : > { %3067 = vmatprep.subr.mxu1 %v5407_v47  ;;  %v5453_v47 = vld [vmem:[#allocation2 + $0xe58] sm:$0xff] }
 0xa7d   : > { %3068 = vmatpush2.msra.mxu1 %v5408_v48  ;;  %v5454_v48 = vld [vmem:[#allocation2 + $0xe50] sm:$0xff] }
 0xa7e   : > { %3069 = vmatprep.subr.mxu1 %v5409_v49  ;;  %v5455_v49 = vld [vmem:[#allocation2 + $0xe48] sm:$0xff] }
 0xa7f   : > { %3070 = vmatpush2.msra.mxu1 %v5410_v50  ;;  %v5456_v50 = vld [vmem:[#allocation2 + $0xe40] sm:$0xff] }
 0xa80   : > { %3071 = vmatprep.subr.mxu1 %v5411_v51  ;;  %v5457_v51 = vld [vmem:[#allocation2 + $0xe38] sm:$0xff] }
 0xa81   : > { %3072 = vmatpush2.msra.mxu1 %v5412_v52  ;;  %v5458_v52 = vld [vmem:[#allocation2 + $0xe30] sm:$0xff] }
 0xa82   : > { %3073 = vmatprep.subr.mxu1 %v5413_v54  ;;  %v5459_v54 = vld [vmem:[#allocation2 + $0xe28] sm:$0xff] }
 0xa83   : > { %3074 = vmatpush2.msra.mxu1 %v5414_v57  ;;  %v5460_v57 = vld [vmem:[#allocation2 + $0xe20] sm:$0xff] }
 0xa84   : > { %3075 = vmatprep.subr.mxu1 %v5415_v58  ;;  %v5461_v58 = vld [vmem:[#allocation2 + $0xe18] sm:$0xff] }
 0xa85   : > { %3076 = vmatpush2.msra.mxu1 %v5416_v59  ;;  %v5462_v59 = vld [vmem:[#allocation2 + $0xe10] sm:$0xff] }
 0xa86   : > { %3077 = vmatprep.subr.mxu1 %v5417_v32  ;;  %v5463_v32 = vld [vmem:[#allocation2 + $0xe08] sm:$0xff] }
 0xa87   : > { %3078 = vmatpush2.msra.mxu1 %v5418_v34  ;;  %v5464_v34 = vld [vmem:[#allocation2 + $0xe00] sm:$0xff] }
 0xa88   : > { %3079 = vmatprep.subr.mxu1 %v5419_v60  ;;  %v5465_v60 = vld [vmem:[#allocation2 + $0xff8] sm:$0xff] }
 0xa89   : > { %3080 = vmatpush2.msra.mxu1 %v5420_v62  ;;  %v5466_v62 = vld [vmem:[#allocation2 + $0xff0] sm:$0xff] }
 0xa8a   : > { %3081 = vmatprep.subr.mxu1 %v5421_v3  ;;  %v5467_v3 = vld [vmem:[#allocation2 + $0xfe8] sm:$0xff] }
 0xa8b   : > { %3082 = vmatpush2.msra.mxu1 %v5422_v5  ;;  %v5468_v5 = vld [vmem:[#allocation2 + $0xfe0] sm:$0xff] }
 0xa8c   : > { %3083 = vmatprep.subr.mxu1 %v5423_v6  ;;  %v5469_v6 = vld [vmem:[#allocation2 + $0xfd8] sm:$0xff] }
 0xa8d   : > { %3084 = vmatpush2.msra.mxu1 %v5424_v41  ;;  %v5470_v41 = vld [vmem:[#allocation2 + $0xfd0] sm:$0xff] }
 0xa8e   : > { %3085 = vmatprep.subr.mxu1 %v5425_v42  ;;  %v5471_v42 = vld [vmem:[#allocation2 + $0xfc8] sm:$0xff] }
 0xa8f   : > { %3086 = vmatpush2.msra.mxu1 %v5426_v7  ;;  %v5472_v7 = vld [vmem:[#allocation2 + $0xfc0] sm:$0xff] }
 0xa90   : > { %3087 = vmatprep.subr.mxu1 %v5427_v8  ;;  %v5473_v8 = vld [vmem:[#allocation2 + $0xfb8] sm:$0xff] }
 0xa91   : > { %3088 = vmatpush2.msra.mxu1 %v5428_v9  ;;  %v5474_v9 = vld [vmem:[#allocation2 + $0xfb0] sm:$0xff] }
 0xa92   : > { %3089 = vmatprep.subr.mxu1 %v5429_v10  ;;  %v5475_v10 = vld [vmem:[#allocation2 + $0xfa8] sm:$0xff] }
 0xa93   : > { %3090 = vmatpush2.msra.mxu1 %v5430_v53  ;;  %v5476_v53 = vld [vmem:[#allocation2 + $0xfa0] sm:$0xff] }
 0xa94   : > { %3091 = vmatprep.subr.mxu1 %v5431_v55  ;;  %v5477_v55 = vld [vmem:[#allocation2 + $0xf98] sm:$0xff] }
 0xa95   : > { %3092 = vmatpush2.msra.mxu1 %v5432_v11  ;;  %v5478_v11 = vld [vmem:[#allocation2 + $0xf90] sm:$0xff] }
 0xa96   : > { %3094 = vmatmul.mubr.f32.vlgmr.msra.gmra.mxu1 %v6330_v33 }
 0xa97   : > { %3330 = vmatprep.mubr.f32.mxu1 %v6114_v2 }
 0xad6   : > { %v2783_v12 = vpop.f32.mrf.mxu1 }
 0xad7   : > { %v2788_v13 = vadd.f32 %v2783_v12, %v6371_v61  ;;  %v5433_v61 = vld [vmem:[#allocation2 + $0xef8] sm:$0xff]  ;;  %v5479_v12 = vld [vmem:[#allocation2 + $0xf88] sm:$0xff] }
 0xad8   : > { %v2785_v16 = vpop.f32.mrf.mxu1 }
 0xad9   : > { %v2789_v17 = vadd.f32 %v2785_v16, %v6373_v0  ;;  %v5434_v0 = vld [vmem:[#allocation2 + $0xef0] sm:$0xff]  ;;  %v5481_v16 = vld [vmem:[#allocation2 + $0xf78] sm:$0xff] }
 0xada   : > { %v2867_v18 = vpop.f32.mrf.mxu1 }
 0xadb   : > { %v2872_v20 = vadd.f32 %v2867_v18, %v2788_v13  ;;  %v5480_v13 = vld [vmem:[#allocation2 + $0xf80] sm:$0xff]  ;;  %v5483_v18 = vld [vmem:[#allocation2 + $0xf68] sm:$0xff] }
 0xadc   : > { %v2869_v43 = vpop.f32.mrf.mxu1 }
 0xadd   : > { %v2873_v63 = vadd.f32 %v2869_v43, %v2789_v17  ;;  %v5482_v17 = vld [vmem:[#allocation2 + $0xf70] sm:$0xff]  ;;  %v5485_v43 = vld [vmem:[#allocation2 + $0xf58] sm:$0xff] }
 0xb16   : > { %v3022_v22 = vpop.f32.mrf.mxu1 }
 0xb17   : > { %v6402_v23 = vadd.f32 %v3022_v22, %v2872_v20  ;;  %v5484_v20 = vld [vmem:[#allocation2 + $0xf60] sm:$0xff]  ;;  %v5487_v22 = vld [vmem:[#allocation2 + $0xf48] sm:$0xff] }
 0xb18   : > { %v3024_v1 = vpop.f32.mrf.mxu1 }
 0xb19   : > { %v6404_v24 = vadd.f32 %v3024_v1, %v2873_v63  ;;  %v5486_v63 = vld [vmem:[#allocation2 + $0xf50] sm:$0xff]  ;;  %v5488_v1 = vld [vmem:[#allocation2 + $0xf40] sm:$0xff] }
 0xb56   : > { %v3095_v4 = vpop.f32.mrf.mxu1 }
 0xb58   : > { %v3097_v25 = vpop.f32.mrf.mxu1 }
 0xb59   : > { %4972 = vmatprep.subr.msk.mxu0 %vm2322_vm2, %v3097_v25  ;;  %v5490_v25 = vld [vmem:[#allocation2 + $0xf30] sm:$0xff] }
 0xb5a   : > { %4973 = vmatpush1.msk.msra.mxu0 %vm2322_vm2, %v3095_v4  ;;  %v5489_v4 = vld [vmem:[#allocation2 + $0xf38] sm:$0xff] }
 0xb5b   : > { %4974 = vmatmul.mubr.msk.f32.vlgmr.msra.gmra.mxu0 %vm2318_vm3, %v4971_v26  ;;  %3184 = vmatprep.subr.mxu0 %v5433_v61  ;;  %v5491_v26 = vld [vmem:[#allocation2 + $0xf28] sm:$0xff]  ;;  %v5492_v61 = vld [vmem:[#allocation2 + $0xf20] sm:$0xff] }
 0xb5c   : > { %3185 = vmatpush1.msra.mxu0 %v5434_v0  ;;  %3248 = vmatprep.mubr.f32.mxu0 %v6328_v31  ;;  %v5493_v0 = vld [vmem:[#allocation2 + $0xf18] sm:$0xff] }
 0xb5d   : > { %3186 = vmatprep.subr.mxu0 %v5435_v27  ;;  %v5494_v27 = vld [vmem:[#allocation2 + $0xf10] sm:$0xff] }
 0xb5e   : > { %3187 = vmatpush1.msra.mxu0 %v5436_v28  ;;  %v5495_v28 = vld [vmem:[#allocation2 + $0xf08] sm:$0xff] }
 0xb5f   : > { %3188 = vmatprep.subr.mxu0 %v5437_v29  ;;  %v5496_v29 = vld [vmem:[#allocation2 + $0xf00] sm:$0xff] }
 0xb60   : > { %3189 = vmatpush1.msra.mxu0 %v5438_v30 }
 0xb61   : > { %3190 = vmatprep.subr.mxu0 %v5439_v19 }
 0xb62   : > { %3191 = vmatpush1.msra.mxu0 %v5440_v21 }
 0xb63   : > { %3192 = vmatprep.subr.mxu0 %v5441_v35 }
 0xb64   : > { %3193 = vmatpush1.msra.mxu0 %v5442_v36 }
 0xb65   : > { %3194 = vmatprep.subr.mxu0 %v5443_v37 }
 0xb66   : > { %3195 = vmatpush1.msra.mxu0 %v5444_v14  ;;  %v4975_v14 = vld [vmem:[%s6566_s4 + $0x38] sm:$0x3f] }
 0xb67   : > { %3196 = vmatprep.subr.mxu0 %v5445_v15  ;;  %v5497_v15 = vld [vmem:[#allocation2 + $0x10f8] sm:$0xff] }
 0xb68   : > { %3197 = vmatpush1.msra.mxu0 %v5446_v38  ;;  %v5500_v38 = vld [vmem:[#allocation2 + $0x10e0] sm:$0xff] }
 0xb69   : > { %3198 = vmatprep.subr.mxu0 %v5447_v39  ;;  %v5501_v39 = vld [vmem:[#allocation2 + $0x10d8] sm:$0xff] }
 0xb6a   : > { %3199 = vmatpush1.msra.mxu0 %v5448_v40  ;;  %v5502_v40 = vld [vmem:[#allocation2 + $0x10d0] sm:$0xff] }
 0xb6b   : > { %3200 = vmatprep.subr.mxu0 %v5449_v56  ;;  %v5503_v56 = vld [vmem:[#allocation2 + $0x10c8] sm:$0xff] }
 0xb6c   : > { %3201 = vmatpush1.msra.mxu0 %v5450_v44  ;;  %v5504_v44 = vld [vmem:[#allocation2 + $0x10c0] sm:$0xff] }
 0xb6d   : > { %3202 = vmatprep.subr.mxu0 %v5451_v45  ;;  %v5505_v45 = vld [vmem:[#allocation2 + $0x10b8] sm:$0xff] }
 0xb6e   : > { %3203 = vmatpush1.msra.mxu0 %v5452_v46  ;;  %v5506_v46 = vld [vmem:[#allocation2 + $0x10b0] sm:$0xff] }
 0xb6f   : > { %3204 = vmatprep.subr.mxu0 %v5453_v47  ;;  %v5507_v47 = vld [vmem:[#allocation2 + $0x10a8] sm:$0xff] }
 0xb70   : > { %3205 = vmatpush1.msra.mxu0 %v5454_v48  ;;  %v5508_v48 = vld [vmem:[#allocation2 + $0x10a0] sm:$0xff] }
 0xb71   : > { %3206 = vmatprep.subr.mxu0 %v5455_v49  ;;  %v5510_v49 = vld [vmem:[#allocation2 + $0x1090] sm:$0xff] }
 0xb72   : > { %3207 = vmatpush1.msra.mxu0 %v5456_v50  ;;  %v5511_v50 = vld [vmem:[#allocation2 + $0x1088] sm:$0xff] }
 0xb73   : > { %3208 = vmatprep.subr.mxu0 %v5457_v51  ;;  %v5512_v51 = vld [vmem:[#allocation2 + $0x1080] sm:$0xff] }
 0xb74   : > { %3209 = vmatpush1.msra.mxu0 %v5458_v52  ;;  %v5513_v52 = vld [vmem:[#allocation2 + $0x1078] sm:$0xff] }
 0xb75   : > { %3210 = vmatprep.subr.mxu0 %v5459_v54  ;;  %v5514_v54 = vld [vmem:[#allocation2 + $0x1070] sm:$0xff] }
 0xb76   : > { %3211 = vmatpush1.msra.mxu0 %v5460_v57  ;;  %v5515_v57 = vld [vmem:[#allocation2 + $0x1068] sm:$0xff] }
 0xb77   : > { %3212 = vmatprep.subr.mxu0 %v5461_v58  ;;  %v5516_v58 = vld [vmem:[#allocation2 + $0x1060] sm:$0xff] }
 0xb78   : > { %3213 = vmatpush1.msra.mxu0 %v5462_v59  ;;  %v5517_v59 = vld [vmem:[#allocation2 + $0x1058] sm:$0xff] }
 0xb79   : > { %3214 = vmatprep.subr.mxu0 %v5463_v32  ;;  %v5518_v32 = vld [vmem:[#allocation2 + $0x1050] sm:$0xff] }
 0xb7a   : > { %3215 = vmatpush1.msra.mxu0 %v5464_v34  ;;  %v5519_v34 = vld [vmem:[#allocation2 + $0x1048] sm:$0xff] }
 0xb7b   : > { %3216 = vmatprep.subr.mxu0 %v5465_v60  ;;  %v5520_v60 = vld [vmem:[#allocation2 + $0x1040] sm:$0xff] }
 0xb7c   : > { %3217 = vmatpush2.msra.mxu0 %v5466_v62  ;;  %v5521_v62 = vld [vmem:[#allocation2 + $0x1038] sm:$0xff] }
 0xb7d   : > { %3218 = vmatprep.subr.mxu0 %v5467_v3  ;;  %v5522_v3 = vld [vmem:[#allocation2 + $0x1030] sm:$0xff] }
 0xb7e   : > { %3219 = vmatpush2.msra.mxu0 %v5468_v5  ;;  %v5523_v5 = vld [vmem:[#allocation2 + $0x1028] sm:$0xff] }
 0xb7f   : > { %3220 = vmatprep.subr.mxu0 %v5469_v6  ;;  %v5524_v6 = vld [vmem:[#allocation2 + $0x1020] sm:$0xff] }
 0xb80   : > { %3221 = vmatpush2.msra.mxu0 %v5470_v41  ;;  %v5525_v41 = vld [vmem:[#allocation2 + $0x1018] sm:$0xff] }
 0xb81   : > { %3222 = vmatprep.subr.mxu0 %v5471_v42  ;;  %v5526_v42 = vld [vmem:[#allocation2 + $0x1010] sm:$0xff] }
 0xb82   : > { %3223 = vmatpush2.msra.mxu0 %v5472_v7  ;;  %v5527_v7 = vld [vmem:[#allocation2 + $0x1008] sm:$0xff] }
 0xb83   : > { %3224 = vmatprep.subr.mxu0 %v5473_v8  ;;  %v5528_v8 = vld [vmem:[#allocation2 + $0x1000] sm:$0xff] }
 0xb84   : > { %3225 = vmatpush2.msra.mxu0 %v5474_v9  ;;  %v5529_v9 = vld [vmem:[#allocation2 + $0x11f8] sm:$0xff] }
 0xb85   : > { %3226 = vmatprep.subr.mxu0 %v5475_v10  ;;  %v5530_v10 = vld [vmem:[#allocation2 + $0x11f0] sm:$0xff] }
 0xb86   : > { %3227 = vmatpush2.msra.mxu0 %v5476_v53  ;;  %v5531_v53 = vld [vmem:[#allocation2 + $0x11e8] sm:$0xff] }
 0xb87   : > { %3228 = vmatprep.subr.mxu0 %v5477_v55  ;;  %v5532_v55 = vld [vmem:[#allocation2 + $0x11e0] sm:$0xff] }
 0xb88   : > { %3229 = vmatpush2.msra.mxu0 %v5478_v11  ;;  %v5533_v11 = vld [vmem:[#allocation2 + $0x11d8] sm:$0xff] }
 0xb89   : > { %3230 = vmatprep.subr.mxu0 %v5479_v12  ;;  %v5534_v12 = vld [vmem:[#allocation2 + $0x11d0] sm:$0xff] }
 0xb8a   : > { %3231 = vmatpush2.msra.mxu0 %v5480_v13  ;;  %v5535_v13 = vld [vmem:[#allocation2 + $0x11c8] sm:$0xff] }
 0xb8b   : > { %3232 = vmatprep.subr.mxu0 %v5481_v16  ;;  %v5536_v16 = vld [vmem:[#allocation2 + $0x11c0] sm:$0xff] }
 0xb8c   : > { %3233 = vmatpush2.msra.mxu0 %v5482_v17  ;;  %v5537_v17 = vld [vmem:[#allocation2 + $0x11b8] sm:$0xff] }
 0xb8d   : > { %3234 = vmatprep.subr.mxu0 %v5483_v18  ;;  %v5538_v18 = vld [vmem:[#allocation2 + $0x11b0] sm:$0xff] }
 0xb8e   : > { %3235 = vmatpush2.msra.mxu0 %v5484_v20  ;;  %v5539_v20 = vld [vmem:[#allocation2 + $0x11a8] sm:$0xff] }
 0xb8f   : > { %3236 = vmatprep.subr.mxu0 %v5485_v43  ;;  %v5540_v43 = vld [vmem:[#allocation2 + $0x11a0] sm:$0xff] }
 0xb90   : > { %3237 = vmatpush2.msra.mxu0 %v5486_v63  ;;  %v5541_v63 = vld [vmem:[#allocation2 + $0x1198] sm:$0xff] }
 0xb91   : > { %3238 = vmatprep.subr.mxu0 %v5487_v22  ;;  %v5542_v22 = vld [vmem:[#allocation2 + $0x1190] sm:$0xff] }
 0xb92   : > { %3239 = vmatpush2.msra.mxu0 %v5488_v1  ;;  %v5543_v1 = vld [vmem:[#allocation2 + $0x1188] sm:$0xff] }
 0xb93   : > { %3240 = vmatprep.subr.mxu0 %v5489_v4  ;;  %v5544_v4 = vld [vmem:[#allocation2 + $0x1180] sm:$0xff] }
 0xb94   : > { %3241 = vmatpush2.msra.mxu0 %v5490_v25  ;;  %v5545_v25 = vld [vmem:[#allocation2 + $0x1178] sm:$0xff] }
 0xb95   : > { %3242 = vmatprep.subr.mxu0 %v5491_v26  ;;  %v5546_v26 = vld [vmem:[#allocation2 + $0x1170] sm:$0xff] }
 0xb96   : > { %3243 = vmatpush2.msra.mxu0 %v5492_v61  ;;  %v5547_v61 = vld [vmem:[#allocation2 + $0x1168] sm:$0xff] }
 0xb97   : > { %3244 = vmatprep.subr.mxu0 %v5493_v0  ;;  %v5548_v0 = vld [vmem:[#allocation2 + $0x1160] sm:$0xff] }
 0xb98   : > { %3245 = vmatpush2.msra.mxu0 %v5494_v27  ;;  %v5549_v27 = vld [vmem:[#allocation2 + $0x1158] sm:$0xff] }
 0xb99   : > { %3246 = vmatprep.subr.mxu0 %v5495_v28  ;;  %v5550_v28 = vld [vmem:[#allocation2 + $0x1150] sm:$0xff] }
 0xb9a   : > { %3247 = vmatpush2.msra.mxu0 %v5496_v29  ;;  %v5551_v29 = vld [vmem:[#allocation2 + $0x1148] sm:$0xff] }
 0xb9b   : > { %3249 = vmatmul.mubr.f32.vlgmr.msra.gmra.mxu0 %v6330_v33 }
 0xb9c   : > { %3485 = vmatprep.mubr.f32.mxu0 %v6114_v2 }
 0xc1b   : > { %v3177_v30 = vpop.f32.mrf.mxu0 }
 0xc1c   : > { %v6416_v19 = vadd.f32 %v3177_v30, %v6402_v23  ;;  %v5498_v23 = vld [vmem:[#allocation2 + $0x10f0] sm:$0xff]  ;;  %v5552_v30 = vld [vmem:[#allocation2 + $0x1140] sm:$0xff] }
 0xc1d   : > { %v3179_v21 = vpop.f32.mrf.mxu0 }
 0xc1e   : > { %v6419_v35 = vadd.f32 %v3179_v21, %v6404_v24  ;;  %v5499_v24 = vld [vmem:[#allocation2 + $0x10e8] sm:$0xff]  ;;  %v5553_v21 = vld [vmem:[#allocation2 + $0x1138] sm:$0xff] }
 0xc5b   : > { %v3250_v36 = vpop.f32.mrf.mxu0 }
 0xc5d   : > { %v3252_v37 = vpop.f32.mrf.mxu0 }
 0xc5e   : > { %4976 = vmatprep.subr.msk.mxu1 %vm2322_vm2, %v3252_v37  ;;  %v5555_v37 = vld [vmem:[#allocation2 + $0x1128] sm:$0xff] }
 0xc5f   : > { %4977 = vmatpush1.msk.msra.mxu1 %vm2322_vm2, %v3250_v36  ;;  %v5554_v36 = vld [vmem:[#allocation2 + $0x1130] sm:$0xff] }
 0xc60   : > { %4978 = vmatmul.mubr.msk.f32.vlgmr.msra.gmra.mxu1 %vm2318_vm3, %v4975_v14  ;;  %3339 = vmatprep.subr.mxu1 %v5497_v15  ;;  %v5556_v14 = vld [vmem:[#allocation2 + $0x1120] sm:$0xff]  ;;  %v5557_v15 = vld [vmem:[#allocation2 + $0x1118] sm:$0xff] }
 0xc61   : > { %3340 = vmatpush1.msra.mxu1 %v5498_v23  ;;  %3403 = vmatprep.mubr.f32.mxu1 %v6328_v31  ;;  %v5509_v31 = vld [vmem:[#allocation2 + $0x1098] sm:$0xff]  ;;  %v5558_v23 = vld [vmem:[#allocation2 + $0x1110] sm:$0xff] }
 0xc62   : > { %3341 = vmatprep.subr.mxu1 %v5499_v24  ;;  %v5559_v24 = vld [vmem:[#allocation2 + $0x1108] sm:$0xff] }
 0xc63   : > { %3342 = vmatpush1.msra.mxu1 %v5500_v38  ;;  %v5560_v38 = vld [vmem:[#allocation2 + $0x1100] sm:$0xff] }
 0xc64   : > { %3343 = vmatprep.subr.mxu1 %v5501_v39  ;;  %v5561_v39 = vld [vmem:[#allocation2 + $0x2f8] sm:$0xff] }
 0xc65   : > { %3344 = vmatpush1.msra.mxu1 %v5502_v40  ;;  %v5562_v40 = vld [vmem:[#allocation2 + $0x2f0] sm:$0xff] }
 0xc66   : > { %3345 = vmatprep.subr.mxu1 %v5503_v56  ;;  %v5563_v56 = vld [vmem:[#allocation2 + $0x2e8] sm:$0xff] }
 0xc67   : > { %3346 = vmatpush1.msra.mxu1 %v5504_v44  ;;  %v5564_v44 = vld [vmem:[#allocation2 + $0x2e0] sm:$0xff] }
 0xc68   : > { %3347 = vmatprep.subr.mxu1 %v5505_v45  ;;  %v5565_v45 = vld [vmem:[#allocation2 + $0x2d8] sm:$0xff] }
 0xc69   : > { %3348 = vmatpush1.msra.mxu1 %v5506_v46  ;;  %v5566_v46 = vld [vmem:[#allocation2 + $0x2d0] sm:$0xff] }
 0xc6a   : > { %3349 = vmatprep.subr.mxu1 %v5507_v47  ;;  %v5567_v47 = vld [vmem:[#allocation2 + $0x2c8] sm:$0xff] }
 0xc6b   : > { %3350 = vmatpush1.msra.mxu1 %v5508_v48  ;;  %v5568_v48 = vld [vmem:[#allocation2 + $0x2c0] sm:$0xff] }
 0xc6c   : > { %3351 = vmatprep.subr.mxu1 %v5509_v31  ;;  %v5569_v31 = vld [vmem:[#allocation2 + $0x2b8] sm:$0xff] }
 0xc6d   : > { %3352 = vmatpush1.msra.mxu1 %v5510_v49  ;;  %v5570_v49 = vld [vmem:[#allocation2 + $0x2b0] sm:$0xff] }
 0xc6e   : > { %3353 = vmatprep.subr.mxu1 %v5511_v50  ;;  %v5572_v50 = vld [vmem:[#allocation2 + $0x2a0] sm:$0xff] }
 0xc6f   : > { %3354 = vmatpush1.msra.mxu1 %v5512_v51  ;;  %v5573_v51 = vld [vmem:[#allocation2 + $0x298] sm:$0xff] }
 0xc70   : > { %3355 = vmatprep.subr.mxu1 %v5513_v52  ;;  %v5574_v52 = vld [vmem:[#allocation2 + $0x290] sm:$0xff] }
 0xc71   : > { %3356 = vmatpush1.msra.mxu1 %v5514_v54  ;;  %v5575_v54 = vld [vmem:[#allocation2 + $0x288] sm:$0xff] }
 0xc72   : > { %3357 = vmatprep.subr.mxu1 %v5515_v57  ;;  %v5576_v57 = vld [vmem:[#allocation2 + $0x280] sm:$0xff] }
 0xc73   : > { %3358 = vmatpush1.msra.mxu1 %v5516_v58  ;;  %v5577_v58 = vld [vmem:[#allocation2 + $0x278] sm:$0xff] }
 0xc74   : > { %3359 = vmatprep.subr.mxu1 %v5517_v59  ;;  %v5578_v59 = vld [vmem:[#allocation2 + $0x270] sm:$0xff] }
 0xc75   : > { %3360 = vmatpush1.msra.mxu1 %v5518_v32  ;;  %v5579_v32 = vld [vmem:[#allocation2 + $0x268] sm:$0xff] }
 0xc76   : > { %3361 = vmatprep.subr.mxu1 %v5519_v34  ;;  %v5580_v34 = vld [vmem:[#allocation2 + $0x260] sm:$0xff] }
 0xc77   : > { %3362 = vmatpush1.msra.mxu1 %v5520_v60  ;;  %v5581_v60 = vld [vmem:[#allocation2 + $0x258] sm:$0xff] }
 0xc78   : > { %3363 = vmatprep.subr.mxu1 %v5521_v62  ;;  %v5582_v62 = vld [vmem:[#allocation2 + $0x250] sm:$0xff] }
 0xc79   : > { %3364 = vmatpush1.msra.mxu1 %v5522_v3  ;;  %v5583_v3 = vld [vmem:[#allocation2 + $0x248] sm:$0xff] }
 0xc7a   : > { %3365 = vmatprep.subr.mxu1 %v5523_v5  ;;  %v5584_v5 = vld [vmem:[#allocation2 + $0x240] sm:$0xff] }
 0xc7b   : > { %3366 = vmatpush1.msra.mxu1 %v5524_v6  ;;  %v5585_v6 = vld [vmem:[#allocation2 + $0x238] sm:$0xff] }
 0xc7c   : > { %3367 = vmatprep.subr.mxu1 %v5525_v41  ;;  %v5586_v41 = vld [vmem:[#allocation2 + $0x230] sm:$0xff] }
 0xc7d   : > { %3368 = vmatpush1.msra.mxu1 %v5526_v42  ;;  %v5587_v42 = vld [vmem:[#allocation2 + $0x228] sm:$0xff] }
 0xc7e   : > { %3369 = vmatprep.subr.mxu1 %v5527_v7  ;;  %v5588_v7 = vld [vmem:[#allocation2 + $0x220] sm:$0xff] }
 0xc7f   : > { %3370 = vmatpush1.msra.mxu1 %v5528_v8  ;;  %v5589_v8 = vld [vmem:[#allocation2 + $0x218] sm:$0xff] }
 0xc80   : > { %3371 = vmatprep.subr.mxu1 %v5529_v9  ;;  %v5590_v9 = vld [vmem:[#allocation2 + $0x210] sm:$0xff] }
 0xc81   : > { %3372 = vmatpush2.msra.mxu1 %v5530_v10  ;;  %v5591_v10 = vld [vmem:[#allocation2 + $0x208] sm:$0xff] }
 0xc82   : > { %3373 = vmatprep.subr.mxu1 %v5531_v53  ;;  %v5592_v53 = vld [vmem:[#allocation2 + $0x200] sm:$0xff] }
 0xc83   : > { %3374 = vmatpush2.msra.mxu1 %v5532_v55  ;;  %v5593_v55 = vld [vmem:[#allocation2 + $0x3f8] sm:$0xff] }
 0xc84   : > { %3375 = vmatprep.subr.mxu1 %v5533_v11  ;;  %v5594_v11 = vld [vmem:[#allocation2 + $0x3f0] sm:$0xff] }
 0xc85   : > { %3376 = vmatpush2.msra.mxu1 %v5534_v12  ;;  %v5595_v12 = vld [vmem:[#allocation2 + $0x3e8] sm:$0xff] }
 0xc86   : > { %3377 = vmatprep.subr.mxu1 %v5535_v13  ;;  %v5596_v13 = vld [vmem:[#allocation2 + $0x3e0] sm:$0xff] }
 0xc87   : > { %3378 = vmatpush2.msra.mxu1 %v5536_v16  ;;  %v5597_v16 = vld [vmem:[#allocation2 + $0x3d8] sm:$0xff] }
 0xc88   : > { %3379 = vmatprep.subr.mxu1 %v5537_v17  ;;  %v5598_v17 = vld [vmem:[#allocation2 + $0x3d0] sm:$0xff] }
 0xc89   : > { %3380 = vmatpush2.msra.mxu1 %v5538_v18  ;;  %v5599_v18 = vld [vmem:[#allocation2 + $0x3c8] sm:$0xff] }
 0xc8a   : > { %3381 = vmatprep.subr.mxu1 %v5539_v20  ;;  %v5600_v20 = vld [vmem:[#allocation2 + $0x3c0] sm:$0xff] }
 0xc8b   : > { %3382 = vmatpush2.msra.mxu1 %v5540_v43  ;;  %v5601_v43 = vld [vmem:[#allocation2 + $0x3b8] sm:$0xff] }
 0xc8c   : > { %3383 = vmatprep.subr.mxu1 %v5541_v63  ;;  %v5602_v63 = vld [vmem:[#allocation2 + $0x3b0] sm:$0xff] }
 0xc8d   : > { %3384 = vmatpush2.msra.mxu1 %v5542_v22  ;;  %v5603_v22 = vld [vmem:[#allocation2 + $0x3a8] sm:$0xff] }
 0xc8e   : > { %3385 = vmatprep.subr.mxu1 %v5543_v1  ;;  %v5604_v1 = vld [vmem:[#allocation2 + $0x3a0] sm:$0xff] }
 0xc8f   : > { %3386 = vmatpush2.msra.mxu1 %v5544_v4  ;;  %v5605_v4 = vld [vmem:[#allocation2 + $0x398] sm:$0xff] }
 0xc90   : > { %3387 = vmatprep.subr.mxu1 %v5545_v25  ;;  %v5606_v25 = vld [vmem:[#allocation2 + $0x390] sm:$0xff] }
 0xc91   : > { %3388 = vmatpush2.msra.mxu1 %v5546_v26  ;;  %v5607_v26 = vld [vmem:[#allocation2 + $0x388] sm:$0xff] }
 0xc92   : > { %3389 = vmatprep.subr.mxu1 %v5547_v61  ;;  %v5608_v61 = vld [vmem:[#allocation2 + $0x380] sm:$0xff] }
 0xc93   : > { %3390 = vmatpush2.msra.mxu1 %v5548_v0  ;;  %v5609_v0 = vld [vmem:[#allocation2 + $0x378] sm:$0xff] }
 0xc94   : > { %3391 = vmatprep.subr.mxu1 %v5549_v27  ;;  %v5610_v27 = vld [vmem:[#allocation2 + $0x370] sm:$0xff] }
 0xc95   : > { %3392 = vmatpush2.msra.mxu1 %v5550_v28  ;;  %v5611_v28 = vld [vmem:[#allocation2 + $0x368] sm:$0xff] }
 0xc96   : > { %3393 = vmatprep.subr.mxu1 %v5551_v29  ;;  %v5612_v29 = vld [vmem:[#allocation2 + $0x360] sm:$0xff] }
 0xc97   : > { %3394 = vmatpush2.msra.mxu1 %v5552_v30  ;;  %v5613_v30 = vld [vmem:[#allocation2 + $0x358] sm:$0xff] }
 0xc98   : > { %3395 = vmatprep.subr.mxu1 %v5553_v21  ;;  %v5614_v21 = vld [vmem:[#allocation2 + $0x350] sm:$0xff] }
 0xc99   : > { %3396 = vmatpush2.msra.mxu1 %v5554_v36  ;;  %v5615_v36 = vld [vmem:[#allocation2 + $0x348] sm:$0xff] }
 0xc9a   : > { %3397 = vmatprep.subr.mxu1 %v5555_v37  ;;  %v5616_v37 = vld [vmem:[#allocation2 + $0x340] sm:$0xff] }
 0xc9b   : > { %3398 = vmatpush2.msra.mxu1 %v5556_v14  ;;  %v5617_v14 = vld [vmem:[#allocation2 + $0x338] sm:$0xff] }
 0xc9c   : > { %3399 = vmatprep.subr.mxu1 %v5557_v15  ;;  %v5618_v15 = vld [vmem:[#allocation2 + $0x330] sm:$0xff] }
 0xc9d   : > { %3400 = vmatpush2.msra.mxu1 %v5558_v23  ;;  %v5619_v23 = vld [vmem:[#allocation2 + $0x328] sm:$0xff] }
 0xc9e   : > { %3401 = vmatprep.subr.mxu1 %v5559_v24  ;;  %v5620_v24 = vld [vmem:[#allocation2 + $0x320] sm:$0xff] }
 0xc9f   : > { %3402 = vmatpush2.msra.mxu1 %v5560_v38  ;;  %v5621_v38 = vld [vmem:[#allocation2 + $0x318] sm:$0xff] }
 0xca0   : > { %3404 = vmatmul.mubr.f32.vlgmr.msra.gmra.mxu1 %v6330_v33  ;;  %3576 = vmatprep.subr.mxu1 %v5561_v39  ;;  %v5571_v33 = vld [vmem:[#allocation2 + $0x2a8] sm:$0xff]  ;;  %v5622_v39 = vld [vmem:[#allocation2 + $0x310] sm:$0xff] }
 0xca1   : > { %3577 = vmatpush1.msra.mxu1 %v5562_v40  ;;  %v5623_v40 = vld [vmem:[#allocation2 + $0x308] sm:$0xff] }
 0xca2   : > { %3578 = vmatprep.subr.mxu1 %v5563_v56  ;;  %v5624_v56 = vld [vmem:[#allocation2 + $0x300] sm:$0xff] }
 0xca3   : > { %3579 = vmatpush1.msra.mxu1 %v5564_v44 }
 0xca4   : > { %3580 = vmatprep.subr.mxu1 %v5565_v45 }
 0xca5   : > { %3581 = vmatpush1.msra.mxu1 %v5566_v46 }
 0xca6   : > { %3582 = vmatprep.subr.mxu1 %v5567_v47 }
 0xca7   : > { %3583 = vmatpush1.msra.mxu1 %v5568_v48 }
 0xca8   : > { %3584 = vmatprep.subr.mxu1 %v5569_v31 }
 0xca9   : > { %3585 = vmatpush1.msra.mxu1 %v5570_v49  ;;  %v4979_v49 = vld [vmem:[%s6566_s4 + $0x40] sm:$0x3f] }
 0xcaa   : > { %3586 = vmatprep.subr.mxu1 %v5571_v33  ;;  %v5625_v33 = vld [vmem:[#allocation2 + $0xf8] sm:$0xff] }
 0xcab   : > { %3587 = vmatpush1.msra.mxu1 %v5572_v50  ;;  %v5627_v50 = vld [vmem:[#allocation2 + $0xe8] sm:$0xff] }
 0xcac   : > { %3588 = vmatprep.subr.mxu1 %v5573_v51  ;;  %v5629_v51 = vld [vmem:[#allocation2 + $0xd8] sm:$0xff] }
 0xcad   : > { %3589 = vmatpush1.msra.mxu1 %v5574_v52  ;;  %v5630_v52 = vld [vmem:[#allocation2 + $0xd0] sm:$0xff] }
 0xcae   : > { %3590 = vmatprep.subr.mxu1 %v5575_v54  ;;  %v5631_v54 = vld [vmem:[#allocation2 + $0xc8] sm:$0xff] }
 0xcaf   : > { %3591 = vmatpush1.msra.mxu1 %v5576_v57  ;;  %v5632_v57 = vld [vmem:[#allocation2 + $0xc0] sm:$0xff] }
 0xcb0   : > { %3592 = vmatprep.subr.mxu1 %v5577_v58  ;;  %v5633_v58 = vld [vmem:[#allocation2 + $0xb8] sm:$0xff] }
 0xcb1   : > { %3593 = vmatpush1.msra.mxu1 %v5578_v59  ;;  %v5634_v59 = vld [vmem:[#allocation2 + $0xb0] sm:$0xff] }
 0xcb2   : > { %3594 = vmatprep.subr.mxu1 %v5579_v32  ;;  %v5635_v32 = vld [vmem:[#allocation2 + $0xa8] sm:$0xff] }
 0xcb3   : > { %3595 = vmatpush1.msra.mxu1 %v5580_v34  ;;  %v5636_v34 = vld [vmem:[#allocation2 + $0xa0] sm:$0xff] }
 0xcb4   : > { %3596 = vmatprep.subr.mxu1 %v5581_v60  ;;  %v5637_v60 = vld [vmem:[#allocation2 + $0x98] sm:$0xff] }
 0xcb5   : > { %3597 = vmatpush1.msra.mxu1 %v5582_v62  ;;  %v5638_v62 = vld [vmem:[#allocation2 + $0x90] sm:$0xff] }
 0xcb6   : > { %3598 = vmatprep.subr.mxu1 %v5583_v3  ;;  %v5639_v3 = vld [vmem:[#allocation2 + $0x88] sm:$0xff] }
 0xcb7   : > { %3599 = vmatpush1.msra.mxu1 %v5584_v5  ;;  %v5640_v5 = vld [vmem:[#allocation2 + $0x80] sm:$0xff] }
 0xcb8   : > { %3600 = vmatprep.subr.mxu1 %v5585_v6  ;;  %v5641_v6 = vld [vmem:[#allocation2 + $0x78] sm:$0xff] }
 0xcb9   : > { %3601 = vmatpush1.msra.mxu1 %v5586_v41  ;;  %v5642_v41 = vld [vmem:[#allocation2 + $0x70] sm:$0xff] }
 0xcba   : > { %3602 = vmatprep.subr.mxu1 %v5587_v42  ;;  %v5643_v42 = vld [vmem:[#allocation2 + $0x68] sm:$0xff] }
 0xcbb   : > { %3603 = vmatpush1.msra.mxu1 %v5588_v7  ;;  %v5644_v7 = vld [vmem:[#allocation2 + $0x60] sm:$0xff] }
 0xcbc   : > { %3604 = vmatprep.subr.mxu1 %v5589_v8  ;;  %v5645_v8 = vld [vmem:[#allocation2 + $0x58] sm:$0xff] }
 0xcbd   : > { %3605 = vmatpush1.msra.mxu1 %v5590_v9  ;;  %v5646_v9 = vld [vmem:[#allocation2 + $0x50] sm:$0xff] }
 0xcbe   : > { %3606 = vmatprep.subr.mxu1 %v5591_v10  ;;  %v5647_v10 = vld [vmem:[#allocation2 + $0x48] sm:$0xff] }
 0xcbf   : > { %3607 = vmatpush1.msra.mxu1 %v5592_v53  ;;  %v5648_v53 = vld [vmem:[#allocation2 + $0x40] sm:$0xff] }
 0xcc0   : > { %3608 = vmatprep.subr.mxu1 %v5593_v55  ;;  %v5649_v55 = vld [vmem:[#allocation2 + $0x38] sm:$0xff] }
 0xcc1   : > { %3609 = vmatpush2.msra.mxu1 %v5594_v11  ;;  %v5650_v11 = vld [vmem:[#allocation2 + $0x30] sm:$0xff] }
 0xcc2   : > { %3610 = vmatprep.subr.mxu1 %v5595_v12  ;;  %v5651_v12 = vld [vmem:[#allocation2 + $0x28] sm:$0xff] }
 0xcc3   : > { %3611 = vmatpush2.msra.mxu1 %v5596_v13  ;;  %v5652_v13 = vld [vmem:[#allocation2 + $0x20] sm:$0xff] }
 0xcc4   : > { %3612 = vmatprep.subr.mxu1 %v5597_v16  ;;  %v5653_v16 = vld [vmem:[#allocation2 + $0x18] sm:$0xff] }
 0xcc5   : > { %3613 = vmatpush2.msra.mxu1 %v5598_v17  ;;  %v5654_v17 = vld [vmem:[#allocation2 + $0x10] sm:$0xff] }
 0xcc6   : > { %3614 = vmatprep.subr.mxu1 %v5599_v18  ;;  %v5655_v18 = vld [vmem:[#allocation2 + $0x8] sm:$0xff] }
 0xcc7   : > { %3615 = vmatpush2.msra.mxu1 %v5600_v20  ;;  %v5656_v20 = vld [vmem:[#allocation2] sm:$0xff] }
 0xcc8   : > { %3616 = vmatprep.subr.mxu1 %v5601_v43  ;;  %v5657_v43 = vld [vmem:[#allocation2 + $0x1f8] sm:$0xff] }
 0xcc9   : > { %3617 = vmatpush2.msra.mxu1 %v5602_v63  ;;  %v5658_v63 = vld [vmem:[#allocation2 + $0x1f0] sm:$0xff] }
 0xcca   : > { %3618 = vmatprep.subr.mxu1 %v5603_v22  ;;  %v5659_v22 = vld [vmem:[#allocation2 + $0x1e8] sm:$0xff] }
 0xccb   : > { %3619 = vmatpush2.msra.mxu1 %v5604_v1  ;;  %v5660_v1 = vld [vmem:[#allocation2 + $0x1e0] sm:$0xff] }
 0xccc   : > { %3620 = vmatprep.subr.mxu1 %v5605_v4  ;;  %v5661_v4 = vld [vmem:[#allocation2 + $0x1d8] sm:$0xff] }
 0xccd   : > { %3621 = vmatpush2.msra.mxu1 %v5606_v25  ;;  %v5662_v25 = vld [vmem:[#allocation2 + $0x1d0] sm:$0xff] }
 0xcce   : > { %3622 = vmatprep.subr.mxu1 %v5607_v26  ;;  %v5663_v26 = vld [vmem:[#allocation2 + $0x1c8] sm:$0xff] }
 0xccf   : > { %3623 = vmatpush2.msra.mxu1 %v5608_v61  ;;  %v5664_v61 = vld [vmem:[#allocation2 + $0x1c0] sm:$0xff] }
 0xcd0   : > { %3624 = vmatprep.subr.mxu1 %v5609_v0  ;;  %v5665_v0 = vld [vmem:[#allocation2 + $0x1b8] sm:$0xff] }
 0xcd1   : > { %3625 = vmatpush2.msra.mxu1 %v5610_v27  ;;  %v5666_v27 = vld [vmem:[#allocation2 + $0x1b0] sm:$0xff] }
 0xcd2   : > { %3626 = vmatprep.subr.mxu1 %v5611_v28  ;;  %v5667_v28 = vld [vmem:[#allocation2 + $0x1a8] sm:$0xff] }
 0xcd3   : > { %3627 = vmatpush2.msra.mxu1 %v5612_v29  ;;  %v5668_v29 = vld [vmem:[#allocation2 + $0x1a0] sm:$0xff] }
 0xcd4   : > { %3628 = vmatprep.subr.mxu1 %v5613_v30  ;;  %v5669_v30 = vld [vmem:[#allocation2 + $0x198] sm:$0xff] }
 0xcd5   : > { %3629 = vmatpush2.msra.mxu1 %v5614_v21  ;;  %v5670_v21 = vld [vmem:[#allocation2 + $0x190] sm:$0xff] }
 0xcd6   : > { %3630 = vmatprep.subr.mxu1 %v5615_v36  ;;  %v5671_v36 = vld [vmem:[#allocation2 + $0x188] sm:$0xff] }
 0xcd7   : > { %3631 = vmatpush2.msra.mxu1 %v5616_v37  ;;  %v5672_v37 = vld [vmem:[#allocation2 + $0x180] sm:$0xff] }
 0xcd8   : > { %3632 = vmatprep.subr.mxu1 %v5617_v14  ;;  %v5673_v14 = vld [vmem:[#allocation2 + $0x178] sm:$0xff] }
 0xcd9   : > { %3633 = vmatpush2.msra.mxu1 %v5618_v15  ;;  %v5674_v15 = vld [vmem:[#allocation2 + $0x170] sm:$0xff] }
 0xcda   : > { %3634 = vmatprep.subr.mxu1 %v5619_v23  ;;  %v5675_v23 = vld [vmem:[#allocation2 + $0x168] sm:$0xff] }
 0xcdb   : > { %3635 = vmatpush2.msra.mxu1 %v5620_v24  ;;  %v5676_v24 = vld [vmem:[#allocation2 + $0x160] sm:$0xff] }
 0xcdc   : > { %3636 = vmatprep.subr.mxu1 %v5621_v38  ;;  %v5677_v38 = vld [vmem:[#allocation2 + $0x158] sm:$0xff] }
 0xcdd   : > { %3637 = vmatpush2.msra.mxu1 %v5622_v39  ;;  %v5678_v39 = vld [vmem:[#allocation2 + $0x150] sm:$0xff] }
 0xcde   : > { %3638 = vmatprep.subr.mxu1 %v5623_v40  ;;  %v5679_v40 = vld [vmem:[#allocation2 + $0x148] sm:$0xff] }
 0xcdf   : > { %3639 = vmatpush2.msra.mxu1 %v5624_v56  ;;  %v5680_v56 = vld [vmem:[#allocation2 + $0x140] sm:$0xff] }
 0xd20   : > { %v3332_v44 = vpop.f32.mrf.mxu1 }
 0xd21   : > { %v6430_v45 = vadd.f32 %v3332_v44, %v6416_v19  ;;  %v5626_v19 = vld [vmem:[#allocation2 + $0xf0] sm:$0xff]  ;;  %v5681_v44 = vld [vmem:[#allocation2 + $0x138] sm:$0xff] }
 0xd22   : > { %v3334_v46 = vpop.f32.mrf.mxu1 }
 0xd23   : > { %v6433_v47 = vadd.f32 %v3334_v46, %v6419_v35  ;;  %v5628_v35 = vld [vmem:[#allocation2 + $0xe0] sm:$0xff]  ;;  %v5682_v46 = vld [vmem:[#allocation2 + $0x130] sm:$0xff] }
 0xd60   : > { %v3405_v48 = vpop.f32.mrf.mxu1 }
 0xd62   : > { %v3407_v31 = vpop.f32.mrf.mxu1 }
 0xd63   : > { %4980 = vmatprep.subr.msk.mxu0 %vm2322_vm2, %v3407_v31  ;;  %v5684_v31 = vld [vmem:[#allocation2 + $0x120] sm:$0xff] }
 0xd64   : > { %4981 = vmatpush1.msk.msra.mxu0 %vm2322_vm2, %v3405_v48  ;;  %v5683_v48 = vld [vmem:[#allocation2 + $0x128] sm:$0xff] }
 0xd65   : > { %4982 = vmatmul.mubr.msk.f32.vlgmr.msra.gmra.mxu0 %vm2318_vm3, %v4979_v49  ;;  %3504 = vmatprep.subr.mxu0 %v5625_v33  ;;  %v5685_v49 = vld [vmem:[#allocation2 + $0x118] sm:$0xff]  ;;  %v5686_v33 = vld [vmem:[#allocation2 + $0x110] sm:$0xff] }
 0xd66   : > { %3505 = vmatpush1.msra.mxu0 %v5626_v19  ;;  %v5687_v19 = vld [vmem:[#allocation2 + $0x108] sm:$0xff] }
 0xd67   : > { %3506 = vmatprep.subr.mxu0 %v5627_v50  ;;  %v5688_v50 = vld [vmem:[#allocation2 + $0x100] sm:$0xff] }
 0xd68   : > { %3507 = vmatpush1.msra.mxu0 %v5628_v35 }
 0xd69   : > { %3508 = vmatprep.subr.mxu0 %v5629_v51 }
 0xd6a   : > { %3509 = vmatpush1.msra.mxu0 %v5630_v52 }
 0xd6b   : > { %3510 = vmatprep.subr.mxu0 %v5631_v54  ;;  %v3498_v54 = vpop.permute.xlu0 %3497 }
 0xd6c   : > { %3511 = vmatpush1.msra.mxu0 %v5632_v57 }
 0xd6d   : > { %3512 = vmatprep.subr.mxu0 %v5633_v58 }
 0xd6e   : > { %3513 = vmatpush1.msra.mxu0 %v5634_v59 }
 0xd6f   : > { %3514 = vmatprep.subr.mxu0 %v5635_v32 }
 0xd70   : > { %3515 = vmatpush1.msra.mxu0 %v5636_v34 }
 0xd71   : > { %3516 = vmatprep.subr.mxu0 %v5637_v60 }
 0xd72   : > { %3517 = vmatpush1.msra.mxu0 %v5638_v62 }
 0xd73   : > { %3518 = vmatprep.subr.mxu0 %v5639_v3  ;;  %v4983_v3 = vld [vmem:[%s6568_s6 + $0x8] sm:$0x3f] }
 0xd74   : > { %3519 = vmatpush1.msra.mxu0 %v5640_v5  ;;  %v3575_v5 = vld [vmem:[%s6568_s6] sm:$0x3f] }
 0xd75   : > { %3520 = vmatprep.subr.mxu0 %v5641_v6  ;;  %v5689_v6 = vld [vmem:[#allocation2 + $0x4f8] sm:$0xff] }
 0xd76   : > { %3521 = vmatpush1.msra.mxu0 %v5642_v41  ;;  %v5690_v41 = vld [vmem:[#allocation2 + $0x4f0] sm:$0xff] }
 0xd77   : > { %3522 = vmatprep.subr.mxu0 %v5643_v42  ;;  %v5691_v42 = vld [vmem:[#allocation2 + $0x4e8] sm:$0xff] }
 0xd78   : > { %3523 = vmatpush1.msra.mxu0 %v5644_v7  ;;  %v5692_v7 = vld [vmem:[#allocation2 + $0x4e0] sm:$0xff] }
 0xd79   : > { %3524 = vmatprep.subr.mxu0 %v5645_v8  ;;  %v5693_v8 = vld [vmem:[#allocation2 + $0x4d8] sm:$0xff] }
 0xd7a   : > { %3525 = vmatpush1.msra.mxu0 %v5646_v9  ;;  %v5694_v9 = vld [vmem:[#allocation2 + $0x4d0] sm:$0xff] }
 0xd7b   : > { %3526 = vmatprep.subr.mxu0 %v5647_v10  ;;  %v5695_v10 = vld [vmem:[#allocation2 + $0x4c8] sm:$0xff] }
 0xd7c   : > { %3527 = vmatpush1.msra.mxu0 %v5648_v53  ;;  %v5696_v53 = vld [vmem:[#allocation2 + $0x4c0] sm:$0xff] }
 0xd7d   : > { %3528 = vmatprep.subr.mxu0 %v5649_v55  ;;  %v5697_v55 = vld [vmem:[#allocation2 + $0x4b8] sm:$0xff] }
 0xd7e   : > { %3529 = vmatpush1.msra.mxu0 %v5650_v11  ;;  %v5698_v11 = vld [vmem:[#allocation2 + $0x4b0] sm:$0xff] }
 0xd7f   : > { %3530 = vmatprep.subr.mxu0 %v5651_v12  ;;  %v5699_v12 = vld [vmem:[#allocation2 + $0x4a8] sm:$0xff] }
 0xd80   : > { %3531 = vmatpush1.msra.mxu0 %v5652_v13  ;;  %v5700_v13 = vld [vmem:[#allocation2 + $0x4a0] sm:$0xff] }
 0xd81   : > { %3532 = vmatprep.subr.mxu0 %v5653_v16  ;;  %v5701_v16 = vld [vmem:[#allocation2 + $0x498] sm:$0xff] }
 0xd82   : > { %3533 = vmatpush1.msra.mxu0 %v5654_v17  ;;  %v5702_v17 = vld [vmem:[#allocation2 + $0x490] sm:$0xff] }
 0xd83   : > { %3534 = vmatprep.subr.mxu0 %v5655_v18  ;;  %v5703_v18 = vld [vmem:[#allocation2 + $0x488] sm:$0xff] }
 0xd84   : > { %3535 = vmatpush1.msra.mxu0 %v5656_v20  ;;  %v5704_v20 = vld [vmem:[#allocation2 + $0x480] sm:$0xff] }
 0xd85   : > { %3536 = vmatprep.subr.mxu0 %v5657_v43  ;;  %v5705_v43 = vld [vmem:[#allocation2 + $0x478] sm:$0xff] }
 0xd86   : > { %3537 = vmatpush2.msra.mxu0 %v5658_v63  ;;  %v5706_v63 = vld [vmem:[#allocation2 + $0x470] sm:$0xff] }
 0xd87   : > { %3538 = vmatprep.subr.mxu0 %v5659_v22  ;;  %v5707_v22 = vld [vmem:[#allocation2 + $0x468] sm:$0xff] }
 0xd88   : > { %3539 = vmatpush2.msra.mxu0 %v5660_v1  ;;  %v5708_v1 = vld [vmem:[#allocation2 + $0x460] sm:$0xff] }
 0xd89   : > { %3540 = vmatprep.subr.mxu0 %v5661_v4  ;;  %v5709_v4 = vld [vmem:[#allocation2 + $0x458] sm:$0xff] }
 0xd8a   : > { %3541 = vmatpush2.msra.mxu0 %v5662_v25  ;;  %v5710_v25 = vld [vmem:[#allocation2 + $0x450] sm:$0xff] }
 0xd8b   : > { %3542 = vmatprep.subr.mxu0 %v5663_v26  ;;  %v5711_v26 = vld [vmem:[#allocation2 + $0x448] sm:$0xff] }
 0xd8c   : > { %3543 = vmatpush2.msra.mxu0 %v5664_v61  ;;  %v5712_v61 = vld [vmem:[#allocation2 + $0x440] sm:$0xff] }
 0xd8d   : > { %3544 = vmatprep.subr.mxu0 %v5665_v0  ;;  %v5713_v0 = vld [vmem:[#allocation2 + $0x438] sm:$0xff] }
 0xd8e   : > { %3545 = vmatpush2.msra.mxu0 %v5666_v27  ;;  %v5714_v27 = vld [vmem:[#allocation2 + $0x430] sm:$0xff] }
 0xd8f   : > { %3546 = vmatprep.subr.mxu0 %v5667_v28  ;;  %v5715_v28 = vld [vmem:[#allocation2 + $0x428] sm:$0xff] }
 0xd90   : > { %3547 = vmatpush2.msra.mxu0 %v5668_v29  ;;  %v5716_v29 = vld [vmem:[#allocation2 + $0x420] sm:$0xff] }
 0xd91   : > { %3548 = vmatprep.subr.mxu0 %v5669_v30  ;;  %v5717_v30 = vld [vmem:[#allocation2 + $0x418] sm:$0xff] }
 0xd92   : > { %3549 = vmatpush2.msra.mxu0 %v5670_v21  ;;  %v5718_v21 = vld [vmem:[#allocation2 + $0x410] sm:$0xff] }
 0xd93   : > { %3550 = vmatprep.subr.mxu0 %v5671_v36  ;;  %v5719_v36 = vld [vmem:[#allocation2 + $0x408] sm:$0xff] }
 0xd94   : > { %3551 = vmatpush2.msra.mxu0 %v5672_v37  ;;  %v5720_v37 = vld [vmem:[#allocation2 + $0x400] sm:$0xff] }
 0xd95   : > { %3552 = vmatprep.subr.mxu0 %v5673_v14  ;;  %v5721_v14 = vld [vmem:[#allocation2 + $0x5f8] sm:$0xff] }
 0xd96   : > { %3553 = vmatpush2.msra.mxu0 %v5674_v15  ;;  %v5722_v15 = vld [vmem:[#allocation2 + $0x5f0] sm:$0xff] }
 0xd97   : > { %3554 = vmatprep.subr.mxu0 %v5675_v23  ;;  %v5723_v23 = vld [vmem:[#allocation2 + $0x5e8] sm:$0xff] }
 0xd98   : > { %3555 = vmatpush2.msra.mxu0 %v5676_v24  ;;  %v5724_v24 = vld [vmem:[#allocation2 + $0x5e0] sm:$0xff] }
 0xd99   : > { %3556 = vmatprep.subr.mxu0 %v5677_v38  ;;  %v5725_v38 = vld [vmem:[#allocation2 + $0x5d8] sm:$0xff] }
 0xd9a   : > { %3557 = vmatpush2.msra.mxu0 %v5678_v39  ;;  %v5726_v39 = vld [vmem:[#allocation2 + $0x5d0] sm:$0xff] }
 0xd9b   : > { %3558 = vmatprep.subr.mxu0 %v5679_v40  ;;  %v5727_v40 = vld [vmem:[#allocation2 + $0x5c8] sm:$0xff] }
 0xd9c   : > { %3559 = vmatpush2.msra.mxu0 %v5680_v56  ;;  %v5728_v56 = vld [vmem:[#allocation2 + $0x5c0] sm:$0xff] }
 0xd9d   : > { %3560 = vmatprep.subr.mxu0 %v5681_v44  ;;  %v5729_v44 = vld [vmem:[#allocation2 + $0x5b8] sm:$0xff] }
 0xd9e   : > { %3561 = vmatpush2.msra.mxu0 %v5682_v46  ;;  %v5730_v46 = vld [vmem:[#allocation2 + $0x5b0] sm:$0xff] }
 0xd9f   : > { %3562 = vmatprep.subr.mxu0 %v5683_v48  ;;  %v5731_v48 = vld [vmem:[#allocation2 + $0x5a8] sm:$0xff] }
 0xda0   : > { %3563 = vmatpush2.msra.mxu0 %v5684_v31  ;;  %v5732_v31 = vld [vmem:[#allocation2 + $0x5a0] sm:$0xff] }
 0xda1   : > { %3564 = vmatprep.subr.mxu0 %v5685_v49  ;;  %v5733_v49 = vld [vmem:[#allocation2 + $0x598] sm:$0xff] }
 0xda2   : > { %3565 = vmatpush2.msra.mxu0 %v5686_v33  ;;  %v5734_v33 = vld [vmem:[#allocation2 + $0x590] sm:$0xff] }
 0xda3   : > { %3566 = vmatprep.subr.mxu0 %v5687_v19  ;;  %v5735_v19 = vld [vmem:[#allocation2 + $0x588] sm:$0xff] }
 0xda4   : > { %3567 = vmatpush2.msra.mxu0 %v5688_v50  ;;  %v5736_v50 = vld [vmem:[#allocation2 + $0x580] sm:$0xff] }
 0xe25   : > { %v3487_v35 = vpop.f32.mrf.mxu0 }
 0xe26   : > { %v3492_v51 = vadd.f32 %v3487_v35, %v6430_v45  ;;  %v5737_v35 = vld [vmem:[#allocation2 + $0x578] sm:$0xff] }
 0xe27   : > { %v3489_v52 = vpop.f32.mrf.mxu0 }
 0xe28   : > { %v3493_v57 = vadd.f32 %v3489_v52, %v6433_v47  ;;  %v3500_v58 = vadd.f32 %v3498_v54, %v3492_v51  ;;  %v5738_v51 = vld [vmem:[#allocation2 + $0x570] sm:$0xff]  ;;  %v5739_v52 = vld [vmem:[#allocation2 + $0x568] sm:$0xff] }
 0xe2a   : > { %v3501_v59 = vadd.f32 %v3498_v54, %v3493_v57  ;;  %v6445_v34 = vmax.f32 %v3500_v58, 0.0  ;;  %v5740_v54 = vld [vmem:[#allocation2 + $0x560] sm:$0xff]  ;;  %v5741_v57 = vld [vmem:[#allocation2 + $0x558] sm:$0xff]  ;;  %v5742_v58 = vld [vmem:[#allocation2 + $0x550] sm:$0xff] }
 0xe2c   : > { %v6443_v32 = vmax.f32 %v3501_v59, 0.0  ;;  %v5743_v59 = vld [vmem:[#allocation2 + $0x548] sm:$0xff] }
 0xe2e   : > { %3568 = vmatprep.mubr.f32.mxu0 %v6443_v32  ;;  %3640 = vmatprep.mubr.f32.mxu1 %v6443_v32 }
 0xe2f   : > { %3569 = vmatmul.mubr.f32.vlgmr.msra.gmra.mxu0 %v6445_v34  ;;  %3641 = vmatmul.mubr.f32.vlgmr.msra.gmra.mxu1 %v6445_v34 }
 0xe30   : > { %3722 = vmatprep.mubr.f32.mxu0 %v6114_v2  ;;  %3802 = vmatprep.mubr.f32.mxu1 %v6114_v2 }
 0xeef   : > { %v3570_v45 = vpop.f32.mrf.mxu0  ;;  %v3642_v47 = vpop.f32.mrf.mxu1 }
 0xef1   : > { %v3572_v60 = vpop.f32.mrf.mxu0  ;;  %v3644_v62 = vpop.f32.mrf.mxu1 }
 0xef2   : > { %4984 = vmatprep.subr.msk.mxu0 %vm2322_vm2, %v3644_v62  ;;  %4987 = vmatprep.subr.msk.mxu1 %vm2322_vm2, %v3572_v60  ;;  %v5746_v60 = vld [vmem:[#allocation2 + $0x530] sm:$0xff]  ;;  %v5747_v62 = vld [vmem:[#allocation2 + $0x528] sm:$0xff] }
 0xef3   : > { %4985 = vmatpush1.msk.msra.mxu0 %vm2322_vm2, %v3642_v47  ;;  %4988 = vmatpush1.msk.msra.mxu1 %vm2322_vm2, %v3570_v45  ;;  %v5744_v45 = vld [vmem:[#allocation2 + $0x540] sm:$0xff]  ;;  %v5745_v47 = vld [vmem:[#allocation2 + $0x538] sm:$0xff] }
 0xef4   : > { %4986 = vmatmul.mubr.msk.f32.vlgmr.msra.gmra.mxu0 %vm2318_vm3, %v4983_v3  ;;  %4989 = vmatmul.mubr.msk.f32.vlgmr.msra.gmra.mxu1 %vm2318_vm3, %v3575_v5  ;;  %v5748_v3 = vld [vmem:[#allocation2 + $0x520] sm:$0xff]  ;;  %v5749_v5 = vld [vmem:[#allocation2 + $0x518] sm:$0xff] }
 0xef5   : > { %3809 = vmatprep.subr.mxu0 %v5689_v6  ;;  %3873 = vmatprep.mubr.f32.mxu0 %v6443_v32  ;;  %v5750_v6 = vld [vmem:[#allocation2 + $0x510] sm:$0xff] }
 0xef6   : > { %3810 = vmatpush1.msra.mxu0 %v5690_v41  ;;  %3955 = vmatprep.mubr.f32.mxu1 %v6114_v2  ;;  %v5751_v41 = vld [vmem:[#allocation2 + $0x508] sm:$0xff] }
 0xef7   : > { %3811 = vmatprep.subr.mxu0 %v5691_v42  ;;  %v5752_v42 = vld [vmem:[#allocation2 + $0x500] sm:$0xff] }
 0xef8   : > { %3812 = vmatpush1.msra.mxu0 %v5692_v7 }
 0xef9   : > { %3813 = vmatprep.subr.mxu0 %v5693_v8 }
 0xefa   : > { %3814 = vmatpush1.msra.mxu0 %v5694_v9 }
 0xefb   : > { %3815 = vmatprep.subr.mxu0 %v5695_v10 }
 0xefc   : > { %3816 = vmatpush1.msra.mxu0 %v5696_v53 }
 0xefd   : > { %3817 = vmatprep.subr.mxu0 %v5697_v55 }
 0xefe   : > { %3818 = vmatpush1.msra.mxu0 %v5698_v11  ;;  %v4990_v11 = vld [vmem:[%s6568_s6 + $0x10] sm:$0x3f] }
 0xeff   : > { %3819 = vmatprep.subr.mxu0 %v5699_v12  ;;  %v5753_v12 = vld [vmem:[#allocation2 + $0x6f8] sm:$0xff] }
 0xf00   : > { %3820 = vmatpush1.msra.mxu0 %v5700_v13  ;;  %v5754_v13 = vld [vmem:[#allocation2 + $0x6f0] sm:$0xff] }
 0xf01   : > { %3821 = vmatprep.subr.mxu0 %v5701_v16  ;;  %v5755_v16 = vld [vmem:[#allocation2 + $0x6e8] sm:$0xff] }
 0xf02   : > { %3822 = vmatpush1.msra.mxu0 %v5702_v17  ;;  %v5756_v17 = vld [vmem:[#allocation2 + $0x6e0] sm:$0xff] }
 0xf03   : > { %3823 = vmatprep.subr.mxu0 %v5703_v18  ;;  %v5757_v18 = vld [vmem:[#allocation2 + $0x6d8] sm:$0xff] }
 0xf04   : > { %3824 = vmatpush1.msra.mxu0 %v5704_v20  ;;  %v5758_v20 = vld [vmem:[#allocation2 + $0x6d0] sm:$0xff] }
 0xf05   : > { %3825 = vmatprep.subr.mxu0 %v5705_v43  ;;  %v5759_v43 = vld [vmem:[#allocation2 + $0x6c8] sm:$0xff] }
 0xf06   : > { %3826 = vmatpush1.msra.mxu0 %v5706_v63  ;;  %v5760_v63 = vld [vmem:[#allocation2 + $0x6c0] sm:$0xff] }
 0xf07   : > { %3827 = vmatprep.subr.mxu0 %v5707_v22  ;;  %v5761_v22 = vld [vmem:[#allocation2 + $0x6b8] sm:$0xff] }
 0xf08   : > { %3828 = vmatpush1.msra.mxu0 %v5708_v1  ;;  %v5762_v1 = vld [vmem:[#allocation2 + $0x6b0] sm:$0xff] }
 0xf09   : > { %3829 = vmatprep.subr.mxu0 %v5709_v4  ;;  %v5763_v4 = vld [vmem:[#allocation2 + $0x6a8] sm:$0xff] }
 0xf0a   : > { %3830 = vmatpush1.msra.mxu0 %v5710_v25  ;;  %v5764_v25 = vld [vmem:[#allocation2 + $0x6a0] sm:$0xff] }
 0xf0b   : > { %3831 = vmatprep.subr.mxu0 %v5711_v26  ;;  %v5765_v26 = vld [vmem:[#allocation2 + $0x698] sm:$0xff] }
 0xf0c   : > { %3832 = vmatpush1.msra.mxu0 %v5712_v61  ;;  %v5766_v61 = vld [vmem:[#allocation2 + $0x690] sm:$0xff] }
 0xf0d   : > { %3833 = vmatprep.subr.mxu0 %v5713_v0  ;;  %v5767_v0 = vld [vmem:[#allocation2 + $0x688] sm:$0xff] }
 0xf0e   : > { %3834 = vmatpush1.msra.mxu0 %v5714_v27  ;;  %v5768_v27 = vld [vmem:[#allocation2 + $0x680] sm:$0xff] }
 0xf0f   : > { %3835 = vmatprep.subr.mxu0 %v5715_v28  ;;  %v5769_v28 = vld [vmem:[#allocation2 + $0x678] sm:$0xff] }
 0xf10   : > { %3836 = vmatpush1.msra.mxu0 %v5716_v29  ;;  %v5770_v29 = vld [vmem:[#allocation2 + $0x670] sm:$0xff] }
 0xf11   : > { %3837 = vmatprep.subr.mxu0 %v5717_v30  ;;  %v5771_v30 = vld [vmem:[#allocation2 + $0x668] sm:$0xff] }
 0xf12   : > { %3838 = vmatpush1.msra.mxu0 %v5718_v21  ;;  %v5772_v21 = vld [vmem:[#allocation2 + $0x660] sm:$0xff] }
 0xf13   : > { %3839 = vmatprep.subr.mxu0 %v5719_v36  ;;  %v5773_v36 = vld [vmem:[#allocation2 + $0x658] sm:$0xff] }
 0xf14   : > { %3840 = vmatpush1.msra.mxu0 %v5720_v37  ;;  %v5774_v37 = vld [vmem:[#allocation2 + $0x650] sm:$0xff] }
 0xf15   : > { %3841 = vmatprep.subr.mxu0 %v5721_v14  ;;  %v5775_v14 = vld [vmem:[#allocation2 + $0x648] sm:$0xff] }
 0xf16   : > { %3842 = vmatpush2.msra.mxu0 %v5722_v15  ;;  %v5776_v15 = vld [vmem:[#allocation2 + $0x640] sm:$0xff] }
 0xf17   : > { %3843 = vmatprep.subr.mxu0 %v5723_v23  ;;  %v5777_v23 = vld [vmem:[#allocation2 + $0x638] sm:$0xff] }
 0xf18   : > { %3844 = vmatpush2.msra.mxu0 %v5724_v24  ;;  %v5778_v24 = vld [vmem:[#allocation2 + $0x630] sm:$0xff] }
 0xf19   : > { %3845 = vmatprep.subr.mxu0 %v5725_v38  ;;  %v5779_v38 = vld [vmem:[#allocation2 + $0x628] sm:$0xff] }
 0xf1a   : > { %3846 = vmatpush2.msra.mxu0 %v5726_v39  ;;  %v5780_v39 = vld [vmem:[#allocation2 + $0x620] sm:$0xff] }
 0xf1b   : > { %3847 = vmatprep.subr.mxu0 %v5727_v40  ;;  %v5781_v40 = vld [vmem:[#allocation2 + $0x618] sm:$0xff] }
 0xf1c   : > { %3848 = vmatpush2.msra.mxu0 %v5728_v56  ;;  %v5782_v56 = vld [vmem:[#allocation2 + $0x610] sm:$0xff] }
 0xf1d   : > { %3849 = vmatprep.subr.mxu0 %v5729_v44  ;;  %v5783_v44 = vld [vmem:[#allocation2 + $0x608] sm:$0xff] }
 0xf1e   : > { %3850 = vmatpush2.msra.mxu0 %v5730_v46  ;;  %v5784_v46 = vld [vmem:[#allocation2 + $0x600] sm:$0xff] }
 0xf1f   : > { %3851 = vmatprep.subr.mxu0 %v5731_v48  ;;  %v5785_v48 = vld [vmem:[#allocation2 + $0x7f8] sm:$0xff] }
 0xf20   : > { %3852 = vmatpush2.msra.mxu0 %v5732_v31  ;;  %v5786_v31 = vld [vmem:[#allocation2 + $0x7f0] sm:$0xff] }
 0xf21   : > { %3853 = vmatprep.subr.mxu0 %v5733_v49  ;;  %v5787_v49 = vld [vmem:[#allocation2 + $0x7e8] sm:$0xff] }
 0xf22   : > { %3854 = vmatpush2.msra.mxu0 %v5734_v33  ;;  %v5788_v33 = vld [vmem:[#allocation2 + $0x7e0] sm:$0xff] }
 0xf23   : > { %3855 = vmatprep.subr.mxu0 %v5735_v19  ;;  %v5789_v19 = vld [vmem:[#allocation2 + $0x7d8] sm:$0xff] }
 0xf24   : > { %3856 = vmatpush2.msra.mxu0 %v5736_v50  ;;  %v5790_v50 = vld [vmem:[#allocation2 + $0x7d0] sm:$0xff] }
 0xf25   : > { %3857 = vmatprep.subr.mxu0 %v5737_v35  ;;  %v5791_v35 = vld [vmem:[#allocation2 + $0x7c8] sm:$0xff] }
 0xf26   : > { %3858 = vmatpush2.msra.mxu0 %v5738_v51  ;;  %v5792_v51 = vld [vmem:[#allocation2 + $0x7c0] sm:$0xff] }
 0xf27   : > { %3859 = vmatprep.subr.mxu0 %v5739_v52  ;;  %v5793_v52 = vld [vmem:[#allocation2 + $0x7b8] sm:$0xff] }
 0xf28   : > { %3860 = vmatpush2.msra.mxu0 %v5740_v54  ;;  %v5794_v54 = vld [vmem:[#allocation2 + $0x7b0] sm:$0xff] }
 0xf29   : > { %3861 = vmatprep.subr.mxu0 %v5741_v57  ;;  %v5795_v57 = vld [vmem:[#allocation2 + $0x7a8] sm:$0xff] }
 0xf2a   : > { %3862 = vmatpush2.msra.mxu0 %v5742_v58  ;;  %v5796_v58 = vld [vmem:[#allocation2 + $0x7a0] sm:$0xff] }
 0xf2b   : > { %3863 = vmatprep.subr.mxu0 %v5743_v59  ;;  %v5797_v59 = vld [vmem:[#allocation2 + $0x798] sm:$0xff] }
 0xf2c   : > { %3864 = vmatpush2.msra.mxu0 %v5744_v45  ;;  %v5798_v45 = vld [vmem:[#allocation2 + $0x790] sm:$0xff] }
 0xf2d   : > { %3865 = vmatprep.subr.mxu0 %v5745_v47  ;;  %v5799_v47 = vld [vmem:[#allocation2 + $0x788] sm:$0xff] }
 0xf2e   : > { %3866 = vmatpush2.msra.mxu0 %v5746_v60  ;;  %v5800_v60 = vld [vmem:[#allocation2 + $0x780] sm:$0xff] }
 0xf2f   : > { %3867 = vmatprep.subr.mxu0 %v5747_v62  ;;  %v5801_v62 = vld [vmem:[#allocation2 + $0x778] sm:$0xff] }
 0xf30   : > { %3868 = vmatpush2.msra.mxu0 %v5748_v3  ;;  %v5802_v3 = vld [vmem:[#allocation2 + $0x770] sm:$0xff] }
 0xf31   : > { %3869 = vmatprep.subr.mxu0 %v5749_v5  ;;  %v5803_v5 = vld [vmem:[#allocation2 + $0x768] sm:$0xff] }
 0xf32   : > { %3870 = vmatpush2.msra.mxu0 %v5750_v6  ;;  %v5804_v6 = vld [vmem:[#allocation2 + $0x760] sm:$0xff] }
 0xf33   : > { %3871 = vmatprep.subr.mxu0 %v5751_v41  ;;  %v5805_v41 = vld [vmem:[#allocation2 + $0x758] sm:$0xff] }
 0xf34   : > { %3872 = vmatpush2.msra.mxu0 %v5752_v42  ;;  %v5806_v42 = vld [vmem:[#allocation2 + $0x750] sm:$0xff] }
 0xf35   : > { %3874 = vmatmul.mubr.f32.vlgmr.msra.gmra.mxu0 %v6445_v34 }
 0xf36   : > { %4110 = vmatprep.mubr.f32.mxu0 %v6114_v2 }
 0xfb4   : > { %v3724_v7 = vpop.f32.mrf.mxu0  ;;  %v3804_v8 = vpop.f32.mrf.mxu1 }
 0xfb5   : > { %v6469_v9 = vadd.f32 %v3804_v8, %v3724_v7  ;;  %v5807_v7 = vld [vmem:[#allocation2 + $0x748] sm:$0xff]  ;;  %v5808_v8 = vld [vmem:[#allocation2 + $0x740] sm:$0xff] }
 0xfb6   : > { %v6471_v10 = vpop.f32.mrf.mxu0 }
 0xff5   : > { %v3875_v53 = vpop.f32.mrf.mxu0 }
 0xff7   : > { %v3877_v55 = vpop.f32.mrf.mxu0 }
 0xff8   : > { %4991 = vmatprep.subr.msk.mxu1 %vm2322_vm2, %v3877_v55  ;;  %v5810_v55 = vld [vmem:[#allocation2 + $0x730] sm:$0xff] }
 0xff9   : > { %4992 = vmatpush1.msk.msra.mxu1 %vm2322_vm2, %v3875_v53  ;;  %v5809_v53 = vld [vmem:[#allocation2 + $0x738] sm:$0xff] }
 0xffa   : > { %4993 = vmatmul.mubr.msk.f32.vlgmr.msra.gmra.mxu1 %vm2318_vm3, %v4990_v11  ;;  %3964 = vmatprep.subr.mxu1 %v5753_v12  ;;  %v5811_v11 = vld [vmem:[#allocation2 + $0x728] sm:$0xff]  ;;  %v5812_v12 = vld [vmem:[#allocation2 + $0x720] sm:$0xff] }
 0xffb   : > { %3965 = vmatpush1.msra.mxu1 %v5754_v13  ;;  %4028 = vmatprep.mubr.f32.mxu1 %v6443_v32  ;;  %v5813_v13 = vld [vmem:[#allocation2 + $0x718] sm:$0xff] }
 0xffc   : > { %3966 = vmatprep.subr.mxu1 %v5755_v16  ;;  %v5814_v16 = vld [vmem:[#allocation2 + $0x710] sm:$0xff] }
 0xffd   : > { %3967 = vmatpush1.msra.mxu1 %v5756_v17  ;;  %v5815_v17 = vld [vmem:[#allocation2 + $0x708] sm:$0xff] }
 0xffe   : > { %3968 = vmatprep.subr.mxu1 %v5757_v18  ;;  %v5816_v18 = vld [vmem:[#allocation2 + $0x700] sm:$0xff] }
 0xfff   : > { %3969 = vmatpush1.msra.mxu1 %v5758_v20  ;;  %v5817_v20 = vld [vmem:[#allocation2 + $0xaf8] sm:$0xff] }
0x1000   : > { %3970 = vmatprep.subr.mxu1 %v5759_v43  ;;  %v5818_v43 = vld [vmem:[#allocation2 + $0xaf0] sm:$0xff] }
0x1001   : > { %3971 = vmatpush1.msra.mxu1 %v5760_v63  ;;  %v5819_v63 = vld [vmem:[#allocation2 + $0xae8] sm:$0xff] }
0x1002   : > { %3972 = vmatprep.subr.mxu1 %v5761_v22  ;;  %v5820_v22 = vld [vmem:[#allocation2 + $0xae0] sm:$0xff] }
0x1003   : > { %3973 = vmatpush1.msra.mxu1 %v5762_v1  ;;  %v5821_v1 = vld [vmem:[#allocation2 + $0xad8] sm:$0xff] }
0x1004   : > { %3974 = vmatprep.subr.mxu1 %v5763_v4  ;;  %v5822_v4 = vld [vmem:[#allocation2 + $0xad0] sm:$0xff] }
0x1005   : > { %3975 = vmatpush1.msra.mxu1 %v5764_v25  ;;  %v5823_v25 = vld [vmem:[#allocation2 + $0xac8] sm:$0xff] }
0x1006   : > { %3976 = vmatprep.subr.mxu1 %v5765_v26  ;;  %v5824_v26 = vld [vmem:[#allocation2 + $0xac0] sm:$0xff] }
0x1007   : > { %3977 = vmatpush1.msra.mxu1 %v5766_v61  ;;  %v5825_v61 = vld [vmem:[#allocation2 + $0xab8] sm:$0xff] }
0x1008   : > { %3978 = vmatprep.subr.mxu1 %v5767_v0  ;;  %v5826_v0 = vld [vmem:[#allocation2 + $0xab0] sm:$0xff] }
0x1009   : > { %3979 = vmatpush1.msra.mxu1 %v5768_v27  ;;  %v5827_v27 = vld [vmem:[#allocation2 + $0xaa8] sm:$0xff] }
0x100a   : > { %3980 = vmatprep.subr.mxu1 %v5769_v28  ;;  %v5828_v28 = vld [vmem:[#allocation2 + $0xaa0] sm:$0xff] }
0x100b   : > { %3981 = vmatpush1.msra.mxu1 %v5770_v29  ;;  %v5829_v29 = vld [vmem:[#allocation2 + $0xa98] sm:$0xff] }
0x100c   : > { %3982 = vmatprep.subr.mxu1 %v5771_v30  ;;  %v5830_v30 = vld [vmem:[#allocation2 + $0xa90] sm:$0xff] }
0x100d   : > { %3983 = vmatpush1.msra.mxu1 %v5772_v21  ;;  %v5831_v21 = vld [vmem:[#allocation2 + $0xa88] sm:$0xff] }
0x100e   : > { %3984 = vmatprep.subr.mxu1 %v5773_v36  ;;  %v5832_v36 = vld [vmem:[#allocation2 + $0xa80] sm:$0xff] }
0x100f   : > { %3985 = vmatpush1.msra.mxu1 %v5774_v37  ;;  %v5833_v37 = vld [vmem:[#allocation2 + $0xa78] sm:$0xff] }
0x1010   : > { %3986 = vmatprep.subr.mxu1 %v5775_v14  ;;  %v5834_v14 = vld [vmem:[#allocation2 + $0xa70] sm:$0xff] }
0x1011   : > { %3987 = vmatpush1.msra.mxu1 %v5776_v15  ;;  %v5835_v15 = vld [vmem:[#allocation2 + $0xa68] sm:$0xff] }
0x1012   : > { %3988 = vmatprep.subr.mxu1 %v5777_v23  ;;  %v5836_v23 = vld [vmem:[#allocation2 + $0xa60] sm:$0xff] }
0x1013   : > { %3989 = vmatpush1.msra.mxu1 %v5778_v24  ;;  %v5837_v24 = vld [vmem:[#allocation2 + $0xa58] sm:$0xff] }
0x1014   : > { %3990 = vmatprep.subr.mxu1 %v5779_v38  ;;  %v5838_v38 = vld [vmem:[#allocation2 + $0xa50] sm:$0xff] }
0x1015   : > { %3991 = vmatpush1.msra.mxu1 %v5780_v39  ;;  %v5839_v39 = vld [vmem:[#allocation2 + $0xa48] sm:$0xff] }
0x1016   : > { %3992 = vmatprep.subr.mxu1 %v5781_v40  ;;  %v5840_v40 = vld [vmem:[#allocation2 + $0xa40] sm:$0xff] }
0x1017   : > { %3993 = vmatpush1.msra.mxu1 %v5782_v56  ;;  %v5841_v56 = vld [vmem:[#allocation2 + $0xa38] sm:$0xff] }
0x1018   : > { %3994 = vmatprep.subr.mxu1 %v5783_v44  ;;  %v5842_v44 = vld [vmem:[#allocation2 + $0xa30] sm:$0xff] }
0x1019   : > { %3995 = vmatpush1.msra.mxu1 %v5784_v46  ;;  %v5843_v46 = vld [vmem:[#allocation2 + $0xa28] sm:$0xff] }
0x101a   : > { %3996 = vmatprep.subr.mxu1 %v5785_v48  ;;  %v5844_v48 = vld [vmem:[#allocation2 + $0xa20] sm:$0xff] }
0x101b   : > { %3997 = vmatpush2.msra.mxu1 %v5786_v31  ;;  %v5845_v31 = vld [vmem:[#allocation2 + $0xa18] sm:$0xff] }
0x101c   : > { %3998 = vmatprep.subr.mxu1 %v5787_v49  ;;  %v5846_v49 = vld [vmem:[#allocation2 + $0xa10] sm:$0xff] }
0x101d   : > { %3999 = vmatpush2.msra.mxu1 %v5788_v33  ;;  %v5847_v33 = vld [vmem:[#allocation2 + $0xa08] sm:$0xff] }
0x101e   : > { %4000 = vmatprep.subr.mxu1 %v5789_v19  ;;  %v5848_v19 = vld [vmem:[#allocation2 + $0xa00] sm:$0xff] }
0x101f   : > { %4001 = vmatpush2.msra.mxu1 %v5790_v50  ;;  %v5849_v50 = vld [vmem:[#allocation2 + $0xbf8] sm:$0xff] }
0x1020   : > { %4002 = vmatprep.subr.mxu1 %v5791_v35  ;;  %v5850_v35 = vld [vmem:[#allocation2 + $0xbf0] sm:$0xff] }
0x1021   : > { %4003 = vmatpush2.msra.mxu1 %v5792_v51  ;;  %v5851_v51 = vld [vmem:[#allocation2 + $0xbe8] sm:$0xff] }
0x1022   : > { %4004 = vmatprep.subr.mxu1 %v5793_v52  ;;  %v5852_v52 = vld [vmem:[#allocation2 + $0xbe0] sm:$0xff] }
0x1023   : > { %4005 = vmatpush2.msra.mxu1 %v5794_v54  ;;  %v5853_v54 = vld [vmem:[#allocation2 + $0xbd8] sm:$0xff] }
0x1024   : > { %4006 = vmatprep.subr.mxu1 %v5795_v57  ;;  %v5854_v57 = vld [vmem:[#allocation2 + $0xbd0] sm:$0xff] }
0x1025   : > { %4007 = vmatpush2.msra.mxu1 %v5796_v58  ;;  %v5855_v58 = vld [vmem:[#allocation2 + $0xbc8] sm:$0xff] }
0x1026   : > { %4008 = vmatprep.subr.mxu1 %v5797_v59  ;;  %v5856_v59 = vld [vmem:[#allocation2 + $0xbc0] sm:$0xff] }
0x1027   : > { %4009 = vmatpush2.msra.mxu1 %v5798_v45  ;;  %v5857_v45 = vld [vmem:[#allocation2 + $0xbb8] sm:$0xff] }
0x1028   : > { %4010 = vmatprep.subr.mxu1 %v5799_v47  ;;  %v5858_v47 = vld [vmem:[#allocation2 + $0xbb0] sm:$0xff] }
0x1029   : > { %4011 = vmatpush2.msra.mxu1 %v5800_v60  ;;  %v5859_v60 = vld [vmem:[#allocation2 + $0xba8] sm:$0xff] }
0x102a   : > { %4012 = vmatprep.subr.mxu1 %v5801_v62  ;;  %v5860_v62 = vld [vmem:[#allocation2 + $0xba0] sm:$0xff] }
0x102b   : > { %4013 = vmatpush2.msra.mxu1 %v5802_v3  ;;  %v5861_v3 = vld [vmem:[#allocation2 + $0xb98] sm:$0xff] }
0x102c   : > { %4014 = vmatprep.subr.mxu1 %v5803_v5  ;;  %v5862_v5 = vld [vmem:[#allocation2 + $0xb90] sm:$0xff] }
0x102d   : > { %4015 = vmatpush2.msra.mxu1 %v5804_v6  ;;  %v5863_v6 = vld [vmem:[#allocation2 + $0xb88] sm:$0xff] }
0x102e   : > { %4016 = vmatprep.subr.mxu1 %v5805_v41  ;;  %v5864_v41 = vld [vmem:[#allocation2 + $0xb80] sm:$0xff] }
0x102f   : > { %4017 = vmatpush2.msra.mxu1 %v5806_v42  ;;  %v5865_v42 = vld [vmem:[#allocation2 + $0xb78] sm:$0xff] }
0x1030   : > { %4018 = vmatprep.subr.mxu1 %v5807_v7  ;;  %v5866_v7 = vld [vmem:[#allocation2 + $0xb70] sm:$0xff] }
0x1031   : > { %4019 = vmatpush2.msra.mxu1 %v5808_v8  ;;  %v5867_v8 = vld [vmem:[#allocation2 + $0xb68] sm:$0xff] }
0x1032   : > { %4020 = vmatprep.subr.mxu1 %v5809_v53  ;;  %v5868_v53 = vld [vmem:[#allocation2 + $0xb60] sm:$0xff] }
0x1033   : > { %4021 = vmatpush2.msra.mxu1 %v5810_v55  ;;  %v5869_v55 = vld [vmem:[#allocation2 + $0xb58] sm:$0xff] }
0x1034   : > { %4022 = vmatprep.subr.mxu1 %v5811_v11  ;;  %v5870_v11 = vld [vmem:[#allocation2 + $0xb50] sm:$0xff] }
0x1035   : > { %4023 = vmatpush2.msra.mxu1 %v5812_v12  ;;  %v5871_v12 = vld [vmem:[#allocation2 + $0xb48] sm:$0xff] }
0x1036   : > { %4024 = vmatprep.subr.mxu1 %v5813_v13  ;;  %v5872_v13 = vld [vmem:[#allocation2 + $0xb40] sm:$0xff] }
0x1037   : > { %4025 = vmatpush2.msra.mxu1 %v5814_v16  ;;  %v5873_v16 = vld [vmem:[#allocation2 + $0xb38] sm:$0xff] }
0x1038   : > { %4026 = vmatprep.subr.mxu1 %v5815_v17  ;;  %v5874_v17 = vld [vmem:[#allocation2 + $0xb30] sm:$0xff] }
0x1039   : > { %4027 = vmatpush2.msra.mxu1 %v5816_v18  ;;  %v5875_v18 = vld [vmem:[#allocation2 + $0xb28] sm:$0xff] }
0x103a   : > { %4029 = vmatmul.mubr.f32.vlgmr.msra.gmra.mxu1 %v6445_v34  ;;  %4203 = vmatprep.subr.mxu1 %v5817_v20  ;;  %v5876_v20 = vld [vmem:[#allocation2 + $0xb20] sm:$0xff] }
0x103b   : > { %4204 = vmatpush1.msra.mxu1 %v5818_v43  ;;  %4267 = vmatprep.mubr.f32.mxu1 %v6443_v32  ;;  %v5877_v43 = vld [vmem:[#allocation2 + $0xb18] sm:$0xff] }
0x103c   : > { %4205 = vmatprep.subr.mxu1 %v5819_v63  ;;  %v5878_v63 = vld [vmem:[#allocation2 + $0xb10] sm:$0xff] }
0x103d   : > { %4206 = vmatpush1.msra.mxu1 %v5820_v22  ;;  %v5879_v22 = vld [vmem:[#allocation2 + $0xb08] sm:$0xff] }
0x103e   : > { %4207 = vmatprep.subr.mxu1 %v5821_v1  ;;  %v5880_v1 = vld [vmem:[#allocation2 + $0xb00] sm:$0xff] }
0x103f   : > { %4208 = vmatpush1.msra.mxu1 %v5822_v4  ;;  %v3806_v4 = vpop.f32.mrf.mxu1 }
0x1040   : > { %4209 = vmatprep.subr.mxu1 %v5823_v25 }
0x1041   : > { %4210 = vmatpush1.msra.mxu1 %v5824_v26  ;;  %v3807_v26 = vadd.f32 %v3806_v4, %v6471_v10  ;;  %v5929_v4 = vld [vmem:[#allocation2 + $0xd78] sm:$0xff] }
0x1042   : > { %4211 = vmatprep.subr.mxu1 %v5825_v61 }
0x1043   : > { %4212 = vmatpush1.msra.mxu1 %v5826_v0 }
0x1044   : > { %4213 = vmatprep.subr.mxu1 %v5827_v27 }
0x1045   : > { %4214 = vmatpush1.msra.mxu1 %v5828_v28 }
0x1046   : > { %4215 = vmatprep.subr.mxu1 %v5829_v29 }
0x1047   : > { %4216 = vmatpush1.msra.mxu1 %v5830_v30  ;;  %v4994_v30 = vld [vmem:[%s6568_s6 + $0x18] sm:$0x3f] }
0x1048   : > { %4217 = vmatprep.subr.mxu1 %v5831_v21 }
0x1049   : > { %4218 = vmatpush1.msra.mxu1 %v5832_v36  ;;  %v5002_v36 = vld [vmem:[%s6568_s6 + $0x28] sm:$0x3f] }
0x104a   : > { %4219 = vmatprep.subr.mxu1 %v5833_v37  ;;  %v5881_v37 = vld [vmem:[#allocation2 + $0xcf8] sm:$0xff] }
0x104b   : > { %4220 = vmatpush1.msra.mxu1 %v5834_v14  ;;  %v5882_v14 = vld [vmem:[#allocation2 + $0xcf0] sm:$0xff] }
0x104c   : > { %4221 = vmatprep.subr.mxu1 %v5835_v15  ;;  %v5883_v15 = vld [vmem:[#allocation2 + $0xce8] sm:$0xff] }
0x104d   : > { %4222 = vmatpush1.msra.mxu1 %v5836_v23  ;;  %v5884_v23 = vld [vmem:[#allocation2 + $0xce0] sm:$0xff] }
0x104e   : > { %4223 = vmatprep.subr.mxu1 %v5837_v24  ;;  %v5885_v24 = vld [vmem:[#allocation2 + $0xcd8] sm:$0xff] }
0x104f   : > { %4224 = vmatpush1.msra.mxu1 %v5838_v38  ;;  %v5886_v38 = vld [vmem:[#allocation2 + $0xcd0] sm:$0xff] }
0x1050   : > { %4225 = vmatprep.subr.mxu1 %v5839_v39  ;;  %v5887_v39 = vld [vmem:[#allocation2 + $0xcc8] sm:$0xff] }
0x1051   : > { %4226 = vmatpush1.msra.mxu1 %v5840_v40  ;;  %v5888_v40 = vld [vmem:[#allocation2 + $0xcc0] sm:$0xff] }
0x1052   : > { %4227 = vmatprep.subr.mxu1 %v5841_v56  ;;  %v5889_v56 = vld [vmem:[#allocation2 + $0xcb8] sm:$0xff] }
0x1053   : > { %4228 = vmatpush1.msra.mxu1 %v5842_v44  ;;  %v5890_v44 = vld [vmem:[#allocation2 + $0xcb0] sm:$0xff] }
0x1054   : > { %4229 = vmatprep.subr.mxu1 %v5843_v46  ;;  %v5891_v46 = vld [vmem:[#allocation2 + $0xca8] sm:$0xff] }
0x1055   : > { %4230 = vmatpush1.msra.mxu1 %v5844_v48  ;;  %v5892_v48 = vld [vmem:[#allocation2 + $0xca0] sm:$0xff] }
0x1056   : > { %4231 = vmatprep.subr.mxu1 %v5845_v31  ;;  %v5893_v31 = vld [vmem:[#allocation2 + $0xc98] sm:$0xff] }
0x1057   : > { %4232 = vmatpush1.msra.mxu1 %v5846_v49  ;;  %v5894_v49 = vld [vmem:[#allocation2 + $0xc90] sm:$0xff] }
0x1058   : > { %4233 = vmatprep.subr.mxu1 %v5847_v33  ;;  %v5895_v33 = vld [vmem:[#allocation2 + $0xc88] sm:$0xff] }
0x1059   : > { %4234 = vmatpush1.msra.mxu1 %v5848_v19  ;;  %v5896_v19 = vld [vmem:[#allocation2 + $0xc80] sm:$0xff] }
0x105a   : > { %4235 = vmatprep.subr.mxu1 %v5849_v50  ;;  %v5897_v50 = vld [vmem:[#allocation2 + $0xc78] sm:$0xff] }
0x105b   : > { %4236 = vmatpush2.msra.mxu1 %v5850_v35  ;;  %v5898_v35 = vld [vmem:[#allocation2 + $0xc70] sm:$0xff] }
0x105c   : > { %4237 = vmatprep.subr.mxu1 %v5851_v51  ;;  %v5899_v51 = vld [vmem:[#allocation2 + $0xc68] sm:$0xff] }
0x105d   : > { %4238 = vmatpush2.msra.mxu1 %v5852_v52  ;;  %v5900_v52 = vld [vmem:[#allocation2 + $0xc60] sm:$0xff] }
0x105e   : > { %4239 = vmatprep.subr.mxu1 %v5853_v54  ;;  %v5901_v54 = vld [vmem:[#allocation2 + $0xc58] sm:$0xff] }
0x105f   : > { %4240 = vmatpush2.msra.mxu1 %v5854_v57  ;;  %v5902_v57 = vld [vmem:[#allocation2 + $0xc50] sm:$0xff] }
0x1060   : > { %4241 = vmatprep.subr.mxu1 %v5855_v58  ;;  %v5903_v58 = vld [vmem:[#allocation2 + $0xc48] sm:$0xff] }
0x1061   : > { %4242 = vmatpush2.msra.mxu1 %v5856_v59  ;;  %v5904_v59 = vld [vmem:[#allocation2 + $0xc40] sm:$0xff] }
0x1062   : > { %4243 = vmatprep.subr.mxu1 %v5857_v45  ;;  %v5905_v45 = vld [vmem:[#allocation2 + $0xc38] sm:$0xff] }
0x1063   : > { %4244 = vmatpush2.msra.mxu1 %v5858_v47  ;;  %v5906_v47 = vld [vmem:[#allocation2 + $0xc30] sm:$0xff] }
0x1064   : > { %4245 = vmatprep.subr.mxu1 %v5859_v60  ;;  %v5907_v60 = vld [vmem:[#allocation2 + $0xc28] sm:$0xff] }
0x1065   : > { %4246 = vmatpush2.msra.mxu1 %v5860_v62  ;;  %v5908_v62 = vld [vmem:[#allocation2 + $0xc20] sm:$0xff] }
0x1066   : > { %4247 = vmatprep.subr.mxu1 %v5861_v3  ;;  %v5909_v3 = vld [vmem:[#allocation2 + $0xc18] sm:$0xff] }
0x1067   : > { %4248 = vmatpush2.msra.mxu1 %v5862_v5  ;;  %v5910_v5 = vld [vmem:[#allocation2 + $0xc10] sm:$0xff] }
0x1068   : > { %4249 = vmatprep.subr.mxu1 %v5863_v6  ;;  %v5911_v6 = vld [vmem:[#allocation2 + $0xc08] sm:$0xff] }
0x1069   : > { %4250 = vmatpush2.msra.mxu1 %v5864_v41  ;;  %v5912_v41 = vld [vmem:[#allocation2 + $0xc00] sm:$0xff] }
0x106a   : > { %4251 = vmatprep.subr.mxu1 %v5865_v42  ;;  %v5913_v42 = vld [vmem:[#allocation2 + $0xdf8] sm:$0xff] }
0x106b   : > { %4252 = vmatpush2.msra.mxu1 %v5866_v7  ;;  %v5914_v7 = vld [vmem:[#allocation2 + $0xdf0] sm:$0xff] }
0x106c   : > { %4253 = vmatprep.subr.mxu1 %v5867_v8  ;;  %v5915_v8 = vld [vmem:[#allocation2 + $0xde8] sm:$0xff] }
0x106d   : > { %4254 = vmatpush2.msra.mxu1 %v5868_v53  ;;  %v5916_v53 = vld [vmem:[#allocation2 + $0xde0] sm:$0xff] }
0x106e   : > { %4255 = vmatprep.subr.mxu1 %v5869_v55  ;;  %v5917_v55 = vld [vmem:[#allocation2 + $0xdd8] sm:$0xff] }
0x106f   : > { %4256 = vmatpush2.msra.mxu1 %v5870_v11  ;;  %v5918_v11 = vld [vmem:[#allocation2 + $0xdd0] sm:$0xff] }
0x1070   : > { %4257 = vmatprep.subr.mxu1 %v5871_v12  ;;  %v5919_v12 = vld [vmem:[#allocation2 + $0xdc8] sm:$0xff] }
0x1071   : > { %4258 = vmatpush2.msra.mxu1 %v5872_v13  ;;  %v5920_v13 = vld [vmem:[#allocation2 + $0xdc0] sm:$0xff] }
0x1072   : > { %4259 = vmatprep.subr.mxu1 %v5873_v16  ;;  %v5921_v16 = vld [vmem:[#allocation2 + $0xdb8] sm:$0xff] }
0x1073   : > { %4260 = vmatpush2.msra.mxu1 %v5874_v17  ;;  %v5922_v17 = vld [vmem:[#allocation2 + $0xdb0] sm:$0xff] }
0x1074   : > { %4261 = vmatprep.subr.mxu1 %v5875_v18  ;;  %v5923_v18 = vld [vmem:[#allocation2 + $0xda8] sm:$0xff] }
0x1075   : > { %4262 = vmatpush2.msra.mxu1 %v5876_v20  ;;  %v5924_v20 = vld [vmem:[#allocation2 + $0xda0] sm:$0xff] }
0x1076   : > { %4263 = vmatprep.subr.mxu1 %v5877_v43  ;;  %v5925_v43 = vld [vmem:[#allocation2 + $0xd98] sm:$0xff] }
0x1077   : > { %4264 = vmatpush2.msra.mxu1 %v5878_v63  ;;  %v5926_v63 = vld [vmem:[#allocation2 + $0xd90] sm:$0xff] }
0x1078   : > { %4265 = vmatprep.subr.mxu1 %v5879_v22  ;;  %v5927_v22 = vld [vmem:[#allocation2 + $0xd88] sm:$0xff] }
0x1079   : > { %4266 = vmatpush2.msra.mxu1 %v5880_v1  ;;  %v5928_v1 = vld [vmem:[#allocation2 + $0xd80] sm:$0xff] }
0x107a   : > { %4268 = vmatmul.mubr.f32.vlgmr.msra.gmra.mxu1 %v6445_v34 }
0x107b   : > { %4504 = vmatprep.mubr.f32.mxu1 %v6114_v2 }
0x10ba   : > { %v3957_v25 = vpop.f32.mrf.mxu1 }
0x10bb   : > { %v6486_v61 = vadd.f32 %v3957_v25, %v6469_v9  ;;  %v4998_v9 = vld [vmem:[%s6568_s6 + $0x20] sm:$0x3f]  ;;  %v5930_v25 = vld [vmem:[#allocation2 + $0xd70] sm:$0xff] }
0x10bc   : > { %v3959_v0 = vpop.f32.mrf.mxu1 }
0x10bd   : > { %v6488_v27 = vadd.f32 %v3959_v0, %v3807_v26  ;;  %v5931_v26 = vld [vmem:[#allocation2 + $0xd68] sm:$0xff]  ;;  %v5932_v0 = vld [vmem:[#allocation2 + $0xd60] sm:$0xff] }
0x10fa   : > { %v4030_v28 = vpop.f32.mrf.mxu1 }
0x10fc   : > { %v4032_v29 = vpop.f32.mrf.mxu1 }
0x10fd   : > { %4995 = vmatprep.subr.msk.mxu0 %vm2322_vm2, %v4032_v29  ;;  %v5934_v29 = vld [vmem:[#allocation2 + $0xd50] sm:$0xff] }
0x10fe   : > { %4996 = vmatpush1.msk.msra.mxu0 %vm2322_vm2, %v4030_v28  ;;  %v5933_v28 = vld [vmem:[#allocation2 + $0xd58] sm:$0xff] }
0x10ff   : > { %4997 = vmatmul.mubr.msk.f32.vlgmr.msra.gmra.mxu0 %vm2318_vm3, %v4994_v30  ;;  %4999 = vmatprep.subr.msk.mxu0 %vm2322_vm2, %v6443_v32  ;;  %v5935_v30 = vld [vmem:[#allocation2 + $0xd48] sm:$0xff] }
0x1100   : > { %5000 = vmatpush1.msk.msra.mxu0 %vm2322_vm2, %v6445_v34  ;;  %4194 = vmatprep.mubr.f32.mxu0 %v6114_v2 }
0x1103   : > { %5001 = vmatmul.mubr.msk.f32.vlgmr.msra.gmra.mxu0 %vm2318_vm3, %v4998_v9  ;;  %v5936_v9 = vld [vmem:[#allocation2 + $0xd40] sm:$0xff] }
0x1104   : > { %4349 = vmatprep.mubr.f32.mxu0 %v6114_v2 }
0x113a   : > { %v4269_v10 = vpop.f32.mrf.mxu1 }
0x113c   : > { %v4271_v21 = vpop.f32.mrf.mxu1 }
0x113d   : > { %5003 = vmatprep.subr.msk.mxu0 %vm2322_vm2, %v4271_v21  ;;  %v5938_v21 = vld [vmem:[#allocation2 + $0xd30] sm:$0xff] }
0x113e   : > { %5004 = vmatpush1.msk.msra.mxu0 %vm2322_vm2, %v4269_v10  ;;  %v5937_v10 = vld [vmem:[#allocation2 + $0xd38] sm:$0xff] }
0x113f   : > { %5005 = vmatmul.mubr.msk.f32.vlgmr.msra.gmra.mxu0 %vm2318_vm3, %v5002_v36  ;;  %4358 = vmatprep.subr.mxu0 %v5881_v37  ;;  %v5939_v36 = vld [vmem:[#allocation2 + $0xd28] sm:$0xff]  ;;  %v5940_v37 = vld [vmem:[#allocation2 + $0xd20] sm:$0xff] }
0x1140   : > { %4359 = vmatpush1.msra.mxu0 %v5882_v14  ;;  %4422 = vmatprep.mubr.f32.mxu0 %v6443_v32  ;;  %v5941_v14 = vld [vmem:[#allocation2 + $0xd18] sm:$0xff] }
0x1141   : > { %4360 = vmatprep.subr.mxu0 %v5883_v15  ;;  %v5942_v15 = vld [vmem:[#allocation2 + $0xd10] sm:$0xff] }
0x1142   : > { %4361 = vmatpush1.msra.mxu0 %v5884_v23  ;;  %v5943_v23 = vld [vmem:[#allocation2 + $0xd08] sm:$0xff] }
0x1143   : > { %4362 = vmatprep.subr.mxu0 %v5885_v24  ;;  %v5944_v24 = vld [vmem:[#allocation2 + $0xd00] sm:$0xff] }
0x1144   : > { %4363 = vmatpush1.msra.mxu0 %v5886_v38 }
0x1145   : > { %4364 = vmatprep.subr.mxu0 %v5887_v39 }
0x1146   : > { %4365 = vmatpush1.msra.mxu0 %v5888_v40 }
0x1147   : > { %4366 = vmatprep.subr.mxu0 %v5889_v56 }
0x1148   : > { %4367 = vmatpush1.msra.mxu0 %v5890_v44 }
0x1149   : > { %4368 = vmatprep.subr.mxu0 %v5891_v46 }
0x114a   : > { %4369 = vmatpush1.msra.mxu0 %v5892_v48 }
0x114b   : > { %4370 = vmatprep.subr.mxu0 %v5893_v31 }
0x114c   : > { %4371 = vmatpush1.msra.mxu0 %v5894_v49 }
0x114d   : > { %4372 = vmatprep.subr.mxu0 %v5895_v33 }
0x114e   : > { %4373 = vmatpush1.msra.mxu0 %v5896_v19 }
0x114f   : > { %4374 = vmatprep.subr.mxu0 %v5897_v50 }
0x1150   : > { %4375 = vmatpush1.msra.mxu0 %v5898_v35 }
0x1151   : > { %4376 = vmatprep.subr.mxu0 %v5899_v51 }
0x1152   : > { %4377 = vmatpush1.msra.mxu0 %v5900_v52  ;;  %v5006_v52 = vld [vmem:[%s6568_s6 + $0x30] sm:$0x3f] }
0x1153   : > { %4378 = vmatprep.subr.mxu0 %v5901_v54  ;;  %v5947_v54 = vld [vmem:[#allocation2 + $0xee8] sm:$0xff] }
0x1154   : > { %4379 = vmatpush1.msra.mxu0 %v5902_v57  ;;  %v5948_v57 = vld [vmem:[#allocation2 + $0xee0] sm:$0xff] }
0x1155   : > { %4380 = vmatprep.subr.mxu0 %v5903_v58  ;;  %v5949_v58 = vld [vmem:[#allocation2 + $0xed8] sm:$0xff] }
0x1156   : > { %4381 = vmatpush1.msra.mxu0 %v5904_v59  ;;  %v5950_v59 = vld [vmem:[#allocation2 + $0xed0] sm:$0xff] }
0x1157   : > { %4382 = vmatprep.subr.mxu0 %v5905_v45  ;;  %v5951_v45 = vld [vmem:[#allocation2 + $0xec8] sm:$0xff] }
0x1158   : > { %4383 = vmatpush1.msra.mxu0 %v5906_v47  ;;  %v5952_v47 = vld [vmem:[#allocation2 + $0xec0] sm:$0xff] }
0x1159   : > { %4384 = vmatprep.subr.mxu0 %v5907_v60  ;;  %v5953_v60 = vld [vmem:[#allocation2 + $0xeb8] sm:$0xff] }
0x115a   : > { %4385 = vmatpush1.msra.mxu0 %v5908_v62  ;;  %v5954_v62 = vld [vmem:[#allocation2 + $0xeb0] sm:$0xff] }
0x115b   : > { %4386 = vmatprep.subr.mxu0 %v5909_v3  ;;  %v5955_v3 = vld [vmem:[#allocation2 + $0xea8] sm:$0xff] }
0x115c   : > { %4387 = vmatpush1.msra.mxu0 %v5910_v5  ;;  %v5956_v5 = vld [vmem:[#allocation2 + $0xea0] sm:$0xff] }
0x115d   : > { %4388 = vmatprep.subr.mxu0 %v5911_v6  ;;  %v5957_v6 = vld [vmem:[#allocation2 + $0xe98] sm:$0xff] }
0x115e   : > { %4389 = vmatpush1.msra.mxu0 %v5912_v41  ;;  %v5958_v41 = vld [vmem:[#allocation2 + $0xe90] sm:$0xff] }
0x115f   : > { %4390 = vmatprep.subr.mxu0 %v5913_v42  ;;  %v5959_v42 = vld [vmem:[#allocation2 + $0xe88] sm:$0xff] }
0x1160   : > { %4391 = vmatpush2.msra.mxu0 %v5914_v7  ;;  %v5960_v7 = vld [vmem:[#allocation2 + $0xe80] sm:$0xff] }
0x1161   : > { %4392 = vmatprep.subr.mxu0 %v5915_v8  ;;  %v5961_v8 = vld [vmem:[#allocation2 + $0xe78] sm:$0xff] }
0x1162   : > { %4393 = vmatpush2.msra.mxu0 %v5916_v53  ;;  %v5962_v53 = vld [vmem:[#allocation2 + $0xe70] sm:$0xff] }
0x1163   : > { %4394 = vmatprep.subr.mxu0 %v5917_v55  ;;  %v5963_v55 = vld [vmem:[#allocation2 + $0xe68] sm:$0xff] }
0x1164   : > { %4395 = vmatpush2.msra.mxu0 %v5918_v11  ;;  %v5964_v11 = vld [vmem:[#allocation2 + $0xe60] sm:$0xff] }
0x1165   : > { %4396 = vmatprep.subr.mxu0 %v5919_v12  ;;  %v5965_v12 = vld [vmem:[#allocation2 + $0xe58] sm:$0xff] }
0x1166   : > { %4397 = vmatpush2.msra.mxu0 %v5920_v13  ;;  %v5966_v13 = vld [vmem:[#allocation2 + $0xe50] sm:$0xff] }
0x1167   : > { %4398 = vmatprep.subr.mxu0 %v5921_v16  ;;  %v5967_v16 = vld [vmem:[#allocation2 + $0xe48] sm:$0xff] }
0x1168   : > { %4399 = vmatpush2.msra.mxu0 %v5922_v17  ;;  %v5968_v17 = vld [vmem:[#allocation2 + $0xe40] sm:$0xff] }
0x1169   : > { %4400 = vmatprep.subr.mxu0 %v5923_v18  ;;  %v5969_v18 = vld [vmem:[#allocation2 + $0xe38] sm:$0xff] }
0x116a   : > { %4401 = vmatpush2.msra.mxu0 %v5924_v20  ;;  %v5970_v20 = vld [vmem:[#allocation2 + $0xe30] sm:$0xff] }
0x116b   : > { %4402 = vmatprep.subr.mxu0 %v5925_v43  ;;  %v5971_v43 = vld [vmem:[#allocation2 + $0xe28] sm:$0xff] }
0x116c   : > { %4403 = vmatpush2.msra.mxu0 %v5926_v63  ;;  %v5972_v63 = vld [vmem:[#allocation2 + $0xe20] sm:$0xff] }
0x116d   : > { %4404 = vmatprep.subr.mxu0 %v5927_v22  ;;  %v5973_v22 = vld [vmem:[#allocation2 + $0xe18] sm:$0xff] }
0x116e   : > { %4405 = vmatpush2.msra.mxu0 %v5928_v1  ;;  %v5974_v1 = vld [vmem:[#allocation2 + $0xe10] sm:$0xff] }
0x116f   : > { %4406 = vmatprep.subr.mxu0 %v5929_v4  ;;  %v5975_v4 = vld [vmem:[#allocation2 + $0xe08] sm:$0xff] }
0x1170   : > { %4407 = vmatpush2.msra.mxu0 %v5930_v25  ;;  %v5976_v25 = vld [vmem:[#allocation2 + $0xe00] sm:$0xff] }
0x1171   : > { %4408 = vmatprep.subr.mxu0 %v5931_v26  ;;  %v5977_v26 = vld [vmem:[#allocation2 + $0xff8] sm:$0xff] }
0x1172   : > { %4409 = vmatpush2.msra.mxu0 %v5932_v0  ;;  %v5978_v0 = vld [vmem:[#allocation2 + $0xff0] sm:$0xff] }
0x1173   : > { %4410 = vmatprep.subr.mxu0 %v5933_v28  ;;  %v5979_v28 = vld [vmem:[#allocation2 + $0xfe8] sm:$0xff] }
0x1174   : > { %4411 = vmatpush2.msra.mxu0 %v5934_v29  ;;  %v5980_v29 = vld [vmem:[#allocation2 + $0xfe0] sm:$0xff] }
0x1175   : > { %4412 = vmatprep.subr.mxu0 %v5935_v30  ;;  %v5981_v30 = vld [vmem:[#allocation2 + $0xfd8] sm:$0xff] }
0x1176   : > { %4413 = vmatpush2.msra.mxu0 %v5936_v9  ;;  %v5982_v9 = vld [vmem:[#allocation2 + $0xfd0] sm:$0xff] }
0x1177   : > { %4414 = vmatprep.subr.mxu0 %v5937_v10  ;;  %v5983_v10 = vld [vmem:[#allocation2 + $0xfc8] sm:$0xff] }
0x1178   : > { %4415 = vmatpush2.msra.mxu0 %v5938_v21  ;;  %v5984_v21 = vld [vmem:[#allocation2 + $0xfc0] sm:$0xff] }
0x1179   : > { %4416 = vmatprep.subr.mxu0 %v5939_v36  ;;  %v5985_v36 = vld [vmem:[#allocation2 + $0xfb8] sm:$0xff] }
0x117a   : > { %4417 = vmatpush2.msra.mxu0 %v5940_v37  ;;  %v5986_v37 = vld [vmem:[#allocation2 + $0xfb0] sm:$0xff] }
0x117b   : > { %4418 = vmatprep.subr.mxu0 %v5941_v14  ;;  %v5987_v14 = vld [vmem:[#allocation2 + $0xfa8] sm:$0xff] }
0x117c   : > { %4419 = vmatpush2.msra.mxu0 %v5942_v15  ;;  %v5988_v15 = vld [vmem:[#allocation2 + $0xfa0] sm:$0xff] }
0x117d   : > { %4420 = vmatprep.subr.mxu0 %v5943_v23  ;;  %v5989_v23 = vld [vmem:[#allocation2 + $0xf98] sm:$0xff] }
0x117e   : > { %4421 = vmatpush2.msra.mxu0 %v5944_v24  ;;  %v5990_v24 = vld [vmem:[#allocation2 + $0xf90] sm:$0xff] }
0x117f   : > { %4423 = vmatmul.mubr.f32.vlgmr.msra.gmra.mxu0 %v6445_v34 }
0x1180   : > { %4659 = vmatprep.mubr.f32.mxu0 %v6114_v2 }
0x11bf   : > { %v4112_v38 = vpop.f32.mrf.mxu0 }
0x11c0   : > { %v4117_v39 = vadd.f32 %v4112_v38, %v6486_v61  ;;  %v5945_v61 = vld [vmem:[#allocation2 + $0xef8] sm:$0xff]  ;;  %v5991_v38 = vld [vmem:[#allocation2 + $0xf88] sm:$0xff] }
0x11c1   : > { %v4114_v40 = vpop.f32.mrf.mxu0 }
0x11c2   : > { %v4118_v56 = vadd.f32 %v4114_v40, %v6488_v27  ;;  %v5946_v27 = vld [vmem:[#allocation2 + $0xef0] sm:$0xff]  ;;  %v5993_v40 = vld [vmem:[#allocation2 + $0xf78] sm:$0xff] }
0x11c3   : > { %v4196_v44 = vpop.f32.mrf.mxu0 }
0x11c4   : > { %v4201_v46 = vadd.f32 %v4196_v44, %v4117_v39  ;;  %v5992_v39 = vld [vmem:[#allocation2 + $0xf80] sm:$0xff]  ;;  %v5995_v44 = vld [vmem:[#allocation2 + $0xf68] sm:$0xff] }
0x11c5   : > { %v4198_v48 = vpop.f32.mrf.mxu0 }
0x11c6   : > { %v4202_v31 = vadd.f32 %v4198_v48, %v4118_v56  ;;  %v5994_v56 = vld [vmem:[#allocation2 + $0xf70] sm:$0xff]  ;;  %v5997_v48 = vld [vmem:[#allocation2 + $0xf58] sm:$0xff] }
0x11ff   : > { %v4351_v49 = vpop.f32.mrf.mxu0 }
0x1200   : > { %v6517_v33 = vadd.f32 %v4351_v49, %v4201_v46  ;;  %v5996_v46 = vld [vmem:[#allocation2 + $0xf60] sm:$0xff]  ;;  %v5999_v49 = vld [vmem:[#allocation2 + $0xf48] sm:$0xff] }
0x1201   : > { %v4353_v19 = vpop.f32.mrf.mxu0 }
0x1202   : > { %v6519_v50 = vadd.f32 %v4353_v19, %v4202_v31  ;;  %v5998_v31 = vld [vmem:[#allocation2 + $0xf50] sm:$0xff]  ;;  %v6000_v19 = vld [vmem:[#allocation2 + $0xf40] sm:$0xff] }
0x123f   : > { %v4424_v35 = vpop.f32.mrf.mxu0 }
0x1241   : > { %v4426_v51 = vpop.f32.mrf.mxu0 }
0x1242   : > { %5007 = vmatprep.subr.msk.mxu1 %vm2322_vm2, %v4426_v51  ;;  %v6002_v51 = vld [vmem:[#allocation2 + $0xf30] sm:$0xff] }
0x1243   : > { %5008 = vmatpush1.msk.msra.mxu1 %vm2322_vm2, %v4424_v35  ;;  %v6001_v35 = vld [vmem:[#allocation2 + $0xf38] sm:$0xff] }
0x1244   : > { %5009 = vmatmul.mubr.msk.f32.vlgmr.msra.gmra.mxu1 %vm2318_vm3, %v5006_v52  ;;  %4513 = vmatprep.subr.mxu1 %v5945_v61  ;;  %v6003_v52 = vld [vmem:[#allocation2 + $0xf28] sm:$0xff]  ;;  %v6004_v61 = vld [vmem:[#allocation2 + $0xf20] sm:$0xff] }
0x1245   : > { %4514 = vmatpush1.msra.mxu1 %v5946_v27  ;;  %4577 = vmatprep.mubr.f32.mxu1 %v6443_v32  ;;  %v6005_v27 = vld [vmem:[#allocation2 + $0xf18] sm:$0xff] }
0x1246   : > { %4515 = vmatprep.subr.mxu1 %v5947_v54  ;;  %v6006_v54 = vld [vmem:[#allocation2 + $0xf10] sm:$0xff] }
0x1247   : > { %4516 = vmatpush1.msra.mxu1 %v5948_v57  ;;  %v6007_v57 = vld [vmem:[#allocation2 + $0xf08] sm:$0xff] }
0x1248   : > { %4517 = vmatprep.subr.mxu1 %v5949_v58  ;;  %v6008_v58 = vld [vmem:[#allocation2 + $0xf00] sm:$0xff] }
0x1249   : > { %4518 = vmatpush1.msra.mxu1 %v5950_v59 }
0x124a   : > { %4519 = vmatprep.subr.mxu1 %v5951_v45 }
0x124b   : > { %4520 = vmatpush1.msra.mxu1 %v5952_v47 }
0x124c   : > { %4521 = vmatprep.subr.mxu1 %v5953_v60 }
0x124d   : > { %4522 = vmatpush1.msra.mxu1 %v5954_v62 }
0x124e   : > { %4523 = vmatprep.subr.mxu1 %v5955_v3 }
0x124f   : > { %4524 = vmatpush1.msra.mxu1 %v5956_v5  ;;  %v5010_v5 = vld [vmem:[%s6568_s6 + $0x38] sm:$0x3f] }
0x1250   : > { %4525 = vmatprep.subr.mxu1 %v5957_v6  ;;  %v6012_v6 = vld [vmem:[#allocation2 + $0x10e0] sm:$0xff] }
0x1251   : > { %4526 = vmatpush1.msra.mxu1 %v5958_v41  ;;  %v6013_v41 = vld [vmem:[#allocation2 + $0x10d8] sm:$0xff] }
0x1252   : > { %4527 = vmatprep.subr.mxu1 %v5959_v42  ;;  %v6014_v42 = vld [vmem:[#allocation2 + $0x10d0] sm:$0xff] }
0x1253   : > { %4528 = vmatpush1.msra.mxu1 %v5960_v7  ;;  %v6015_v7 = vld [vmem:[#allocation2 + $0x10c8] sm:$0xff] }
0x1254   : > { %4529 = vmatprep.subr.mxu1 %v5961_v8  ;;  %v6016_v8 = vld [vmem:[#allocation2 + $0x10c0] sm:$0xff] }
0x1255   : > { %4530 = vmatpush1.msra.mxu1 %v5962_v53  ;;  %v6017_v53 = vld [vmem:[#allocation2 + $0x10b8] sm:$0xff] }
0x1256   : > { %4531 = vmatprep.subr.mxu1 %v5963_v55  ;;  %v6018_v55 = vld [vmem:[#allocation2 + $0x10b0] sm:$0xff] }
0x1257   : > { %4532 = vmatpush1.msra.mxu1 %v5964_v11  ;;  %v6019_v11 = vld [vmem:[#allocation2 + $0x10a8] sm:$0xff] }
0x1258   : > { %4533 = vmatprep.subr.mxu1 %v5965_v12  ;;  %v6020_v12 = vld [vmem:[#allocation2 + $0x10a0] sm:$0xff] }
0x1259   : > { %4534 = vmatpush1.msra.mxu1 %v5966_v13  ;;  %v6022_v13 = vld [vmem:[#allocation2 + $0x1090] sm:$0xff] }
0x125a   : > { %4535 = vmatprep.subr.mxu1 %v5967_v16  ;;  %v6023_v16 = vld [vmem:[#allocation2 + $0x1088] sm:$0xff] }
0x125b   : > { %4536 = vmatpush1.msra.mxu1 %v5968_v17  ;;  %v6024_v17 = vld [vmem:[#allocation2 + $0x1080] sm:$0xff] }
0x125c   : > { %4537 = vmatprep.subr.mxu1 %v5969_v18  ;;  %v6025_v18 = vld [vmem:[#allocation2 + $0x1078] sm:$0xff] }
0x125d   : > { %4538 = vmatpush1.msra.mxu1 %v5970_v20  ;;  %v6026_v20 = vld [vmem:[#allocation2 + $0x1070] sm:$0xff] }
0x125e   : > { %4539 = vmatprep.subr.mxu1 %v5971_v43  ;;  %v6027_v43 = vld [vmem:[#allocation2 + $0x1068] sm:$0xff] }
0x125f   : > { %4540 = vmatpush1.msra.mxu1 %v5972_v63  ;;  %v6028_v63 = vld [vmem:[#allocation2 + $0x1060] sm:$0xff] }
0x1260   : > { %4541 = vmatprep.subr.mxu1 %v5973_v22  ;;  %v6029_v22 = vld [vmem:[#allocation2 + $0x1058] sm:$0xff] }
0x1261   : > { %4542 = vmatpush1.msra.mxu1 %v5974_v1  ;;  %v6030_v1 = vld [vmem:[#allocation2 + $0x1050] sm:$0xff] }
0x1262   : > { %4543 = vmatprep.subr.mxu1 %v5975_v4  ;;  %v6031_v4 = vld [vmem:[#allocation2 + $0x1048] sm:$0xff] }
0x1263   : > { %4544 = vmatpush1.msra.mxu1 %v5976_v25  ;;  %v6032_v25 = vld [vmem:[#allocation2 + $0x1040] sm:$0xff] }
0x1264   : > { %4545 = vmatprep.subr.mxu1 %v5977_v26  ;;  %v6033_v26 = vld [vmem:[#allocation2 + $0x1038] sm:$0xff] }
0x1265   : > { %4546 = vmatpush2.msra.mxu1 %v5978_v0  ;;  %v6034_v0 = vld [vmem:[#allocation2 + $0x1030] sm:$0xff] }
0x1266   : > { %4547 = vmatprep.subr.mxu1 %v5979_v28  ;;  %v6035_v28 = vld [vmem:[#allocation2 + $0x1028] sm:$0xff] }
0x1267   : > { %4548 = vmatpush2.msra.mxu1 %v5980_v29  ;;  %v6036_v29 = vld [vmem:[#allocation2 + $0x1020] sm:$0xff] }
0x1268   : > { %4549 = vmatprep.subr.mxu1 %v5981_v30  ;;  %v6037_v30 = vld [vmem:[#allocation2 + $0x1018] sm:$0xff] }
0x1269   : > { %4550 = vmatpush2.msra.mxu1 %v5982_v9  ;;  %v6038_v9 = vld [vmem:[#allocation2 + $0x1010] sm:$0xff] }
0x126a   : > { %4551 = vmatprep.subr.mxu1 %v5983_v10  ;;  %v6039_v10 = vld [vmem:[#allocation2 + $0x1008] sm:$0xff] }
0x126b   : > { %4552 = vmatpush2.msra.mxu1 %v5984_v21  ;;  %v6040_v21 = vld [vmem:[#allocation2 + $0x1000] sm:$0xff] }
0x126c   : > { %4553 = vmatprep.subr.mxu1 %v5985_v36  ;;  %v6041_v36 = vld [vmem:[#allocation2 + $0x11f8] sm:$0xff] }
0x126d   : > { %4554 = vmatpush2.msra.mxu1 %v5986_v37  ;;  %v6042_v37 = vld [vmem:[#allocation2 + $0x11f0] sm:$0xff] }
0x126e   : > { %4555 = vmatprep.subr.mxu1 %v5987_v14  ;;  %v6043_v14 = vld [vmem:[#allocation2 + $0x11e8] sm:$0xff] }
0x126f   : > { %4556 = vmatpush2.msra.mxu1 %v5988_v15  ;;  %v6044_v15 = vld [vmem:[#allocation2 + $0x11e0] sm:$0xff] }
0x1270   : > { %4557 = vmatprep.subr.mxu1 %v5989_v23  ;;  %v6045_v23 = vld [vmem:[#allocation2 + $0x11d8] sm:$0xff] }
0x1271   : > { %4558 = vmatpush2.msra.mxu1 %v5990_v24  ;;  %v6046_v24 = vld [vmem:[#allocation2 + $0x11d0] sm:$0xff] }
0x1272   : > { %4559 = vmatprep.subr.mxu1 %v5991_v38  ;;  %v6047_v38 = vld [vmem:[#allocation2 + $0x11c8] sm:$0xff] }
0x1273   : > { %4560 = vmatpush2.msra.mxu1 %v5992_v39  ;;  %v6048_v39 = vld [vmem:[#allocation2 + $0x11c0] sm:$0xff] }
0x1274   : > { %4561 = vmatprep.subr.mxu1 %v5993_v40  ;;  %v6049_v40 = vld [vmem:[#allocation2 + $0x11b8] sm:$0xff] }
0x1275   : > { %4562 = vmatpush2.msra.mxu1 %v5994_v56  ;;  %v6050_v56 = vld [vmem:[#allocation2 + $0x11b0] sm:$0xff] }
0x1276   : > { %4563 = vmatprep.subr.mxu1 %v5995_v44  ;;  %v6051_v44 = vld [vmem:[#allocation2 + $0x11a8] sm:$0xff] }
0x1277   : > { %4564 = vmatpush2.msra.mxu1 %v5996_v46  ;;  %v6052_v46 = vld [vmem:[#allocation2 + $0x11a0] sm:$0xff] }
0x1278   : > { %4565 = vmatprep.subr.mxu1 %v5997_v48  ;;  %v6053_v48 = vld [vmem:[#allocation2 + $0x1198] sm:$0xff] }
0x1279   : > { %4566 = vmatpush2.msra.mxu1 %v5998_v31  ;;  %v6054_v31 = vld [vmem:[#allocation2 + $0x1190] sm:$0xff] }
0x127a   : > { %4567 = vmatprep.subr.mxu1 %v5999_v49  ;;  %v6055_v49 = vld [vmem:[#allocation2 + $0x1188] sm:$0xff] }
0x127b   : > { %4568 = vmatpush2.msra.mxu1 %v6000_v19  ;;  %v6056_v19 = vld [vmem:[#allocation2 + $0x1180] sm:$0xff] }
0x127c   : > { %4569 = vmatprep.subr.mxu1 %v6001_v35  ;;  %v6057_v35 = vld [vmem:[#allocation2 + $0x1178] sm:$0xff] }
0x127d   : > { %4570 = vmatpush2.msra.mxu1 %v6002_v51  ;;  %v6058_v51 = vld [vmem:[#allocation2 + $0x1170] sm:$0xff] }
0x127e   : > { %4571 = vmatprep.subr.mxu1 %v6003_v52  ;;  %v6059_v52 = vld [vmem:[#allocation2 + $0x1168] sm:$0xff] }
0x127f   : > { %4572 = vmatpush2.msra.mxu1 %v6004_v61  ;;  %v6060_v61 = vld [vmem:[#allocation2 + $0x1160] sm:$0xff] }
0x1280   : > { %4573 = vmatprep.subr.mxu1 %v6005_v27  ;;  %v6061_v27 = vld [vmem:[#allocation2 + $0x1158] sm:$0xff] }
0x1281   : > { %4574 = vmatpush2.msra.mxu1 %v6006_v54  ;;  %v6062_v54 = vld [vmem:[#allocation2 + $0x1150] sm:$0xff] }
0x1282   : > { %4575 = vmatprep.subr.mxu1 %v6007_v57  ;;  %v6063_v57 = vld [vmem:[#allocation2 + $0x1148] sm:$0xff] }
0x1283   : > { %4576 = vmatpush2.msra.mxu1 %v6008_v58  ;;  %v6064_v58 = vld [vmem:[#allocation2 + $0x1140] sm:$0xff] }
0x1284   : > { %4578 = vmatmul.mubr.f32.vlgmr.msra.gmra.mxu1 %v6445_v34 }
0x1285   : > { %4814 = vmatprep.mubr.f32.mxu1 %v6114_v2  ;;  %v6009_v2 = vld [vmem:[#allocation2 + $0x10f8] sm:$0xff] }
0x1304   : > { %v4506_v59 = vpop.f32.mrf.mxu1 }
0x1305   : > { %v6531_v45 = vadd.f32 %v4506_v59, %v6517_v33  ;;  %v6010_v33 = vld [vmem:[#allocation2 + $0x10f0] sm:$0xff]  ;;  %v6065_v59 = vld [vmem:[#allocation2 + $0x1138] sm:$0xff] }
0x1306   : > { %v4508_v47 = vpop.f32.mrf.mxu1 }
0x1307   : > { %v6534_v60 = vadd.f32 %v4508_v47, %v6519_v50  ;;  %v6011_v50 = vld [vmem:[#allocation2 + $0x10e8] sm:$0xff]  ;;  %v6066_v47 = vld [vmem:[#allocation2 + $0x1130] sm:$0xff] }
0x1344   : > { %v4579_v62 = vpop.f32.mrf.mxu1 }
0x1346   : > { %v4581_v3 = vpop.f32.mrf.mxu1 }
0x1347   : > { %5011 = vmatprep.subr.msk.mxu0 %vm2322_vm2, %v4581_v3  ;;  %v6068_v3 = vld [vmem:[#allocation2 + $0x1120] sm:$0xff] }
0x1348   : > { %5012 = vmatpush1.msk.msra.mxu0 %vm2322_vm2, %v4579_v62  ;;  %v6067_v62 = vld [vmem:[#allocation2 + $0x1128] sm:$0xff] }
0x1349   : > { %5013 = vmatmul.mubr.msk.f32.vlgmr.msra.gmra.mxu0 %vm2318_vm3, %v5010_v5  ;;  %4668 = vmatprep.subr.mxu0 %v6009_v2  ;;  %v6069_v5 = vld [vmem:[#allocation2 + $0x1118] sm:$0xff]  ;;  %v6070_v2 = vld [vmem:[#allocation2 + $0x1110] sm:$0xff] }
0x134a   : > { %4669 = vmatpush1.msra.mxu0 %v6010_v33  ;;  %4732 = vmatprep.mubr.f32.mxu0 %v6443_v32  ;;  %v6021_v32 = vld [vmem:[#allocation2 + $0x1098] sm:$0xff]  ;;  %v6071_v33 = vld [vmem:[#allocation2 + $0x1108] sm:$0xff] }
0x134b   : > { %4670 = vmatprep.subr.mxu0 %v6011_v50  ;;  %v6072_v50 = vld [vmem:[#allocation2 + $0x1100] sm:$0xff] }
0x134c   : > { %4671 = vmatpush1.msra.mxu0 %v6012_v6  ;;  %v4823_v6 = vld [vmem:[%s6569_s7] sm:$0x3f] }
0x134d   : > { %4672 = vmatprep.subr.mxu0 %v6013_v41  ;;  %4826 = vperm.xlu1 %5046, %v4823_v6  }
0x134e   : > { %4673 = vmatpush1.msra.mxu0 %v6014_v42 }
0x134f   : > { %4674 = vmatprep.subr.mxu0 %v6015_v7 }
0x1350   : > { %4675 = vmatpush1.msra.mxu0 %v6016_v8 }
0x1351   : > { %4676 = vmatprep.subr.mxu0 %v6017_v53 }
0x1352   : > { %4677 = vmatpush1.msra.mxu0 %v6018_v55 }
0x1353   : > { %4678 = vmatprep.subr.mxu0 %v6019_v11  ;;  %v5014_v11 = vld [vmem:[%s6568_s6 + $0x40] sm:$0x3f] }
0x1354   : > { %4679 = vmatpush1.msra.mxu0 %v6020_v12 }
0x1355   : > { %4680 = vmatprep.subr.mxu0 %v6021_v32 }
0x1356   : > { %4681 = vmatpush1.msra.mxu0 %v6022_v13 }
0x1357   : > { %4682 = vmatprep.subr.mxu0 %v6023_v16 }
0x1358   : > { %4683 = vmatpush1.msra.mxu0 %v6024_v17 }
0x1359   : > { %4684 = vmatprep.subr.mxu0 %v6025_v18 }
0x135a   : > { %4685 = vmatpush1.msra.mxu0 %v6026_v20 }
0x135b   : > { %4686 = vmatprep.subr.mxu0 %v6027_v43 }
0x135c   : > { %4687 = vmatpush1.msra.mxu0 %v6028_v63 }
0x135d   : > { %4688 = vmatprep.subr.mxu0 %v6029_v22 }
0x135e   : > { %4689 = vmatpush1.msra.mxu0 %v6030_v1 }
0x135f   : > { %4690 = vmatprep.subr.mxu0 %v6031_v4 }
0x1360   : > { %4691 = vmatpush1.msra.mxu0 %v6032_v25 }
0x1361   : > { %4692 = vmatprep.subr.mxu0 %v6033_v26 }
0x1362   : > { %4693 = vmatpush1.msra.mxu0 %v6034_v0 }
0x1363   : > { %4694 = vmatprep.subr.mxu0 %v6035_v28 }
0x1364   : > { %4695 = vmatpush1.msra.mxu0 %v6036_v29 }
0x1365   : > { %4696 = vmatprep.subr.mxu0 %v6037_v30 }
0x1366   : > { %4697 = vmatpush1.msra.mxu0 %v6038_v9 }
0x1367   : > { %4698 = vmatprep.subr.mxu0 %v6039_v10 }
0x1368   : > { %4699 = vmatpush1.msra.mxu0 %v6040_v21 }
0x1369   : > { %4700 = vmatprep.subr.mxu0 %v6041_v36 }
0x136a   : > { %4701 = vmatpush2.msra.mxu0 %v6042_v37 }
0x136b   : > { %4702 = vmatprep.subr.mxu0 %v6043_v14 }
0x136c   : > { %4703 = vmatpush2.msra.mxu0 %v6044_v15 }
0x136d   : > { %4704 = vmatprep.subr.mxu0 %v6045_v23 }
0x136e   : > { %4705 = vmatpush2.msra.mxu0 %v6046_v24 }
0x136f   : > { %4706 = vmatprep.subr.mxu0 %v6047_v38 }
0x1370   : > { %4707 = vmatpush2.msra.mxu0 %v6048_v39 }
0x1371   : > { %4708 = vmatprep.subr.mxu0 %v6049_v40 }
0x1372   : > { %4709 = vmatpush2.msra.mxu0 %v6050_v56 }
0x1373   : > { %4710 = vmatprep.subr.mxu0 %v6051_v44 }
0x1374   : > { %4711 = vmatpush2.msra.mxu0 %v6052_v46 }
0x1375   : > { %4712 = vmatprep.subr.mxu0 %v6053_v48 }
0x1376   : > { %4713 = vmatpush2.msra.mxu0 %v6054_v31 }
0x1377   : > { %4714 = vmatprep.subr.mxu0 %v6055_v49 }
0x1378   : > { %4715 = vmatpush2.msra.mxu0 %v6056_v19 }
0x1379   : > { %4716 = vmatprep.subr.mxu0 %v6057_v35 }
0x137a   : > { %4717 = vmatpush2.msra.mxu0 %v6058_v51 }
0x137b   : > { %4718 = vmatprep.subr.mxu0 %v6059_v52 }
0x137c   : > { %4719 = vmatpush2.msra.mxu0 %v6060_v61 }
0x137d   : > { %4720 = vmatprep.subr.mxu0 %v6061_v27 }
0x137e   : > { %4721 = vmatpush2.msra.mxu0 %v6062_v54 }
0x137f   : > { %4722 = vmatprep.subr.mxu0 %v6063_v57 }
0x1380   : > { %4723 = vmatpush2.msra.mxu0 %v6064_v58 }
0x1381   : > { %4724 = vmatprep.subr.mxu0 %v6065_v59 }
0x1382   : > { %4725 = vmatpush2.msra.mxu0 %v6066_v47 }
0x1383   : > { %4726 = vmatprep.subr.mxu0 %v6067_v62 }
0x1384   : > { %4727 = vmatpush2.msra.mxu0 %v6068_v3 }
0x1385   : > { %4728 = vmatprep.subr.mxu0 %v6069_v5 }
0x1386   : > { %4729 = vmatpush2.msra.mxu0 %v6070_v2 }
0x1387   : > { %4730 = vmatprep.subr.mxu0 %v6071_v33 }
0x1388   : > { %4731 = vmatpush2.msra.mxu0 %v6072_v50 }
0x1389   : > { %4733 = vmatmul.mubr.f32.vlgmr.msra.gmra.mxu0 %v6445_v34 }
0x13c8   : > { %v4827_v12 = vpop.permute.xlu1 %4826 }
0x1409   : > { %v4661_v41 = vpop.f32.mrf.mxu0 }
0x140a   : > { %v4666_v42 = vadd.f32 %v4661_v41, %v6531_v45 }
0x140b   : > { %v4663_v7 = vpop.f32.mrf.mxu0 }
0x140c   : > { %v4667_v8 = vadd.f32 %v4663_v7, %v6534_v60 }
0x1449   : > { %v4734_v53 = vpop.f32.mrf.mxu0 }
0x144b   : > { %v4736_v55 = vpop.f32.mrf.mxu0 }
0x144c   : > { %5015 = vmatprep.subr.msk.mxu1 %vm2322_vm2, %v4736_v55 }
0x144d   : > { %5016 = vmatpush1.msk.msra.mxu1 %vm2322_vm2, %v4734_v53 }
0x144e   : > { %5017 = vmatmul.mubr.msk.f32.vlgmr.msra.gmra.mxu1 %vm2318_vm3, %v5014_v11 }
0x150e   : > { %v4816_v34 = vpop.f32.mrf.mxu1 }
0x150f   : > { %v4821_v32 = vadd.f32 %v4816_v34, %v4666_v42 }
0x1510   : > { %v4818_v45 = vpop.f32.mrf.mxu1 }
0x1511   : > { %v4829_v13 = vadd.f32 %v4827_v12, %v4821_v32  ;;  %v4822_v16 = vadd.f32 %v4818_v45, %v4667_v8 }
0x1513   : > { %v4831_v60 = vmax.f32 %v4829_v13, 0.0  ;;  %v4830_v17 = vadd.f32 %v4827_v12, %v4822_v16 }
0x1515   : > { %4833 = vst [vmem:[%s320_s22] sm:$0x3f] %v4831_v60  ;;  %v4832_v18 = vmax.f32 %v4830_v17, 0.0 }
0x1517   : > { %4834 = vst [vmem:[%s320_s22 + $0x8] sm:$0x3f] %v4832_v18 }
0x1518 PF: > { %s19_s27 = sadd.s32 1, %s6109_s27  }
0x1519   : > { %p16_p1 = scmp.ge.s32.totalorder %s19_s27, 4  }
0x151b   :  { %18 = sbr.rel (!%p16_p1) target bundleno = 1 (0x1), region = 118 }
0x1520   :  { %4856 = vsyncpa [#allocation3], 1 }
0x1521   :  { %4858 = vsyncpa [#allocation3 + $0x1], 1 }

</bundles_post_ra>
